<compile_context>
chip_gen: v5e
topology: v5e:2x2
jax: 0.10.0
libtpu: 0.0.40
codegen_flags: <defaults>
</compile_context>

<pallas_src>
import jax
import jax.numpy as jnp
from jax import lax
from jax.experimental import pallas as pl
from jax.experimental.pallas import tpu as pltpu


def _convlstm_kernel(lhs_ref, w_ref, pc_ref, out_ref):
    # lhs_ref: (TM, K_pad)  bf16 im2col rows (bias ones-column fused in)
    # w_ref:   (K_pad, 4*hid) bf16 flattened conv weights (+ bias row)
    # pc_ref:  (TM, hid)    f32 previous cell state
    # out_ref: (TM, 4*hid)  f32 packed [cell | hidden | cell | hidden]
    hid = pc_ref.shape[-1]

    # Single MXU contraction: gates = im2col @ W (+ bias via fused ones column).
    gates = jnp.dot(lhs_ref[...], w_ref[...],
                    preferred_element_type=jnp.float32)

    # Full-width activations with a lane mask: sigmoid on gate groups 0..2,
    # tanh on group 3 (torch chunk order: in, remember, out, cell).
    lane = lax.broadcasted_iota(jnp.int32, gates.shape, 1)
    act = jnp.where(lane < 3 * hid, jax.nn.sigmoid(gates), jnp.tanh(gates))

    in_gate = act[:, 0 * hid:1 * hid]
    remember_gate = act[:, 1 * hid:2 * hid]
    out_gate = act[:, 2 * hid:3 * hid]
    cell_gate = act[:, 3 * hid:4 * hid]

    prev_c = pc_ref[...]
    cell = remember_gate * prev_c + in_gate * cell_gate
    hidden = out_gate * jnp.tanh(cell)

    # Lane-dense (4*hid-wide) output slab -> unmasked full-width stores.
    out_ref[...] = jnp.concatenate([cell, hidden, cell, hidden], axis=-1)


def conv_lstm_cell(input_nchw, prev_state, weight_oihw, bias, hidden_size):
    """Pallas ConvLSTMCell forward. input_nchw: (B, C_in, H, W).
    prev_state: None or (prev_cell_nchw, prev_hidden_nchw).
    Returns (cell, hidden), both NCHW."""
    B, Cin, Hh, Ww = input_nchw.shape
    hid = hidden_size
    if prev_state is None:
        z = jnp.zeros((B, hid, Hh, Ww), jnp.float32)
        prev_state = (z, z)
    prev_cell_nchw, prev_hidden_nchw = prev_state

    # NCHW -> NHWC
    x = jnp.transpose(input_nchw, (0, 2, 3, 1)).astype(jnp.float32)
    ph = jnp.transpose(prev_hidden_nchw, (0, 2, 3, 1)).astype(jnp.float32)
    pc = jnp.transpose(prev_cell_nchw, (0, 2, 3, 1)).astype(jnp.float32)

    # TODO(synk): F.dropout(input_, p=0.2) for phase='train' not implemented
    # (identity here, matching phase='test').
    stacked = jnp.concatenate([x, ph], axis=-1)               # (B,H,W,c_cat)
    c_cat = stacked.shape[-1]
    xpad = jnp.pad(stacked, ((0, 0), (1, 1), (1, 1), (0, 0)))

    # im2col: 9 shifted windows concatenated along channel -> K = 9*c_cat.
    patches = [xpad[:, dy:dy + Hh, dx:dx + Ww, :]
               for dy in range(3) for dx in range(3)]
    im2col = jnp.concatenate(patches, axis=-1).reshape(B * Hh * Ww, 9 * c_cat)

    M = B * Hh * Ww
    four_h = 4 * hid
    K = 9 * c_cat + 1                          # +1 ones column fuses the bias
    K_pad = ((K + 127) // 128) * 128           # lane-dense contraction dim

    lhs = jnp.concatenate(
        [im2col,
         jnp.ones((M, 1), jnp.float32),
         jnp.zeros((M, K_pad - K), jnp.float32)], axis=-1).astype(jnp.bfloat16)

    # OIHW -> HWIO -> (9*c_cat, 4*hid); bias as extra row; zero-pad to K_pad.
    w_hwio = jnp.transpose(weight_oihw, (2, 3, 1, 0)).astype(jnp.float32)
    w2d = jnp.concatenate(
        [w_hwio.reshape(9 * c_cat, four_h),
         bias.reshape(1, four_h).astype(jnp.float32),
         jnp.zeros((K_pad - K, four_h), jnp.float32)], axis=0).astype(jnp.bfloat16)

    pc_flat = pc.reshape(M, hid)

    # Tile M; 256-row tiles keep both v7x TensorCores busy when M >= 512,
    # otherwise run the whole (batch-folded) problem in a single grid step.
    TM = 256 if (M % 256 == 0 and M > 256) else M
    grid = (M // TM,)

    out = pl.pallas_call(
        _convlstm_kernel,
        out_shape=jax.ShapeDtypeStruct((M, four_h), jnp.float32),
        grid=grid,
        in_specs=[
            pl.BlockSpec((TM, K_pad), lambda i: (i, 0)),
            pl.BlockSpec((K_pad, four_h), lambda i: (0, 0)),
            pl.BlockSpec((TM, hid), lambda i: (i, 0)),
        ],
        out_specs=pl.BlockSpec((TM, four_h), lambda i: (i, 0)),
        compiler_params=pltpu.CompilerParams(
            dimension_semantics=("parallel",)),
    )(lhs, w2d, pc_flat)

    out = out.reshape(B, Hh, Ww, four_h)
    cell = jnp.transpose(out[..., 0:hid], (0, 3, 1, 2))
    hidden = jnp.transpose(out[..., hid:2 * hid], (0, 3, 1, 2))
    return cell, hidden


def _reference(input_nchw, prev_state, weight_oihw, bias, hidden_size):
    """Pure-JAX f32 reference using lax.conv_general_dilated (NCHW/OIHW)."""
    B, Cin, Hh, Ww = input_nchw.shape
    if prev_state is None:
        z = jnp.zeros((B, hidden_size, Hh, Ww), jnp.float32)
        prev_state = (z, z)
    prev_cell, prev_hidden = prev_state
    stacked = jnp.concatenate([input_nchw, prev_hidden], axis=1)
    gates = lax.conv_general_dilated(
        stacked, weight_oihw, window_strides=(1, 1), padding="SAME",
        dimension_numbers=("NCHW", "OIHW", "NCHW"))
    gates = gates + bias.reshape(1, -1, 1, 1)
    in_g, rem_g, out_g, cell_g = jnp.split(gates, 4, axis=1)
    in_g = jax.nn.sigmoid(in_g)
    rem_g = jax.nn.sigmoid(rem_g)
    out_g = jax.nn.sigmoid(out_g)
    cell_g = jnp.tanh(cell_g)
    cell = rem_g * prev_cell + in_g * cell_g
    hidden = out_g * jnp.tanh(cell)
    return cell, hidden


if __name__ == "__main__":
    # Small, deterministic problem: batch=2, input_size=4, hidden_size=32, 16x16.
    B, Cin, Hh, Ww = 2, 4, 16, 16
    hidden_size = 32
    c_cat = Cin + hidden_size
    four_h = 4 * hidden_size

    key = jax.random.PRNGKey(0)
    k_x, k_c, k_h, k_w, k_b = jax.random.split(key, 5)

    x = jax.random.normal(k_x, (B, Cin, Hh, Ww), jnp.float32)
    prev_cell = jax.random.normal(k_c, (B, hidden_size, Hh, Ww), jnp.float32)
    prev_hidden = jax.random.normal(k_h, (B, hidden_size, Hh, Ww), jnp.float32)

    # Deterministic Conv2d(input+hidden -> 4*hidden, k=3) parameters, OIHW + bias.
    weight = 0.05 * jax.random.normal(k_w, (four_h, c_cat, 3, 3), jnp.float32)
    bias = 0.05 * jax.random.normal(k_b, (four_h,), jnp.float32)

    cell, hidden = conv_lstm_cell(x, (prev_cell, prev_hidden),
                                  weight, bias, hidden_size)
    jax.block_until_ready((cell, hidden))

    cell_ref, hidden_ref = _reference(x, (prev_cell, prev_hidden),
                                      weight, bias, hidden_size)
    # bf16 MXU operands (f32 accumulation) -> loosened tolerance vs f32 reference.
    assert jnp.allclose(cell, cell_ref, atol=5e-2, rtol=5e-2)
    assert jnp.allclose(hidden, hidden_ref, atol=5e-2, rtol=5e-2)

    # Also exercise the prev_state=None path (zero-initialized state).
    cell0, hidden0 = conv_lstm_cell(x, None, weight, bias, hidden_size)
    jax.block_until_ready((cell0, hidden0))
    cell0_ref, hidden0_ref = _reference(x, None, weight, bias, hidden_size)
    assert jnp.allclose(cell0, cell0_ref, atol=5e-2, rtol=5e-2)
    assert jnp.allclose(hidden0, hidden0_ref, atol=5e-2, rtol=5e-2)

    print("KERNEL_OK")
</pallas_src>

<mosaic_0001>
module attributes {stable_mosaic.version = 11 : i64} {
  func.func @_convlstm_kernel(%arg0: i32, %arg1: memref<256x384xbf16, #tpu.memory_space<vmem>>, %arg2: memref<384x128xbf16, #tpu.memory_space<vmem>>, %arg3: memref<256x32xf32, #tpu.memory_space<vmem>>, %arg4: memref<256x128xf32, #tpu.memory_space<vmem>>) attributes {dimension_semantics = [#tpu.dimension_semantics<parallel>], iteration_bounds = array<i64: 2>, scalar_prefetch = 0 : i64, scratch_operands = 0 : i64, tpu.core_type = #tpu.core_type<tc>, window_params = [{transform_indices = @transform_0, window_bounds = array<i64: 256, 384>}, {pipeline_mode = #tpu.pipeline_mode<synchronous>, transform_indices = @transform_1, window_bounds = array<i64: 384, 128>}, {transform_indices = @transform_2, window_bounds = array<i64: 256, 32>}, {transform_indices = @transform_3, window_bounds = array<i64: 256, 128>}]} {
    %c0 = arith.constant 0 : index
    %c0_0 = arith.constant 0 : index
    %0 = vector.load %arg1[%c0, %c0_0] : memref<256x384xbf16, #tpu.memory_space<vmem>>, vector<256x384xbf16>
    %c0_1 = arith.constant 0 : index
    %c0_2 = arith.constant 0 : index
    %1 = vector.load %arg2[%c0_1, %c0_2] : memref<384x128xbf16, #tpu.memory_space<vmem>>, vector<384x128xbf16>
    %cst = arith.constant dense<0.000000e+00> : vector<256x128xf32>
    %2 = tpu.matmul %0, %1, %cst {dimension_numbers = #tpu.dot_dimension_numbers<[1], [0], [0], [1], [0, 0, 1, 1], [], []>} : vector<256x384xbf16>, vector<384x128xbf16>, vector<256x128xf32> -> vector<256x128xf32>
    %3 = tpu.iota {dimensions = array<i32: 1>} : vector<256x128xi32>
    %c96_i32 = arith.constant 96 : i32
    %4 = vector.broadcast %c96_i32 : i32 to vector<256x128xi32>
    %5 = arith.cmpi slt, %3, %4 : vector<256x128xi32>
    %6 = arith.negf %2 : vector<256x128xf32>
    %7 = math.exp %6 : vector<256x128xf32>
    %cst_3 = arith.constant 1.000000e+00 : f32
    %8 = vector.broadcast %cst_3 : f32 to vector<256x128xf32>
    %9 = arith.addf %8, %7 : vector<256x128xf32>
    %10 = arith.divf %8, %9 : vector<256x128xf32>
    %11 = math.tanh %2 : vector<256x128xf32>
    %12 = arith.select %5, %10, %11 : vector<256x128xi1>, vector<256x128xf32>
    %13 = vector.extract_strided_slice %12 {offsets = [0, 0], sizes = [256, 32], strides = [1, 1]} : vector<256x128xf32> to vector<256x32xf32>
    %14 = vector.extract_strided_slice %12 {offsets = [0, 32], sizes = [256, 32], strides = [1, 1]} : vector<256x128xf32> to vector<256x32xf32>
    %15 = vector.extract_strided_slice %12 {offsets = [0, 64], sizes = [256, 32], strides = [1, 1]} : vector<256x128xf32> to vector<256x32xf32>
    %16 = vector.extract_strided_slice %12 {offsets = [0, 96], sizes = [256, 32], strides = [1, 1]} : vector<256x128xf32> to vector<256x32xf32>
    %c0_4 = arith.constant 0 : index
    %c0_5 = arith.constant 0 : index
    %17 = vector.load %arg3[%c0_4, %c0_5] : memref<256x32xf32, #tpu.memory_space<vmem>>, vector<256x32xf32>
    %18 = arith.mulf %14, %17 : vector<256x32xf32>
    %19 = arith.mulf %13, %16 : vector<256x32xf32>
    %20 = arith.addf %18, %19 : vector<256x32xf32>
    %21 = math.tanh %20 : vector<256x32xf32>
    %22 = arith.mulf %15, %21 : vector<256x32xf32>
    %23 = tpu.concatenate %20, %22, %20, %22 in 1 : vector<256x32xf32>, vector<256x32xf32>, vector<256x32xf32>, vector<256x32xf32> -> vector<256x128xf32>
    %c0_6 = arith.constant 0 : index
    %c0_7 = arith.constant 0 : index
    %24 = vector.load %arg4[%c0_6, %c0_7] : memref<256x128xf32, #tpu.memory_space<vmem>>, vector<256x128xf32>
    tpu.vector_store %arg4[%c0_6, %c0_7], %23 {strides = array<i32>} : memref<256x128xf32, #tpu.memory_space<vmem>>, vector<256x128xf32>,
    return
  }
  func.func @transform_0(%arg0: i32) -> (i32, i32) {
    %c0_i32 = arith.constant 0 : i32
    %c0_i32_0 = arith.constant 0 : i32
    return %arg0, %c0_i32 : i32, i32
  }
  func.func @transform_1(%arg0: i32) -> (i32, i32) {
    %c0_i32 = arith.constant 0 : i32
    %c0_i32_0 = arith.constant 0 : i32
    %c0_i32_1 = arith.constant 0 : i32
    return %c0_i32, %c0_i32_0 : i32, i32
  }
  func.func @transform_2(%arg0: i32) -> (i32, i32) {
    %c0_i32 = arith.constant 0 : i32
    %c0_i32_0 = arith.constant 0 : i32
    return %arg0, %c0_i32 : i32, i32
  }
  func.func @transform_3(%arg0: i32) -> (i32, i32) {
    %c0_i32 = arith.constant 0 : i32
    %c0_i32_0 = arith.constant 0 : i32
    return %arg0, %c0_i32 : i32, i32
  }
}

</mosaic_0001>

<bundles_post_ra>
// kernel: tpu_custom_call.1
= control target key start
LH: loop header
LB: loop body
LE: loop exit
PB: predicated region body
PF: predicated region fallthrough
CT: control target
= control target key end

     0   :  { %8 = vsyncpa [#allocation3], 0  ;;  %s5978_s0 = inlined_call_operand.hbm [shape: bf16[512,384], index: 0, kind: input, shape index: {}]   ;;  %s5979_s1 = inlined_call_operand.vmem [shape: bf16[384,128], index: 1, kind: input, shape index: {}]   ;;  %s5980_s2 = inlined_call_operand.vmem [shape: f32[512,32], index: 2, kind: input, shape index: {}]   ;;  %s5981_s3 = inlined_call_operand.hbm [shape: f32[512,128], index: 3, kind: output, shape index: {}]  }
   0x1   :  { %10 = vsyncpa [#allocation3 + $0x1], 0 }
   0x2   :  { %11 = vsyncpa [#allocation4], 0 }
   0x3   :  { %13 = vsyncpa [#allocation4 + $0x1], 0  ;;  %s3921_s12 = smov 0   ;;  %s3923_s13 = smov 0  }
   0x4   :  { %s3925_s14 = smov 0   ;;  %s3927_s15 = smov 0  }
   0x5 LB: > { %s3942_s16 = sadd.s32 4294967295, %s3893_s15   ;;  %s3054_s17 = sadd.s32 4294967294, %s3893_s15   ;;  %s3893_s15 = sphi %s3927_s15, %s6124_s15   ;;  %s3889_s14 = sphi %s3925_s14, %s6123_s14   ;;  %s3885_s13 = sphi %s3923_s13, %s6122_s13   ;;  %s3881_s12 = sphi %s3921_s12, %s6121_s12  }
   0x6   : > { %s3946_s18 = sadd.s32 1, %s3893_s15   ;;  %s26_s19 = sadd.s32 1, %s3889_s14 }
   0x7   : > { %s23_s20 = ssub.s32 %s3893_s15, %s3946_s18  ;;  %p33_p0 = scmp.ne.s32.totalorder %s3889_s14, %s3885_s13 }
   0x8   : > { %p24_p1 = scmp.eq.s32.totalorder %s23_s20, 0  ;;  %p34_p2 = scmp.eq.s32.totalorder %s3893_s15, 0 }
   0x9   : > { %p39_p3 = scmp.ne.s32.totalorder %s3885_s13, %s3881_s12  ;;  %p40_p4 = scmp.eq.s32.totalorder %s3942_s16, 0 }
   0xa   : > { %s3958_s21 = scalar_select %p24_p1, %s3889_s14, %s26_s19  }
   0xb   : > { %p35_p5 = por %p34_p2, %p33_p0  ;;  %p3960_p6 = por %p40_p4, %p39_p3 }
   0xc   : > { %p110_p7 = scmp.eq.s32.totalorder %s3942_s16, 1  ;;  %p116_p8 = scmp.eq.s32.totalorder %s3054_s17, 1 }
   0xd   : > { %p3056_p9 = scmp.ge.s32.totalorder %s3893_s15, 2  ;;  %p3501_p10 = scmp.lt.s32.totalorder %s3893_s15, 2 }
   0xe   : > { %p3967_p11 = por %p110_p7, %p33_p0  ;;  %p3971_p12 = por %p116_p8, %p39_p3 }
   0xf   : > { %s139_s25 = sand.u32 1, %s3889_s14   ;;  %s3487_s26 = smul.u32 384, %s3893_s15 }
  0x10   : > { %s3486_s27 = smul.u32 384, %s139_s25  ;;  %p3980_p13 = pnand %p3501_p10, %p35_p5 }
  0x11   : > { %s149_s30 = scalar_lea.hbm %s5978_s0, %s3487_s26  ;;  %s140_s8 = scalar_lea.sflag [#allocation3], %s139_s25 }
  0x12   : > { %s150_s5 = sshll.u32 %s149_s30, 4  ;;  %s143_s6 = scalar_lea.vmem [#allocation2], %s3486_s27  ;;  %s151_s5 = int_to_ptr.hbm [resolvable:$true] %s150_s5 }
  0x13   : > { %s152_s7 = sshll.u32 %s143_s6, 4  ;;  %s3797_s9 = sshra.s32 %s151_s5, 4  ;;  %s153_s7 = int_to_ptr.vmem [resolvable:$true] %s152_s7  ;;  %s3798_s9 = int_to_ptr.hbm [resolvable:$true] %s3797_s9 }
  0x14   : > { %s3799_s10 = scalar_lea.hbm %s3798_s9, 384  ;;  %p3801_p1 = pneg %p3980_p13 }
  0x15   : > { %p3800_p0 = scmp.ne.s32.totalorder %s3798_s9, %s3799_s10  ;;  %s3804_s19 = scalar_lea.hbm %s5978_s0, 768 }
  0x16   : > { %p3805_p4 = scmp.lt.s32.totalorder %s3798_s9, %s5978_s0  ;;  %p3806_p5 = scmp.lt.s32.totalorder %s3804_s19, %s3799_s10 }
  0x17   : > { %p3802_p2 = pnand %p3801_p1, %p3800_p0 }
  0x18   : > { %p3807_p7 = por %p3806_p5, %p3805_p4 }
  0x19   : > { %p3803_p3 = pneg %p3802_p2 }
  0x1b   : > { %p3808_p8 = pnand %p3807_p7, %p3803_p3 }
  0x1d   : > { %3811 = shalt.err (!%p3808_p8)
}
  0x1e   : > { %s3895_s25 = smov 192   ;;  %s3896_s27 = smov 12  }
  0x1f   : > { %3496 = dma.hbm_to_vmem [thread:$0]  (!%p3980_p13), %s151_s5, 6144, %s153_s7, %s140_s8, %s3895_s25, %s3895_s25, %s3896_s27  }
  0x20   : > { %p3060_p10 = scmp.ge.s32.totalorder %s3893_s15, 1  ;;  %p169_p0 = scmp.lt.s32.totalorder %s3893_s15, 3 }
  0x22   : > { %p170_p1 = pnand %p3060_p10, %p169_p0 }
  0x24   : > { %173 = sbr.rel (%p170_p1) target bundleno = 1064 (0x428), region = 32 }
  0x29   : > { %s3997_s28 = sand.u32 1, %s3885_s13  }
  0x2a   : > { %s3488_s29 = smul.u32 384, %s3997_s28  ;;  %s176_s30 = scalar_lea.sflag [#allocation3], %s3997_s28 }
  0x2c   : > { %s4001_s6 = scalar_lea.vmem [#allocation2], %s3488_s29 }
  0x2d   : > { %3872 = dma.done.wait (%p3960_p6), %s176_s30, 6144  }
  0x2e   : > { %3874 = vsyncadd (%p3960_p6), %s176_s30, 4294961152  ;;  %v3444_v0 = vld [vmem:[%s5979_s1 + $0x38] sm:$0xff]  ;;  %v3443_v3 = vld [vmem:[%s5979_s1 + $0x30] sm:$0xff]  ;;  %s3062_s29 = sshll.u32 %s3942_s16, 5  ;;  %s3061_s11 = sshll.u32 %s3997_s28, 8 }
  0x2f   : > { %v4013_v1 = vld [vmem:[%s5979_s1 + $0x78] sm:$0xff]  ;;  %728 = vmatpush.bf16.msra.mxu0 %v3444_v0  ;;  %3462 = vmatpush.bf16.msra.mxu3 %v3444_v0  ;;  %v4028_v4 = vld [vmem:[%s5979_s1 + $0x70] sm:$0xff]  ;;  %v3442_v6 = vld [vmem:[%s5979_s1 + $0x28] sm:$0xff]  ;;  %p210_p6 = scmp.lt.s32.totalorder %s3062_s29, 63  ;;  %s5546_s17 = scalar_lea.vmem [#allocation5], %s3061_s11 }
  0x30   : > { %v4018_v2 = vld [vmem:[%s5979_s1 + $0xb8] sm:$0xff]  ;;  %817 = vmatpush.bf16.msra.mxu1 %v4013_v1  ;;  %v4033_v5 = vld [vmem:[%s5979_s1 + $0xb0] sm:$0xff]  ;;  %v4043_v7 = vld [vmem:[%s5979_s1 + $0x68] sm:$0xff]  ;;  %s3461_s22 = sshll.u32 %s3942_s16, 8  ;;  %s2966_s16 = sshll.u32 %s5546_s17, 4  ;;  %s2967_s16 = int_to_ptr.vmem [resolvable:$true] %s2966_s16 }
  0x31   : > { %906 = vmatpush.bf16.msra.mxu2 %v4018_v2  ;;  %v4048_v8 = vld [vmem:[%s5979_s1 + $0xa8] sm:$0xff]  ;;  %v3441_v9 = vld [vmem:[%s5979_s1 + $0x20] sm:$0xff]  ;;  %v3440_v12 = vld [vmem:[%s5979_s1 + $0x18] sm:$0xff]  ;;  %s6126_s29 = smov (!%p210_p6, %s3062_s29), 63  ;;  %s2965_s26 = scalar_lea.hbm %s5981_s3, %s3461_s22 }
  0x32   : > { %v4058_v10 = vld [vmem:[%s5979_s1 + $0x60] sm:$0xff]  ;;  %v4073_v13 = vld [vmem:[%s5979_s1 + $0x58] sm:$0xff]  ;;  %v3439_v15 = vld [vmem:[%s5979_s1 + $0x10] sm:$0xff]  ;;  %s3063_s7 = sshll.u32 %s6126_s29, 3  ;;  %s3897_s29 = smov 32  }
  0x33   : > { %729 = vmatpush.bf16.msra.mxu0 %v3443_v3  ;;  %3463 = vmatpush.bf16.msra.mxu3 %v3443_v3  ;;  %v4063_v11 = vld [vmem:[%s5979_s1 + $0xa0] sm:$0xff]  ;;  %v4078_v14 = vld [vmem:[%s5979_s1 + $0x98] sm:$0xff]  ;;  %v4089_v16 = vld [vmem:[%s5979_s1 + $0x50] sm:$0xff]  ;;  %s4136_s10 = scalar_lea.vmem %s5980_s2, %s3063_s7  ;;  %s2968_s25 = sshll.u32 %s2965_s26, 4  ;;  %s2969_s25 = int_to_ptr.hbm [resolvable:$true] %s2968_s25 }
  0x34   : > { %818 = vmatpush.bf16.msra.mxu1 %v4028_v4  ;;  %v4094_v17 = vld [vmem:[%s5979_s1 + $0x90] sm:$0xff]  ;;  %v3438_v18 = vld [vmem:[%s5979_s1 + $0x8] sm:$0xff]  ;;  %v3437_v21 = vld [vmem:[%s5979_s1] sm:$0xff]  ;;  %s2954_s27 = scalar_lea.sflag [#allocation4], %s3997_s28  ;;  %s3841_s30 = sshra.s32 %s2969_s25, 4  ;;  %s3842_s30 = int_to_ptr.hbm [resolvable:$true] %s3841_s30 }
  0x35   : > { %907 = vmatpush.bf16.msra.mxu2 %v4033_v5  ;;  %v3446_v19 = vld [vmem:[%s5979_s1 + $0x48] sm:$0xff]  ;;  %v4115_v22 = vld [vmem:[%s5979_s1 + $0x40] sm:$0xff]  ;;  %v3068_v29 = vld [vmem:[%s4001_s6 + $0xc] sm:$0xf0]  ;;  %s3843_s4 = scalar_lea.hbm %s3842_s30, 256  ;;  %s3847_s8 = scalar_lea.hbm %s5981_s3, 512 }
  0x36   : > { %v4107_v20 = vld [vmem:[%s5979_s1 + $0x88] sm:$0xff]  ;;  %v4120_v23 = vld [vmem:[%s5979_s1 + $0x80] sm:$0xff]  ;;  %v3391_v31 = vld [vmem:[%s4001_s6 + $0x10] sm:$0xf0]  ;;  %p3844_p13 = scmp.ne.s32.totalorder %s3842_s30, %s3843_s4  ;;  %p3848_p4 = scmp.lt.s32.totalorder %s3842_s30, %s5981_s3 }
  0x37   : > { %730 = vmatpush.bf16.msra.mxu0 %v3442_v6  ;;  %3464 = vmatpush.bf16.msra.mxu3 %v3442_v6  ;;  %v3066_v24 = vld [vmem:[%s4001_s6] sm:$0xf]  ;;  %v3390_v25 = vld [vmem:[%s4001_s6 + $0x8] sm:$0xf0]  ;;  %v3389_v28 = vld [vmem:[%s4001_s6 + $0x4] sm:$0xf]  ;;  %p3849_p5 = scmp.lt.s32.totalorder %s3847_s8, %s3843_s4 }
  0x38   : > { %819 = vmatpush.bf16.msra.mxu1 %v4043_v7  ;;  %v3210_v26 = vld [vmem:[%s4001_s6 + $0x120] sm:$0xf]  ;;  %v3426_v27 = vld [vmem:[%s4001_s6 + $0x128] sm:$0xf0]  ;;  %v3074_v30 = vld [vmem:[%s4001_s6 + $0x8] sm:$0xf]  ;;  %v3067_v32 = vor.u32 %v3390_v25, %v3066_v24  ;;  %v3071_v34 = vor.u32 %v3389_v28, %v3068_v29  ;;  %p3845_p2 = pnand %p3844_p13, %p3967_p11 }
  0x39   : > { %908 = vmatpush.bf16.msra.mxu2 %v4048_v8  ;;  %v3211_v33 = vor.u32 %v3426_v27, %v3210_v26  ;;  %v3075_v35 = vor.u32 %v3391_v31, %v3074_v30  ;;  %v1670_v36 = vld [vmem:[%s4136_s10] sm:$0xff]  ;;  %v3078_v37 = vld [vmem:[%s4001_s6 + $0x18] sm:$0xf]  ;;  %v3392_v41 = vld [vmem:[%s4001_s6 + $0x1c] sm:$0xf]  ;;  %p3850_p7 = por %p3849_p5, %p3848_p4 }
  0x3a   : > { %1734 = vrot.lane.b32.xlu0 %v1670_v36, %s3897_s29  ;;  %v3393_v38 = vld [vmem:[%s4001_s6 + $0x20] sm:$0xf0]  ;;  %v3222_v39 = vld [vmem:[%s4001_s6 + $0x138] sm:$0xf]  ;;  %v3080_v42 = vld [vmem:[%s4001_s6 + $0x24] sm:$0xf0]  ;;  %p3846_p3 = pneg %p3845_p2 }
  0x3b   : > { %731 = vmatpush.bf16.msra.mxu0 %v3441_v9  ;;  %3465 = vmatpush.bf16.msra.mxu3 %v3441_v9  ;;  %v3429_v40 = vld [vmem:[%s4001_s6 + $0x140] sm:$0xf0]  ;;  %v3086_v43 = vld [vmem:[%s4001_s6 + $0x20] sm:$0xf]  ;;  %v3394_v44 = vld [vmem:[%s4001_s6 + $0x28] sm:$0xf0]  ;;  %v3079_v45 = vor.u32 %v3393_v38, %v3078_v37  ;;  %v3083_v47 = vor.u32 %v3392_v41, %v3080_v42 }
  0x3c   : > { %820 = vmatpush.bf16.msra.mxu1 %v4058_v10  ;;  %v3223_v46 = vor.u32 %v3429_v40, %v3222_v39  ;;  %v3087_v48 = vor.u32 %v3394_v44, %v3086_v43  ;;  %v1671_v49 = vld [vmem:[%s4136_s10 + $0x8] sm:$0xff]  ;;  %v1672_v50 = vld [vmem:[%s4136_s10 + $0x10] sm:$0xff]  ;;  %v3396_v52 = vld [vmem:[%s4001_s6 + $0x38] sm:$0xf0]  ;;  %p3851_p8 = pnand %p3850_p7, %p3846_p3 }
  0x3d   : > { %909 = vmatpush.bf16.msra.mxu2 %v4063_v11  ;;  %1738 = vrot.lane.b32.xlu1 %v1672_v50, %s3897_s29  ;;  %v3090_v51 = vld [vmem:[%s4001_s6 + $0x30] sm:$0xf]  ;;  %v3432_v54 = vld [vmem:[%s4001_s6 + $0x158] sm:$0xf0]  ;;  %v3395_v55 = vld [vmem:[%s4001_s6 + $0x34] sm:$0xf] }
  0x3e   : > { %v3234_v53 = vld [vmem:[%s4001_s6 + $0x150] sm:$0xf]  ;;  %v3092_v56 = vld [vmem:[%s4001_s6 + $0x3c] sm:$0xf0]  ;;  %v3098_v57 = vld [vmem:[%s4001_s6 + $0x38] sm:$0xf]  ;;  %v3091_v59 = vor.u32 %v3396_v52, %v3090_v51 }
  0x3f   : > { %732 = vmatpush.bf16.msra.mxu0 %v3440_v12  ;;  %3466 = vmatpush.bf16.msra.mxu3 %v3440_v12  ;;  %v3397_v58 = vld [vmem:[%s4001_s6 + $0x40] sm:$0xf0]  ;;  %v3235_v60 = vor.u32 %v3432_v54, %v3234_v53  ;;  %v3095_v61 = vor.u32 %v3395_v55, %v3092_v56  ;;  %v1673_v63 = vld [vmem:[%s4136_s10 + $0x18] sm:$0xff]  ;;  %v3102_v0 = vld [vmem:[%s4001_s6 + $0x48] sm:$0xf] }
  0x40   : > { %821 = vmatpush.bf16.msra.mxu1 %v4073_v13  ;;  %v3099_v62 = vor.u32 %v3397_v58, %v3098_v57  ;;  %v3246_v3 = vld [vmem:[%s4001_s6 + $0x168] sm:$0xf]  ;;  %v3104_v6 = vld [vmem:[%s4001_s6 + $0x54] sm:$0xf0]  ;;  %v3400_v9 = vld [vmem:[%s4001_s6 + $0x58] sm:$0xf0] }
  0x41   : > { %910 = vmatpush.bf16.msra.mxu2 %v4078_v14  ;;  %v3122_v24 = vld [vmem:[%s4001_s6 + $0x68] sm:$0xf]  ;;  %v3403_v25 = vld [vmem:[%s4001_s6 + $0x70] sm:$0xf0]  ;;  %v1678_v28 = vld [vmem:[%s4136_s10 + $0x40] sm:$0xff] }
  0x42   : > { %1736 = vrot.lane.b32.xlu0 %v1671_v49, %s3897_s29  ;;  %v3123_v27 = vor.u32 %v3403_v25, %v3122_v24  ;;  %v1677_v29 = vld [vmem:[%s4136_s10 + $0x38] sm:$0xff]  ;;  %v3128_v36 = vld [vmem:[%s4001_s6 + $0x84] sm:$0xf0]  ;;  %v3134_v37 = vld [vmem:[%s4001_s6 + $0x80] sm:$0xf] }
  0x43   : > { %733 = vmatpush.bf16.msra.mxu0 %v3439_v15  ;;  %3467 = vmatpush.bf16.msra.mxu3 %v3439_v15  ;;  %v1675_v15 = vld [vmem:[%s4136_s10 + $0x28] sm:$0xff]  ;;  %v1681_v30 = vld [vmem:[%s4136_s10 + $0x58] sm:$0xff]  ;;  %v1684_v43 = vld [vmem:[%s4136_s10 + $0x70] sm:$0xff] }
  0x44   : > { %822 = vmatpush.bf16.msra.mxu1 %v4089_v16  ;;  %v3126_v31 = vld [vmem:[%s4001_s6 + $0x78] sm:$0xf]  ;;  %v3406_v38 = vld [vmem:[%s4001_s6 + $0x88] sm:$0xf0]  ;;  %v1680_v44 = vld [vmem:[%s4136_s10 + $0x50] sm:$0xff] }
  0x45   : > { %911 = vmatpush.bf16.msra.mxu2 %v4094_v17  ;;  %1740 = vrot.lane.b32.xlu1 %v1673_v63, %s3897_s29  ;;  %v3135_v42 = vor.u32 %v3406_v38, %v3134_v37  ;;  %v3408_v49 = vld [vmem:[%s4001_s6 + $0x98] sm:$0xf0]  ;;  %v3407_v50 = vld [vmem:[%s4001_s6 + $0x94] sm:$0xf]  ;;  %v3140_v52 = vld [vmem:[%s4001_s6 + $0x9c] sm:$0xf0] }
  0x46   : > { %v1685_v51 = vld [vmem:[%s4136_s10 + $0x78] sm:$0xff]  ;;  %v3431_v53 = vld [vmem:[%s4001_s6 + $0x154] sm:$0xf]  ;;  %v3236_v54 = vld [vmem:[%s4001_s6 + $0x15c] sm:$0xf0] }
  0x47   : > { %734 = vmatpush.bf16.msra.mxu0 %v3438_v18  ;;  %3468 = vmatpush.bf16.msra.mxu3 %v3438_v18  ;;  %v3401_v18 = vld [vmem:[%s4001_s6 + $0x64] sm:$0xf]  ;;  %v3146_v55 = vld [vmem:[%s4001_s6 + $0x98] sm:$0xf]  ;;  %v3239_v58 = vor.u32 %v3431_v53, %v3236_v54  ;;  %v1688_v63 = vld [vmem:[%s4136_s10 + $0x90] sm:$0xff] }
  0x48   : > { %823 = vmatpush.bf16.msra.mxu1 %v3446_v19  ;;  %v3409_v56 = vld [vmem:[%s4001_s6 + $0xa0] sm:$0xf0]  ;;  %v3162_v24 = vld [vmem:[%s4001_s6 + $0xc0] sm:$0xf]  ;;  %v3414_v25 = vld [vmem:[%s4001_s6 + $0xc8] sm:$0xf0] }
  0x49   : > { %912 = vmatpush.bf16.msra.mxu2 %v4107_v20  ;;  %v1698_v37 = vld [vmem:[%s4136_s10 + $0xe0] sm:$0xff]  ;;  %v1700_v38 = vld [vmem:[%s4136_s10 + $0xf0] sm:$0xff]  ;;  %v1701_v54 = vld [vmem:[%s4136_s10 + $0xf8] sm:$0xff] }
  0x4b   : > { %735 = vmatpush.bf16.msra.mxu0 %v3437_v21  ;;  %3469 = vmatpush.bf16.msra.mxu3 %v3437_v21  ;;  %v3212_v21 = vld [vmem:[%s4001_s6 + $0x12c] sm:$0xf0] }
  0x4c   : > { %824 = vmatpush.bf16.msra.mxu1 %v4115_v22 }
  0x4d   : > { %913 = vmatpush.bf16.msra.mxu2 %v4120_v23  ;;  %1748 = vrot.lane.b32.xlu1 %v1677_v29, %s3897_s29  ;;  %v1697_v29 = vld [vmem:[%s4136_s10 + $0xd8] sm:$0xff] }
  0x4e   : > { %736 = vmatmul.bf16.vlgmr.msra.gmra.mxu0 %v3067_v32  ;;  %796 = vmatmul.bf16.vlgmr.msra.gmra.mxu3 %v3211_v33  ;;  %v3405_v32 = vld [vmem:[%s4001_s6 + $0x80] sm:$0xf0]  ;;  %v3404_v33 = vld [vmem:[%s4001_s6 + $0x7c] sm:$0xf] }
  0x4f   : > { %3470 = vmatpush.bf16.msrb.mxu3 %v4013_v1  ;;  %825 = vmatmul.bf16.vlgmr.msra.gmra.mxu1 %v3071_v34  ;;  %v3399_v1 = vld [vmem:[%s4001_s6 + $0x50] sm:$0xf0]  ;;  %v3428_v34 = vld [vmem:[%s4001_s6 + $0x13c] sm:$0xf]  ;;  %v3127_v39 = vor.u32 %v3405_v32, %v3126_v31  ;;  %v3131_v41 = vor.u32 %v3404_v33, %v3128_v36 }
  0x50   : > { %914 = vmatmul.bf16.vlgmr.msra.gmra.mxu2 %v3075_v35  ;;  %v3224_v35 = vld [vmem:[%s4001_s6 + $0x144] sm:$0xf0] }
  0x51   : > { %v3227_v40 = vor.u32 %v3428_v34, %v3224_v35 }
  0x53   : > { %3471 = vmatpush.bf16.msrb.mxu3 %v4028_v4  ;;  %v3398_v4 = vld [vmem:[%s4001_s6 + $0x4c] sm:$0xf] }
  0x55   : > { %1754 = vrot.lane.b32.xlu1 %v1680_v44, %s3897_s29  ;;  %v3182_v44 = vld [vmem:[%s4001_s6 + $0xe0] sm:$0xf] }
  0x57   : > { %3472 = vmatpush.bf16.msrb.mxu3 %v4043_v7  ;;  %v3110_v7 = vld [vmem:[%s4001_s6 + $0x50] sm:$0xf] }
  0x5b   : > { %3473 = vmatpush.bf16.msrb.mxu3 %v4058_v10  ;;  %v3103_v10 = vor.u32 %v3399_v1, %v3102_v0  ;;  %v3150_v0 = vld [vmem:[%s4001_s6 + $0xa8] sm:$0xf]  ;;  %v3411_v1 = vld [vmem:[%s4001_s6 + $0xb0] sm:$0xf0] }
  0x5e   : > { %741 = vmatmul.bf16.gmra.mxu0 %v3079_v45  ;;  %801 = vmatmul.bf16.gmra.mxu3 %v3223_v46  ;;  %v1682_v45 = vld [vmem:[%s4136_s10 + $0x60] sm:$0xff]  ;;  %v3138_v46 = vld [vmem:[%s4001_s6 + $0x90] sm:$0xf] }
  0x5f   : > { %3474 = vmatpush.bf16.msrb.mxu3 %v4073_v13  ;;  %830 = vmatmul.bf16.gmra.mxu1 %v3083_v47  ;;  %v1674_v13 = vld [vmem:[%s4136_s10 + $0x20] sm:$0xff]  ;;  %v1687_v47 = vld [vmem:[%s4136_s10 + $0x88] sm:$0xff]  ;;  %v3139_v57 = vor.u32 %v3408_v49, %v3138_v46 }
  0x60   : > { %919 = vmatmul.bf16.gmra.mxu2 %v3087_v48  ;;  %1742 = vrot.lane.b32.xlu2 %v1674_v13, %s3897_s29  ;;  %v1683_v48 = vld [vmem:[%s4136_s10 + $0x68] sm:$0xff] }
  0x61   : > { %1760 = vrot.lane.b32.xlu1 %v1683_v48, %s3897_s29  ;;  %v3430_v46 = vld [vmem:[%s4001_s6 + $0x148] sm:$0xf0]  ;;  %v3417_v48 = vld [vmem:[%s4001_s6 + $0xe0] sm:$0xf0] }
  0x62   : > { %v3418_v49 = vld [vmem:[%s4001_s6 + $0xe8] sm:$0xf0] }
  0x63   : > { %3475 = vmatpush.bf16.msrb.mxu3 %v4089_v16  ;;  %v3402_v16 = vld [vmem:[%s4001_s6 + $0x68] sm:$0xf0] }
  0x67   : > { %3476 = vmatpush.bf16.msrb.mxu3 %v3446_v19  ;;  %v3425_v19 = vld [vmem:[%s4001_s6 + $0x124] sm:$0xf] }
  0x68   : > { %1744 = vrot.lane.b32.xlu2 %v1675_v15, %s3897_s29 }
  0x6b   : > { %3477 = vmatpush.bf16.msrb.mxu3 %v4115_v22  ;;  %v3116_v22 = vld [vmem:[%s4001_s6 + $0x6c] sm:$0xf0] }
  0x6c   : > { %v3119_v26 = vor.u32 %v3401_v18, %v3116_v22  ;;  %v1694_v18 = vld [vmem:[%s4136_s10 + $0xc0] sm:$0xff]  ;;  %v3427_v22 = vld [vmem:[%s4001_s6 + $0x130] sm:$0xf0] }
  0x6e   : > { %746 = vmatmul.bf16.gmra.mxu0 %v3091_v59  ;;  %806 = vmatmul.bf16.gmra.mxu3 %v3235_v60  ;;  %v3143_v59 = vor.u32 %v3407_v50, %v3140_v52  ;;  %v3147_v60 = vor.u32 %v3409_v56, %v3146_v55  ;;  %v3416_v50 = vld [vmem:[%s4001_s6 + $0xdc] sm:$0xf] }
  0x6f   : > { %3478 = vmatpush.bf16.msra.mxu3 %v4018_v2  ;;  %835 = vmatmul.bf16.gmra.mxu1 %v3095_v61  ;;  %v3435_v2 = vld [vmem:[%s4001_s6 + $0x170] sm:$0xf0]  ;;  %v1690_v61 = vld [vmem:[%s4136_s10 + $0xa0] sm:$0xff] }
  0x70   : > { %924 = vmatmul.bf16.gmra.mxu2 %v3099_v62  ;;  %v3247_v12 = vor.u32 %v3435_v2, %v3246_v3  ;;  %1750 = vrot.lane.b32.xlu2 %v1678_v28, %s3897_s29  ;;  %v1686_v62 = vld [vmem:[%s4136_s10 + $0x80] sm:$0xff]  ;;  %v3410_v3 = vld [vmem:[%s4001_s6 + $0xac] sm:$0xf] }
  0x71   : > { %1766 = vrot.lane.b32.xlu1 %v1686_v62, %s3897_s29  ;;  %v3434_v2 = vld [vmem:[%s4001_s6 + $0x16c] sm:$0xf] }
  0x72   : > { %v1695_v28 = vld [vmem:[%s4136_s10 + $0xc8] sm:$0xff] }
  0x73   : > { %3479 = vmatpush.bf16.msra.mxu3 %v4033_v5  ;;  %v3107_v5 = vor.u32 %v3398_v4, %v3104_v6  ;;  %v3248_v4 = vld [vmem:[%s4001_s6 + $0x174] sm:$0xf0] }
  0x74   : > { %v3152_v6 = vld [vmem:[%s4001_s6 + $0xb4] sm:$0xf0]  ;;  %v3251_v13 = vor.u32 %v3434_v2, %v3248_v4 }
  0x77   : > { %3480 = vmatpush.bf16.msra.mxu3 %v4048_v8  ;;  %v3111_v8 = vor.u32 %v3400_v9, %v3110_v7  ;;  %v3158_v7 = vld [vmem:[%s4001_s6 + $0xb0] sm:$0xf]  ;;  %v3412_v9 = vld [vmem:[%s4001_s6 + $0xb8] sm:$0xf0] }
  0x78   : > { %1756 = vrot.lane.b32.xlu2 %v1681_v30, %s3897_s29  ;;  %v3159_v15 = vor.u32 %v3412_v9, %v3158_v7  ;;  %v3163_v30 = vor.u32 %v3414_v25, %v3162_v24  ;;  %v3419_v24 = vld [vmem:[%s4001_s6 + $0xf4] sm:$0xf]  ;;  %v3188_v25 = vld [vmem:[%s4001_s6 + $0xfc] sm:$0xf0] }
  0x7b   : > { %3481 = vmatpush.bf16.msra.mxu3 %v4063_v11  ;;  %v1676_v11 = vld [vmem:[%s4136_s10 + $0x30] sm:$0xff] }
  0x7c   : > { %1746 = vrot.lane.b32.xlu0 %v1676_v11, %s3897_s29  ;;  %v3155_v11 = vor.u32 %v3410_v3, %v3152_v6 }
  0x7e   : > { %751 = vmatmul.bf16.gmra.mxu0 %v3103_v10  ;;  %811 = vmatmul.bf16.gmra.mxu3 %v3247_v12  ;;  %v1693_v10 = vld [vmem:[%s4136_s10 + $0xb8] sm:$0xff] }
  0x7f   : > { %3482 = vmatpush.bf16.msra.mxu3 %v4078_v14  ;;  %840 = vmatmul.bf16.gmra.mxu1 %v3107_v5  ;;  %v3114_v14 = vld [vmem:[%s4001_s6 + $0x60] sm:$0xf]  ;;  %v1689_v12 = vld [vmem:[%s4136_s10 + $0x98] sm:$0xff]  ;;  %v1691_v5 = vld [vmem:[%s4136_s10 + $0xa8] sm:$0xff] }
  0x80   : > { %929 = vmatmul.bf16.gmra.mxu2 %v3111_v8  ;;  %1762 = vrot.lane.b32.xlu2 %v1684_v43, %s3897_s29  ;;  %v3151_v8 = vor.u32 %v3411_v1, %v3150_v0 }
  0x81   : > { %1772 = vrot.lane.b32.xlu1 %v1689_v12, %s3897_s29 }
  0x83   : > { %3483 = vmatpush.bf16.msra.mxu3 %v4094_v17  ;;  %v3115_v17 = vor.u32 %v3402_v16, %v3114_v14  ;;  %v1696_v14 = vld [vmem:[%s4136_s10 + $0xd0] sm:$0xff] }
  0x84   : > { %v1692_v16 = vld [vmem:[%s4136_s10 + $0xb0] sm:$0xff] }
  0x87   : > { %3484 = vmatpush.bf16.msra.mxu3 %v4107_v20  ;;  %v3215_v20 = vor.u32 %v3425_v19, %v3212_v21  ;;  %v3170_v19 = vld [vmem:[%s4001_s6 + $0xc8] sm:$0xf] }
  0x88   : > { %1768 = vrot.lane.b32.xlu2 %v1687_v47, %s3897_s29  ;;  %v3218_v21 = vld [vmem:[%s4001_s6 + $0x128] sm:$0xf]  ;;  %v3174_v47 = vld [vmem:[%s4001_s6 + $0xd8] sm:$0xf] }
  0x89   : > { %1778 = vrot.lane.b32.xlu1 %v1692_v16, %s3897_s29  ;;  %v3433_v16 = vld [vmem:[%s4001_s6 + $0x160] sm:$0xf0] }
  0x8b   : > { %3485 = vmatpush.bf16.msra.mxu3 %v4120_v23  ;;  %v1679_v23 = vld [vmem:[%s4136_s10 + $0x48] sm:$0xff] }
  0x8c   : > { %1752 = vrot.lane.b32.xlu0 %v1679_v23, %s3897_s29  ;;  %v3219_v23 = vor.u32 %v3427_v22, %v3218_v21  ;;  %v3420_v21 = vld [vmem:[%s4001_s6 + $0xf8] sm:$0xf0] }
  0x8e   : > { %756 = vmatmul.bf16.gmra.mxu0 %v3115_v17  ;;  %885 = vmatmul.bf16.vlgmr.msrb.gmra.mxu3 %v3215_v20  ;;  %v3415_v17 = vld [vmem:[%s4001_s6 + $0xd0] sm:$0xf0]  ;;  %v3413_v20 = vld [vmem:[%s4001_s6 + $0xc4] sm:$0xf] }
  0x8f   : > { %845 = vmatmul.bf16.gmra.mxu1 %v3119_v26  ;;  %v3164_v26 = vld [vmem:[%s4001_s6 + $0xcc] sm:$0xf0]  ;;  %v3171_v32 = vor.u32 %v3415_v17, %v3170_v19 }
  0x90   : > { %934 = vmatmul.bf16.gmra.mxu2 %v3123_v27  ;;  %1774 = vrot.lane.b32.xlu2 %v1690_v61, %s3897_s29  ;;  %v1699_v27 = vld [vmem:[%s4136_s10 + $0xe8] sm:$0xff]  ;;  %v3167_v33 = vor.u32 %v3413_v20, %v3164_v26  ;;  %v3186_v19 = vld [vmem:[%s4001_s6 + $0xf0] sm:$0xf] }
  0x91   : > { %1784 = vrot.lane.b32.xlu1 %v1695_v28, %s3897_s29 }
  0x94   : > { %1758 = vrot.lane.b32.xlu0 %v1682_v45, %s3897_s29  ;;  %v3230_v45 = vld [vmem:[%s4001_s6 + $0x140] sm:$0xf] }
  0x95   : > { %v3231_v56 = vor.u32 %v3430_v46, %v3230_v45 }
  0x98   : > { %1780 = vrot.lane.b32.xlu2 %v1693_v10, %s3897_s29 }
  0x99   : > { %1790 = vrot.lane.b32.xlu1 %v1698_v37, %s3897_s29 }
  0x9c   : > { %1764 = vrot.lane.b32.xlu0 %v1685_v51, %s3897_s29  ;;  %v3176_v51 = vld [vmem:[%s4001_s6 + $0xe4] sm:$0xf0] }
  0x9d   : > { %v3179_v61 = vor.u32 %v3416_v50, %v3176_v51 }
  0x9e   : > { %761 = vmatmul.bf16.gmra.mxu0 %v3127_v39  ;;  %890 = vmatmul.bf16.gmra.mxu3 %v3227_v40 }
  0x9f   : > { %850 = vmatmul.bf16.gmra.mxu1 %v3131_v41 }
  0xa0   : > { %939 = vmatmul.bf16.gmra.mxu2 %v3135_v42  ;;  %1786 = vrot.lane.b32.xlu2 %v1696_v14, %s3897_s29  ;;  %v3242_v14 = vld [vmem:[%s4001_s6 + $0x158] sm:$0xf] }
  0xa1   : > { %1796 = vrot.lane.b32.xlu1 %v1701_v54, %s3897_s29 }
  0xa4   : > { %1770 = vrot.lane.b32.xlu0 %v1688_v63, %s3897_s29 }
  0xa8   : > { %1792 = vrot.lane.b32.xlu2 %v1699_v27, %s3897_s29  ;;  %v3243_v27 = vor.u32 %v3433_v16, %v3242_v14 }
  0xac   : > { %1776 = vrot.lane.b32.xlu0 %v1691_v5, %s3897_s29  ;;  %v3194_v5 = vld [vmem:[%s4001_s6 + $0xf8] sm:$0xf] }
  0xae   : > { %766 = vmatmul.bf16.gmra.mxu0 %v3139_v57  ;;  %895 = vmatmul.bf16.gmra.mxu3 %v3239_v58  ;;  %v3175_v57 = vor.u32 %v3417_v48, %v3174_v47 }
  0xaf   : > { %855 = vmatmul.bf16.gmra.mxu1 %v3143_v59 }
  0xb0   : > { %944 = vmatmul.bf16.gmra.mxu2 %v3147_v60  ;;  %v3183_v60 = vor.u32 %v3418_v49, %v3182_v44 }
  0xb4   : > { %1782 = vrot.lane.b32.xlu0 %v1694_v18, %s3897_s29 }
  0xbc   : > { %1788 = vrot.lane.b32.xlu0 %v1697_v29, %s3897_s29 }
  0xbe   : > { %771 = vmatmul.bf16.gmra.mxu0 %v3151_v8  ;;  %900 = vmatmul.bf16.gmra.mxu3 %v3251_v13  ;;  %v3421_v8 = vld [vmem:[%s4001_s6 + $0x100] sm:$0xf0]  ;;  %v995_v13 = vlaneseq }
  0xbf   : > { %860 = vmatmul.bf16.gmra.mxu1 %v3155_v11  ;;  %v3195_v22 = vor.u32 %v3421_v8, %v3194_v5 }
  0xc0   : > { %949 = vmatmul.bf16.gmra.mxu2 %v3159_v15  ;;  %v4314_v28 = vand.u32 127, %v995_v13  ;;  %v3422_v13 = vld [vmem:[%s4001_s6 + $0x10c] sm:$0xf] }
  0xc2   : > { %vm997_vm2 = vcmp.lt.s32.totalorder %v4314_v28, 96 }
  0xc4   : > { %1794 = vrot.lane.b32.xlu0 %v1700_v38, %s3897_s29 }
  0xcb   : > { %v737_v31 = vpop.f32.mrf.mxu0 }
  0xcc   : > { %v826_v34 = vpop.f32.mrf.mxu1 }
  0xcd   : > { %v827_v35 = vadd.f32 %v826_v34, %v737_v31  ;;  %v3187_v31 = vor.u32 %v3420_v21, %v3186_v19 }
  0xce   : > { %974 = vmatmul.bf16.vlgmr.msra.gmra.mxu3 %v3219_v23  ;;  %776 = vmatmul.bf16.gmra.mxu0 %v3163_v30 }
  0xcf   : > { %865 = vmatmul.bf16.gmra.mxu1 %v3167_v33 }
  0xd0   : > { %954 = vmatmul.bf16.gmra.mxu2 %v3171_v32 }
  0xd1   : > { %v4275_v36 = vpop.f32.mrf.mxu3 }
  0xd3   : > { %v915_v39 = vpop.f32.mrf.mxu2  ;;  %v739_v41 = vpop.f32.mrf.mxu0 }
  0xd4   : > { %v916_v40 = vadd.f32 %v915_v39, %v827_v35  ;;  %v828_v42 = vpop.f32.mrf.mxu1  ;;  %v3191_v35 = vor.u32 %v3419_v24, %v3188_v25  ;;  %v4359_v25 = vpop.permute.xlu2 %1742 }
  0xd5   : > { %v829_v52 = vadd.f32 %v828_v42, %v739_v41  ;;  %5988 = vst [vmem:[#allocation8_spill] sm:$0xff] %v4359_v25 }
  0xd6   : > { %v3352_v43 = vmul.f32 -1.442695, %v916_v40 }
  0xd8   : > { %3541 = vpow2.f32 %v3352_v43 }
  0xd9   : > { %v4289_v53 = vpop.f32.mrf.mxu3 }
  0xdb   : > { %v917_v55 = vpop.f32.mrf.mxu2  ;;  %v742_v59 = vpop.f32.mrf.mxu0 }
  0xdc   : > { %v4293_v58 = vadd.f32 %v917_v55, %v829_v52  ;;  %v831_v62 = vpop.f32.mrf.mxu1 }
  0xdd   : > { %v832_v3 = vadd.f32 %v831_v62, %v742_v59 }
  0xde   : > { %v3542_v63 = vpop.eup %3541  ;;  %v3353_v0 = vmul.f32 -1.442695, %v4293_v58  ;;  %979 = vmatmul.bf16.gmra.mxu3 %v3231_v56  ;;  %781 = vmatmul.bf16.gmra.mxu0 %v3175_v57 }
  0xdf   : > { %v1094_v1 = vadd.f32 1.0, %v3542_v63  ;;  %870 = vmatmul.bf16.gmra.mxu1 %v3179_v61  ;;  %v3206_v61 = vld [vmem:[%s4001_s6 + $0x110] sm:$0xf] }
  0xe0   : > { %3543 = vpow2.f32 %v3353_v0  ;;  %959 = vmatmul.bf16.gmra.mxu2 %v3183_v60 }
  0xe1   : > { %3545 = vrcp.f32 %v1094_v1  ;;  %v4296_v2 = vpop.f32.mrf.mxu3  ;;  %v1135_v23 = vand.u32 2147483647, %v1094_v1  ;;  %v1137_v30 = vand.u32 2147483648, %v1094_v1  ;;  %vm1131_vm1 = vweird.f32 %v1094_v1 }
  0xe3   : > { %v920_v4 = vpop.f32.mrf.mxu2  ;;  %v744_v7 = vpop.f32.mrf.mxu0  ;;  %vm1136_vm4 = vcmp.eq.f32.partialorder %v1135_v23, 8.507059e+37 }
  0xe4   : > { %v4298_v6 = vadd.f32 %v920_v4, %v832_v3  ;;  %v833_v9 = vpop.f32.mrf.mxu1  ;;  %v3436_v3 = vld [vmem:[%s4001_s6 + $0x178] sm:$0xf0] }
  0xe5   : > { %v834_v20 = vadd.f32 %v833_v9, %v744_v7 }
  0xe6   : > { %v3544_v10 = vpop.eup %3543  ;;  %v3354_v12 = vmul.f32 -1.442695, %v4298_v6 }
  0xe7   : > { %v3546_v11 = vpop.eup %3545  ;;  %v4303_v15 = vadd.f32 1.0, %v3544_v10  ;;  %v3198_v10 = vld [vmem:[%s4001_s6 + $0x108] sm:$0xf] }
  0xe8   : > { %v1127_v18 = vmul.f32 %v3546_v11, %v1094_v1  ;;  %3547 = vpow2.f32 %v3354_v12  ;;  %vm1132_vm0 = vweird.f32 %v3546_v11  ;;  %v3254_v1 = vld [vmem:[%s4001_s6 + $0x170] sm:$0xf]  ;;  %v3423_v12 = vld [vmem:[%s4001_s6 + $0x110] sm:$0xf0] }
  0xe9   : > { %3549 = vrcp.f32 %v4303_v15  ;;  %v4312_v26 = vpop.f32.mrf.mxu3  ;;  %vm1133_vm3 = vmor %vm1131_vm1, %vm1132_vm0  ;;  %v1152_v54 = vand.u32 2147483648, %v4303_v15  ;;  %v1150_v59 = vand.u32 2147483647, %v4303_v15  ;;  %vm1146_vm6 = vweird.f32 %v4303_v15 }
  0xea   : > { %v1128_v17 = vsub.f32 1.0, %v1127_v18  ;;  %3551 = vtanh.f32 %v916_v40  ;;  %v1138_v40 = vor.u32 1.1754944e-38, %v1137_v30 }
  0xeb   : > { %v922_v29 = vpop.f32.mrf.mxu2  ;;  %v747_v33 = vpop.f32.mrf.mxu0  ;;  %v1153_v9 = vor.u32 1.1754944e-38, %v1152_v54  ;;  %vm1151_vm8 = vcmp.eq.f32.partialorder %v1150_v59, 8.507059e+37 }
  0xec   : > { %v4316_v32 = vadd.f32 %v922_v29, %v834_v20  ;;  %v1129_v34 = vmul.f32 %v3546_v11, %v1128_v17  ;;  %v836_v37 = vpop.f32.mrf.mxu1  ;;  %v3255_v17 = vor.u32 %v3436_v3, %v3254_v1 }
  0xed   : > { %v837_v45 = vadd.f32 %v836_v37, %v747_v33 }
  0xee   : > { %v3548_v38 = vpop.eup %3547  ;;  %v3355_v39 = vmul.f32 -1.442695, %v4316_v32  ;;  %v1130_v41 = vadd.f32 %v3546_v11, %v1129_v34  ;;  %984 = vmatmul.bf16.gmra.mxu3 %v3243_v27  ;;  %786 = vmatmul.bf16.gmra.mxu0 %v3187_v31  ;;  %v3199_v27 = vor.u32 %v3423_v12, %v3198_v10 }
  0xef   : > { %v3550_v42 = vpop.eup %3549  ;;  %v4319_v43 = vadd.f32 1.0, %v3548_v38  ;;  %875 = vmatmul.bf16.gmra.mxu1 %v3191_v35 }
  0xf0   : > { %v1142_v44 = vmul.f32 %v3550_v42, %v4303_v15  ;;  %3553 = vpow2.f32 %v3355_v39  ;;  %964 = vmatmul.bf16.gmra.mxu2 %v3195_v22  ;;  %v1134_v46 = vsel %vm1133_vm3, %v3546_v11, %v1130_v41  ;;  %v3552_v47 = vpop.eup %3551  ;;  %vm1147_vm5 = vweird.f32 %v3550_v42  ;;  %v3200_v11 = vld [vmem:[%s4001_s6 + $0x114] sm:$0xf0] }
  0xf1   : > { %3555 = vrcp.f32 %v4319_v43  ;;  %v1139_v48 = vsel %vm1136_vm4, %v1138_v40, %v1134_v46  ;;  %v4328_v51 = vpop.f32.mrf.mxu3  ;;  %vm1148_vm7 = vmor %vm1146_vm6, %vm1147_vm5  ;;  %v1167_v20 = vand.u32 2147483648, %v4319_v43  ;;  %v3203_v29 = vor.u32 %v3422_v13, %v3200_v11 }
  0xf2   : > { %v1143_v49 = vsub.f32 1.0, %v1142_v44  ;;  %v4326_v50 = vsel %vm997_vm2, %v1139_v48, %v3552_v47  ;;  %3557 = vtanh.f32 %v4293_v58  ;;  %v3424_v58 = vld [vmem:[%s4001_s6 + $0x118] sm:$0xf0]  ;;  %v1165_v34 = vand.u32 2147483647, %v4319_v43  ;;  %s3898_s6 = smov 96  }
  0xf3   : > { %v925_v52 = vpop.f32.mrf.mxu2  ;;  %1894 = vrot.lane.b32.xlu2 %v4326_v50, %s3897_s29  ;;  %v749_v56 = vpop.f32.mrf.mxu0  ;;  %v3207_v22 = vor.u32 %v3424_v58, %v3206_v61  ;;  %vm1161_vm10 = vweird.f32 %v4319_v43 }
  0xf4   : > { %v4334_v55 = vadd.f32 %v925_v52, %v837_v45  ;;  %v1144_v57 = vmul.f32 %v3550_v42, %v1143_v49  ;;  %v838_v60 = vpop.f32.mrf.mxu1  ;;  %vm1166_vm12 = vcmp.eq.f32.partialorder %v1165_v34, 8.507059e+37  ;;  %v4379_v52 = vpop.permute.xlu0 %1734 }
  0xf5   : > { %v839_v18 = vadd.f32 %v838_v60, %v749_v56  ;;  %v4386_v60 = vpop.permute.xlu2 %1744 }
  0xf6   : > { %v3554_v62 = vpop.eup %3553  ;;  %v3356_v63 = vmul.f32 -1.442695, %v4334_v55  ;;  %v1145_v0 = vadd.f32 %v3550_v42, %v1144_v57  ;;  %5989 = vst [vmem:[#allocation9_spill] sm:$0xff] %v4386_v60 }
  0xf7   : > { %v3556_v4 = vpop.eup %3555  ;;  %v4343_v7 = vadd.f32 1.0, %v3554_v62 }
  0xf8   : > { %v1157_v5 = vmul.f32 %v3556_v4, %v4319_v43  ;;  %3559 = vpow2.f32 %v3356_v63  ;;  %v1149_v8 = vsel %vm1148_vm7, %v3550_v42, %v1145_v0  ;;  %v3558_v14 = vpop.eup %3557  ;;  %vm1162_vm9 = vweird.f32 %v3556_v4 }
  0xf9   : > { %3561 = vrcp.f32 %v4343_v7  ;;  %v1154_v15 = vsel %vm1151_vm8, %v1153_v9, %v1149_v8  ;;  %v4355_v21 = vpop.f32.mrf.mxu3  ;;  %vm1163_vm11 = vmor %vm1161_vm10, %vm1162_vm9  ;;  %v1182_v59 = vand.u32 2147483648, %v4343_v7  ;;  %v1180_v61 = vand.u32 2147483647, %v4343_v7 }
  0xfa   : > { %v1158_v16 = vsub.f32 1.0, %v1157_v5  ;;  %v4353_v19 = vsel %vm997_vm2, %v1154_v15, %v3558_v14  ;;  %3563 = vtanh.f32 %v4298_v6  ;;  %v1168_v6 = vor.u32 1.1754944e-38, %v1167_v20 }
  0xfb   : > { %v927_v24 = vpop.f32.mrf.mxu2  ;;  %1896 = vrot.lane.b32.xlu0 %v4353_v19, %s3897_s29  ;;  %v752_v30 = vpop.f32.mrf.mxu0  ;;  %vm1176_vm14 = vweird.f32 %v4343_v7  ;;  %v1183_v9 = vor.u32 1.1754944e-38, %v1182_v59  ;;  %vm1181_vm0 = vcmp.eq.f32.partialorder %v1180_v61, 8.507059e+37 }
  0xfc   : > { %v4363_v23 = vadd.f32 %v927_v24, %v839_v18  ;;  %v1159_v31 = vmul.f32 %v3556_v4, %v1158_v16  ;;  %v841_v33 = vpop.f32.mrf.mxu1  ;;  %v4408_v24 = vpop.permute.xlu1 %1738 }
  0xfd   : > { %v842_v40 = vadd.f32 %v841_v33, %v752_v30  ;;  %v4412_v30 = vpop.permute.xlu0 %1736  ;;  %v4416_v34 = vpop.permute.xlu2 %1750 }
  0xfe   : > { %v3560_v35 = vpop.eup %3559  ;;  %v3357_v37 = vmul.f32 -1.442695, %v4363_v23  ;;  %v1160_v38 = vadd.f32 %v3556_v4, %v1159_v31  ;;  %989 = vmatmul.bf16.gmra.mxu3 %v3255_v17  ;;  %791 = vmatmul.bf16.gmra.mxu0 %v3199_v27  ;;  %5990 = vst [vmem:[#allocation10_spill] sm:$0xff] %v4416_v34 }
  0xff   : > { %v3562_v39 = vpop.eup %3561  ;;  %v4368_v41 = vadd.f32 1.0, %v3560_v35  ;;  %880 = vmatmul.bf16.gmra.mxu1 %v3203_v29 }
 0x100   : > { %v1172_v42 = vmul.f32 %v3562_v39, %v4343_v7  ;;  %3565 = vpow2.f32 %v3357_v37  ;;  %969 = vmatmul.bf16.gmra.mxu2 %v3207_v22  ;;  %v1164_v44 = vsel %vm1163_vm11, %v3556_v4, %v1160_v38  ;;  %v3564_v45 = vpop.eup %3563  ;;  %vm1177_vm13 = vweird.f32 %v3562_v39 }
 0x101   : > { %3567 = vrcp.f32 %v4368_v41  ;;  %v1169_v43 = vsel %vm1166_vm12, %v1168_v6, %v1164_v44  ;;  %v4372_v47 = vpop.f32.mrf.mxu3  ;;  %vm1178_vm15 = vmor %vm1176_vm14, %vm1177_vm13  ;;  %v1195_v7 = vand.u32 2147483647, %v4368_v41  ;;  %v1197_v11 = vand.u32 2147483648, %v4368_v41 }
 0x102   : > { %v1173_v46 = vsub.f32 1.0, %v1172_v42  ;;  %3569 = vtanh.f32 %v4316_v32  ;;  %v4377_v48 = vsel %vm997_vm2, %v1169_v43, %v3564_v45  ;;  %vm1191_vm3 = vweird.f32 %v4368_v41 }
 0x103   : > { %v930_v49 = vpop.f32.mrf.mxu2  ;;  %1898 = vrot.lane.b32.xlu1 %v4377_v48, %s3897_s29  ;;  %v754_v56 = vpop.f32.mrf.mxu0  ;;  %vm1196_vm5 = vcmp.eq.f32.partialorder %v1195_v7, 8.507059e+37  ;;  %v1198_v31 = vor.u32 1.1754944e-38, %v1197_v11 }
 0x104   : > { %v4381_v54 = vadd.f32 %v930_v49, %v842_v40  ;;  %v1174_v57 = vmul.f32 %v3562_v39, %v1173_v46  ;;  %v843_v32 = vpop.f32.mrf.mxu1 }
 0x105   : > { %v844_v5 = vadd.f32 %v843_v32, %v754_v56 }
 0x106   : > { %v3566_v58 = vpop.eup %3565  ;;  %v3358_v62 = vmul.f32 -1.442695, %v4381_v54  ;;  %v1175_v63 = vadd.f32 %v3562_v39, %v1174_v57 }
 0x107   : > { %v3568_v0 = vpop.eup %3567  ;;  %v4391_v1 = vadd.f32 1.0, %v3566_v58 }
 0x108   : > { %v1187_v3 = vmul.f32 %v3568_v0, %v4368_v41  ;;  %3571 = vpow2.f32 %v3358_v62  ;;  %v1179_v4 = vsel %vm1178_vm15, %v3562_v39, %v1175_v63  ;;  %v3570_v10 = vpop.eup %3569  ;;  %vm1192_vm1 = vweird.f32 %v3568_v0  ;;  %v4435_v62 = vpop.permute.xlu1 %1740 }
 0x109   : > { %3573 = vrcp.f32 %v4391_v1  ;;  %v1184_v8 = vsel %vm1181_vm0, %v1183_v9, %v1179_v4  ;;  %v4395_v13 = vpop.f32.mrf.mxu3  ;;  %vm1193_vm4 = vmor %vm1191_vm3, %vm1192_vm1  ;;  %v1212_v44 = vand.u32 2147483648, %v4391_v1  ;;  %v1210_v43 = vand.u32 2147483647, %v4391_v1 }
 0x10a   : > { %v1188_v12 = vsub.f32 1.0, %v1187_v3  ;;  %3575 = vtanh.f32 %v4334_v55  ;;  %v4402_v14 = vsel %vm997_vm2, %v1184_v8, %v3570_v10  ;;  %vm1206_vm7 = vweird.f32 %v4391_v1 }
 0x10b   : > { %v932_v15 = vpop.f32.mrf.mxu2  ;;  %1900 = vrot.lane.b32.xlu2 %v4402_v14, %s3897_s29  ;;  %v757_v22 = vpop.f32.mrf.mxu0  ;;  %v1213_v58 = vor.u32 1.1754944e-38, %v1212_v44  ;;  %vm1211_vm9 = vcmp.eq.f32.partialorder %v1210_v43, 8.507059e+37 }
 0x10c   : > { %v1189_v16 = vmul.f32 %v3568_v0, %v1188_v12  ;;  %v4404_v18 = vadd.f32 %v932_v15, %v844_v5  ;;  %v846_v55 = vpop.f32.mrf.mxu1 }
 0x10d   : > { %v847_v38 = vadd.f32 %v846_v55, %v757_v22 }
 0x10e   : > { %v3572_v17 = vpop.eup %3571  ;;  %v1190_v20 = vadd.f32 %v3568_v0, %v1189_v16  ;;  %v3359_v27 = vmul.f32 -1.442695, %v4404_v18 }
 0x10f   : > { %v3574_v29 = vpop.eup %3573  ;;  %v4414_v33 = vadd.f32 1.0, %v3572_v17 }
 0x110   : > { %v1202_v35 = vmul.f32 %v3574_v29, %v4391_v1  ;;  %v1194_v37 = vsel %vm1193_vm4, %v3568_v0, %v1190_v20  ;;  %3577 = vpow2.f32 %v3359_v27  ;;  %v3576_v39 = vpop.eup %3575  ;;  %vm1207_vm6 = vweird.f32 %v3574_v29  ;;  %v4439_v0 = vpop.permute.xlu0 %1746 }
 0x111   : > { %v1199_v6 = vsel %vm1196_vm5, %v1198_v31, %v1194_v37  ;;  %3579 = vrcp.f32 %v4414_v33  ;;  %v4424_v40 = vpop.f32.mrf.mxu3  ;;  %vm1208_vm8 = vmor %vm1206_vm7, %vm1207_vm6  ;;  %5991 = vst [vmem:[#allocation11_spill] sm:$0xff] %v4439_v0  ;;  %v4443_v1 = vpop.permute.xlu2 %1756  ;;  %v1225_v16 = vand.u32 2147483647, %v4414_v33  ;;  %v1227_v22 = vand.u32 2147483648, %v4414_v33 }
 0x112   : > { %v1203_v41 = vsub.f32 1.0, %v1202_v35  ;;  %v4422_v42 = vsel %vm997_vm2, %v1199_v6, %v3576_v39  ;;  %3581 = vtanh.f32 %v4363_v23  ;;  %5992 = vst [vmem:[#allocation12_spill] sm:$0xff] %v4443_v1  ;;  %vm1221_vm11 = vweird.f32 %v4414_v33 }
 0x113   : > { %v935_v45 = vpop.f32.mrf.mxu2  ;;  %1902 = vrot.lane.b32.xlu0 %v4422_v42, %s3897_s29  ;;  %v759_v56 = vpop.f32.mrf.mxu0  ;;  %vm1226_vm13 = vcmp.eq.f32.partialorder %v1225_v16, 8.507059e+37  ;;  %v1228_v37 = vor.u32 1.1754944e-38, %v1227_v22 }
 0x114   : > { %v1204_v46 = vmul.f32 %v3574_v29, %v1203_v41  ;;  %v4431_v49 = vadd.f32 %v935_v45, %v847_v38  ;;  %v848_v57 = vpop.f32.mrf.mxu1  ;;  %v4463_v38 = vpop.permute.xlu1 %1748 }
 0x115   : > { %v849_v8 = vadd.f32 %v848_v57, %v759_v56  ;;  %5993 = vst [vmem:[#allocation13_spill] sm:$0xff] %v4463_v38 }
 0x116   : > { %v3578_v59 = vpop.eup %3577  ;;  %v1205_v32 = vadd.f32 %v3574_v29, %v1204_v46  ;;  %v3360_v23 = vmul.f32 -1.442695, %v4431_v49 }
 0x117   : > { %v3580_v61 = vpop.eup %3579  ;;  %v4437_v63 = vadd.f32 1.0, %v3578_v59 }
 0x118   : > { %v1217_v3 = vmul.f32 %v3580_v61, %v4414_v33  ;;  %v1209_v4 = vsel %vm1208_vm8, %v3574_v29, %v1205_v32  ;;  %3583 = vpow2.f32 %v3360_v23  ;;  %v3582_v9 = vpop.eup %3581  ;;  %vm1222_vm10 = vweird.f32 %v3580_v61  ;;  %v4465_v39 = vpop.permute.xlu0 %1752 }
 0x119   : > { %v1214_v10 = vsel %vm1211_vm9, %v1213_v58, %v1209_v4  ;;  %3585 = vrcp.f32 %v4437_v63  ;;  %v888_v7 = vpop.f32.mrf.mxu3  ;;  %vm1223_vm12 = vmor %vm1221_vm11, %vm1222_vm10  ;;  %5994 = vst [vmem:[#allocation14_spill] sm:$0xff] %v4465_v39  ;;  %v4474_v57 = vpop.permute.xlu2 %1762  ;;  %v1242_v23 = vand.u32 2147483648, %v4437_v63  ;;  %v1240_v4 = vand.u32 2147483647, %v4437_v63 }
 0x11a   : > { %v1218_v12 = vsub.f32 1.0, %v1217_v3  ;;  %v4447_v5 = vsel %vm997_vm2, %v1214_v10, %v3582_v9  ;;  %3587 = vtanh.f32 %v4381_v54  ;;  %v4451_v11 = vadd.f32 %v888_v7, %v4289_v53  ;;  %5995 = vst [vmem:[#allocation15_spill] sm:$0xff] %v4474_v57 }
 0x11b   : > { %v937_v15 = vpop.f32.mrf.mxu2  ;;  %1904 = vrot.lane.b32.xlu1 %v4447_v5, %s3897_s29  ;;  %v762_v17 = vpop.f32.mrf.mxu0  ;;  %vm1236_vm15 = vweird.f32 %v4437_v63  ;;  %v1243_v7 = vor.u32 1.1754944e-38, %v1242_v23  ;;  %vm1241_vm1 = vcmp.eq.f32.partialorder %v1240_v4, 8.507059e+37 }
 0x11c   : > { %v4457_v55 = vadd.f32 %v937_v15, %v849_v8  ;;  %v1219_v20 = vmul.f32 %v3580_v61, %v1218_v12  ;;  %v851_v27 = vpop.f32.mrf.mxu1  ;;  %v4489_v15 = vpop.permute.xlu1 %1754 }
 0x11d   : > { %v852_v41 = vadd.f32 %v851_v27, %v762_v17  ;;  %5996 = vst [vmem:[#allocation16_spill] sm:$0xff] %v4489_v15 }
 0x11e   : > { %v3584_v29 = vpop.eup %3583  ;;  %v3361_v54 = vmul.f32 -1.442695, %v4457_v55  ;;  %v1220_v31 = vadd.f32 %v3580_v61, %v1219_v20 }
 0x11f   : > { %v3586_v53 = vpop.eup %3585  ;;  %v4461_v35 = vadd.f32 1.0, %v3584_v29 }
 0x120   : > { %v1232_v6 = vmul.f32 %v3586_v53, %v4437_v63  ;;  %3589 = vpow2.f32 %v3361_v54  ;;  %v1224_v44 = vsel %vm1223_vm12, %v3580_v61, %v1220_v31  ;;  %v3588_v45 = vpop.eup %3587  ;;  %vm1237_vm14 = vweird.f32 %v3586_v53  ;;  %v4493_v27 = vpop.permute.xlu0 %1758 }
 0x121   : > { %3591 = vrcp.f32 %v4461_v35  ;;  %v1229_v46 = vsel %vm1226_vm13, %v1228_v37, %v1224_v44  ;;  %v891_v56 = vpop.f32.mrf.mxu3  ;;  %vm1238_vm0 = vmor %vm1236_vm15, %vm1237_vm14  ;;  %5997 = vst [vmem:[#allocation17_spill] sm:$0xff] %v4493_v27  ;;  %v1255_v37 = vand.u32 2147483647, %v4461_v35  ;;  %vm1251_vm4 = vweird.f32 %v4461_v35 }
 0x122   : > { %v1233_v33 = vsub.f32 1.0, %v1232_v6  ;;  %v4471_v43 = vsel %vm997_vm2, %v1229_v46, %v3588_v45  ;;  %3593 = vtanh.f32 %v4404_v18  ;;  %v4477_v59 = vadd.f32 %v891_v56, %v4296_v2  ;;  %v4508_v46 = vpop.permute.xlu2 %1768 }
 0x123   : > { %v940_v32 = vpop.f32.mrf.mxu2  ;;  %1906 = vrot.lane.b32.xlu2 %v4471_v43, %s3897_s29  ;;  %v764_v58 = vpop.f32.mrf.mxu0  ;;  %v1257_v6 = vand.u32 2147483648, %v4461_v35  ;;  %5998 = vst [vmem:[#allocation18_spill] sm:$0xff] %v4508_v46  ;;  %vm1256_vm6 = vcmp.eq.f32.partialorder %v1255_v37, 8.507059e+37 }
 0x124   : > { %v4482_v61 = vadd.f32 %v940_v32, %v852_v41  ;;  %v1234_v3 = vmul.f32 %v3586_v53, %v1233_v33  ;;  %v853_v9 = vpop.f32.mrf.mxu1 }
 0x125   : > { %v854_v29 = vadd.f32 %v853_v9, %v764_v58 }
 0x126   : > { %v3590_v18 = vpop.eup %3589  ;;  %v3362_v10 = vmul.f32 -1.442695, %v4482_v61  ;;  %v1235_v12 = vadd.f32 %v3586_v53, %v1234_v3  ;;  %v1258_v3 = vor.u32 1.1754944e-38, %v1257_v6 }
 0x127   : > { %v3592_v2 = vpop.eup %3591  ;;  %v4487_v8 = vadd.f32 1.0, %v3590_v18 }
 0x128   : > { %3595 = vpow2.f32 %v3362_v10  ;;  %v1239_v16 = vsel %vm1238_vm0, %v3586_v53, %v1235_v12  ;;  %v1247_v22 = vmul.f32 %v3592_v2, %v4461_v35  ;;  %v3594_v17 = vpop.eup %3593  ;;  %vm1252_vm3 = vweird.f32 %v3592_v2 }
 0x129   : > { %3597 = vrcp.f32 %v4487_v8  ;;  %v1244_v20 = vsel %vm1241_vm1, %v1243_v7, %v1239_v16  ;;  %v4499_v54 = vpop.f32.mrf.mxu3  ;;  %vm1253_vm5 = vmor %vm1251_vm4, %vm1252_vm3  ;;  %v4516_v7 = vpop.permute.xlu1 %1760  ;;  %vm1266_vm8 = vweird.f32 %v4487_v8 }
 0x12a   : > { %v4497_v63 = vsel %vm997_vm2, %v1244_v20, %v3594_v17  ;;  %v1248_v31 = vsub.f32 1.0, %v1247_v22  ;;  %3599 = vtanh.f32 %v4431_v49  ;;  %5999 = vst [vmem:[#allocation19_spill] sm:$0xff] %v4516_v7  ;;  %v1272_v17 = vand.u32 2147483648, %v4487_v8 }
 0x12b   : > { %v942_v53 = vpop.f32.mrf.mxu2  ;;  %1908 = vrot.lane.b32.xlu0 %v4497_v63, %s3897_s29  ;;  %v767_v44 = vpop.f32.mrf.mxu0 }
 0x12c   : > { %v4506_v41 = vadd.f32 %v942_v53, %v854_v29  ;;  %v1249_v45 = vmul.f32 %v3592_v2, %v1248_v31  ;;  %v856_v33 = vpop.f32.mrf.mxu1  ;;  %v4529_v29 = vpop.permute.xlu0 %1764  ;;  %v1270_v53 = vand.u32 2147483647, %v4487_v8 }
 0x12d   : > { %v857_v9 = vadd.f32 %v856_v33, %v767_v44  ;;  %6000 = vst [vmem:[#allocation20_spill] sm:$0xff] %v4529_v29 }
 0x12e   : > { %v3596_v56 = vpop.eup %3595  ;;  %v3363_v32 = vmul.f32 -1.442695, %v4506_v41  ;;  %v1250_v49 = vadd.f32 %v3592_v2, %v1249_v45  ;;  %vm1271_vm10 = vcmp.eq.f32.partialorder %v1270_v53, 8.507059e+37 }
 0x12f   : > { %v3598_v23 = vpop.eup %3597  ;;  %v4512_v58 = vadd.f32 1.0, %v3596_v56 }
 0x130   : > { %v1262_v4 = vmul.f32 %v3598_v23, %v4487_v8  ;;  %3601 = vpow2.f32 %v3363_v32  ;;  %v1254_v18 = vsel %vm1253_vm5, %v3592_v2, %v1250_v49  ;;  %v3600_v10 = vpop.eup %3599  ;;  %vm1267_vm7 = vweird.f32 %v3598_v23  ;;  %v4538_v32 = vpop.permute.xlu2 %1774 }
 0x131   : > { %3603 = vrcp.f32 %v4512_v58  ;;  %v1259_v12 = vsel %vm1256_vm6, %v1258_v3, %v1254_v18  ;;  %v896_v22 = vpop.f32.mrf.mxu3  ;;  %6001 = vst [vmem:[#allocation21_spill] sm:$0xff] %v4538_v32  ;;  %vm1268_vm9 = vmor %vm1266_vm8, %vm1267_vm7  ;;  %v1273_v49 = vor.u32 1.1754944e-38, %v1272_v17  ;;  %v1287_v17 = vand.u32 2147483648, %v4512_v58 }
 0x132   : > { %v1263_v16 = vsub.f32 1.0, %v1262_v4  ;;  %v4520_v35 = vsel %vm997_vm2, %v1259_v12, %v3600_v10  ;;  %3605 = vtanh.f32 %v4457_v55  ;;  %v4525_v20 = vadd.f32 %v896_v22, %v4328_v51 }
 0x133   : > { %v945_v2 = vpop.f32.mrf.mxu2  ;;  %1910 = vrot.lane.b32.xlu1 %v4520_v35, %s3897_s29  ;;  %v769_v6 = vpop.f32.mrf.mxu0  ;;  %v1285_v22 = vand.u32 2147483647, %v4512_v58  ;;  %vm1281_vm12 = vweird.f32 %v4512_v58 }
 0x134   : > { %v1264_v31 = vmul.f32 %v3598_v23, %v1263_v16  ;;  %v4532_v37 = vadd.f32 %v945_v2, %v857_v9  ;;  %v858_v44 = vpop.f32.mrf.mxu1 }
 0x135   : > { %v859_v12 = vadd.f32 %v858_v44, %v769_v6  ;;  %vm1286_vm14 = vcmp.eq.f32.partialorder %v1285_v22, 8.507059e+37 }
 0x136   : > { %v3602_v55 = vpop.eup %3601  ;;  %v1265_v45 = vadd.f32 %v3598_v23, %v1264_v31  ;;  %v3364_v51 = vmul.f32 -1.442695, %v4532_v37  ;;  %v4554_v31 = vpop.permute.xlu1 %1766 }
 0x137   : > { %v3604_v33 = vpop.eup %3603  ;;  %v4536_v56 = vadd.f32 1.0, %v3602_v55  ;;  %6002 = vst [vmem:[#allocation22_spill] sm:$0xff] %v4554_v31 }
 0x138   : > { %v1277_v3 = vmul.f32 %v3604_v33, %v4512_v58  ;;  %v1269_v4 = vsel %vm1268_vm9, %v3598_v23, %v1265_v45  ;;  %3607 = vpow2.f32 %v3364_v51  ;;  %v3606_v9 = vpop.eup %3605  ;;  %vm1282_vm11 = vweird.f32 %v3604_v33 }
 0x139   : > { %3609 = vrcp.f32 %v4536_v56  ;;  %v1274_v18 = vsel %vm1271_vm10, %v1273_v49, %v1269_v4  ;;  %v898_v16 = vpop.f32.mrf.mxu3  ;;  %vm1283_vm13 = vmor %vm1281_vm12, %vm1282_vm11  ;;  %v1288_v4 = vor.u32 1.1754944e-38, %v1287_v17  ;;  %vm1296_vm0 = vweird.f32 %v4536_v56 }
 0x13a   : > { %v1278_v10 = vsub.f32 1.0, %v1277_v3  ;;  %v4544_v8 = vsel %vm997_vm2, %v1274_v18, %v3606_v9  ;;  %3611 = vtanh.f32 %v4482_v61  ;;  %v4550_v23 = vadd.f32 %v898_v16, %v4355_v21  ;;  %v4558_v61 = vpop.permute.xlu0 %1770  ;;  %v4566_v16 = vpop.permute.xlu2 %1780 }
 0x13b   : > { %v947_v2 = vpop.f32.mrf.mxu2  ;;  %1912 = vrot.lane.b32.xlu2 %v4544_v8, %s3897_s29  ;;  %v772_v6 = vpop.f32.mrf.mxu0  ;;  %6003 = vst [vmem:[#allocation23_spill] sm:$0xff] %v4558_v61 }
 0x13c   : > { %v1279_v53 = vmul.f32 %v3604_v33, %v1278_v10  ;;  %v4556_v55 = vadd.f32 %v947_v2, %v859_v12  ;;  %v861_v44 = vpop.f32.mrf.mxu1  ;;  %6004 = vst [vmem:[#allocation24_spill] sm:$0xff] %v4566_v16 }
 0x13d   : > { %v862_v18 = vadd.f32 %v861_v44, %v772_v6 }
 0x13e   : > { %v3608_v45 = vpop.eup %3607  ;;  %v1280_v51 = vadd.f32 %v3604_v33, %v1279_v53  ;;  %v3365_v21 = vmul.f32 -1.442695, %v4556_v55 }
 0x13f   : > { %v3610_v49 = vpop.eup %3609  ;;  %v4562_v3 = vadd.f32 1.0, %v3608_v45 }
 0x140   : > { %v1284_v9 = vsel %vm1283_vm13, %v3604_v33, %v1280_v51  ;;  %3613 = vpow2.f32 %v3365_v21  ;;  %v1292_v10 = vmul.f32 %v3610_v49, %v4536_v56  ;;  %v3612_v12 = vpop.eup %3611  ;;  %vm1297_vm15 = vweird.f32 %v3610_v49 }
 0x141   : > { %3615 = vrcp.f32 %v4562_v3  ;;  %v1289_v2 = vsel %vm1286_vm14, %v1288_v4, %v1284_v9  ;;  %v901_v53 = vpop.f32.mrf.mxu3  ;;  %v1302_v51 = vand.u32 2147483648, %v4536_v56  ;;  %v1300_v4 = vand.u32 2147483647, %v4536_v56  ;;  %v4582_v9 = vpop.permute.xlu1 %1772  ;;  %vm1298_vm1 = vmor %vm1296_vm0, %vm1297_vm15 }
 0x142   : > { %v4570_v58 = vsel %vm997_vm2, %v1289_v2, %v3612_v12  ;;  %v1293_v45 = vsub.f32 1.0, %v1292_v10  ;;  %3617 = vtanh.f32 %v4506_v41  ;;  %v4574_v33 = vadd.f32 %v901_v53, %v4372_v47  ;;  %6005 = vst [vmem:[#allocation25_spill] sm:$0xff] %v4582_v9 }
 0x143   : > { %v950_v22 = vpop.f32.mrf.mxu2  ;;  %1914 = vrot.lane.b32.xlu0 %v4570_v58, %s3897_s29  ;;  %v774_v6 = vpop.f32.mrf.mxu0  ;;  %vm1301_vm3 = vcmp.eq.f32.partialorder %v1300_v4, 8.507059e+37  ;;  %v1317_v61 = vand.u32 2147483648, %v4562_v3  ;;  %vm1311_vm5 = vweird.f32 %v4562_v3 }
 0x144   : > { %v4578_v17 = vadd.f32 %v950_v22, %v862_v18  ;;  %v1294_v44 = vmul.f32 %v3610_v49, %v1293_v45  ;;  %v863_v21 = vpop.f32.mrf.mxu1  ;;  %v4588_v18 = vpop.permute.xlu0 %1776  ;;  %v1303_v22 = vor.u32 1.1754944e-38, %v1302_v51 }
 0x145   : > { %6006 = vst [vmem:[#allocation26_spill] sm:$0xff] %v4588_v18  ;;  %v4595_v18 = vpop.permute.xlu2 %1786 }
 0x146   : > { %v3614_v41 = vpop.eup %3613  ;;  %v3366_v47 = vmul.f32 -1.442695, %v4578_v17  ;;  %v1295_v10 = vadd.f32 %v3610_v49, %v1294_v44  ;;  %v864_v44 = vadd.f32 %v863_v21, %v774_v6  ;;  %6007 = vst [vmem:[#allocation27_spill] sm:$0xff] %v4595_v18 }
 0x147   : > { %v3616_v12 = vpop.eup %3615  ;;  %v4586_v2 = vadd.f32 1.0, %v3614_v41  ;;  %v1315_v41 = vand.u32 2147483647, %v4562_v3 }
 0x148   : > { %v1307_v53 = vmul.f32 %v3616_v12, %v4562_v3  ;;  %3619 = vpow2.f32 %v3366_v47  ;;  %v1299_v45 = vsel %vm1298_vm1, %v3610_v49, %v1295_v10  ;;  %v3618_v16 = vpop.eup %3617  ;;  %vm1312_vm4 = vweird.f32 %v3616_v12 }
 0x149   : > { %3621 = vrcp.f32 %v4586_v2  ;;  %v903_v56 = vpop.f32.mrf.mxu3  ;;  %v1304_v9 = vsel %vm1301_vm3, %v1303_v22, %v1299_v45  ;;  %vm1313_vm6 = vmor %vm1311_vm5, %vm1312_vm4  ;;  %vm1316_vm7 = vcmp.eq.f32.partialorder %v1315_v41, 8.507059e+37  ;;  %vm1326_vm9 = vweird.f32 %v4586_v2 }
 0x14a   : > { %v1308_v32 = vsub.f32 1.0, %v1307_v53  ;;  %3623 = vtanh.f32 %v4532_v37  ;;  %v4598_v47 = vadd.f32 %v903_v56, %v4395_v13  ;;  %v4602_v51 = vsel %vm997_vm2, %v1304_v9, %v3618_v16 }
 0x14b   : > { %v952_v49 = vpop.f32.mrf.mxu2  ;;  %1916 = vrot.lane.b32.xlu1 %v4602_v51, %s3897_s29  ;;  %v777_v6 = vpop.f32.mrf.mxu0  ;;  %v1318_v16 = vor.u32 1.1754944e-38, %v1317_v61 }
 0x14c   : > { %v1309_v4 = vmul.f32 %v3616_v12, %v1308_v32  ;;  %v4604_v37 = vadd.f32 %v952_v49, %v864_v44  ;;  %v866_v21 = vpop.f32.mrf.mxu1  ;;  %v4612_v32 = vpop.permute.xlu1 %1778 }
 0x14d   : > { %6008 = vst [vmem:[#allocation28_spill] sm:$0xff] %v4612_v32  ;;  %v867_v49 = vadd.f32 %v866_v21, %v777_v6  ;;  %v4618_v18 = vpop.permute.xlu0 %1782  ;;  %v1332_v6 = vand.u32 2147483648, %v4586_v2 }
 0x14e   : > { %v3620_v10 = vpop.eup %3619  ;;  %v1310_v53 = vadd.f32 %v3616_v12, %v1309_v4  ;;  %v3367_v13 = vmul.f32 -1.442695, %v4604_v37  ;;  %v887_v4 = vadd.f32 %v4424_v40, %v4275_v36  ;;  %6009 = vst [vmem:[#allocation29_spill] sm:$0xff] %v4618_v18 }
 0x14f   : > { %v3622_v45 = vpop.eup %3621  ;;  %v4610_v9 = vadd.f32 1.0, %v3620_v10 }
 0x150   : > { %v3624_v22 = vpop.eup %3623  ;;  %v1314_v44 = vsel %vm1313_vm6, %v3616_v12, %v1310_v53  ;;  %v1322_v56 = vmul.f32 %v3622_v45, %v4586_v2  ;;  %3625 = vpow2.f32 %v3367_v13  ;;  %v1330_v12 = vand.u32 2147483647, %v4586_v2 }
 0x151   : > { %v1319_v3 = vsel %vm1316_vm7, %v1318_v16, %v1314_v44  ;;  %3627 = vrcp.f32 %v4610_v9  ;;  %v975_v10 = vpop.f32.mrf.mxu3  ;;  %vm1327_vm8 = vweird.f32 %v3622_v45  ;;  %v4631_v16 = vpop.permute.xlu2 %1792  ;;  %vm1341_vm13 = vweird.f32 %v4610_v9 }
 0x152   : > { %v4622_v61 = vsel %vm997_vm2, %v1319_v3, %v3624_v22  ;;  %v1323_v41 = vsub.f32 1.0, %v1322_v56  ;;  %3629 = vtanh.f32 %v4556_v55  ;;  %v976_v53 = vadd.f32 %v975_v10, %v887_v4  ;;  %6010 = vst [vmem:[#allocation30_spill] sm:$0xff] %v4631_v16  ;;  %vm1328_vm10 = vmor %vm1326_vm9, %vm1327_vm8 }
 0x153   : > { %v955_v21 = vpop.f32.mrf.mxu2  ;;  %1918 = vrot.lane.b32.xlu2 %v4622_v61, %s3897_s29  ;;  %v779_v13 = vpop.f32.mrf.mxu0  ;;  %vm1331_vm11 = vcmp.eq.f32.partialorder %v1330_v12, 8.507059e+37  ;;  %v1333_v4 = vor.u32 1.1754944e-38, %v1332_v6 }
 0x154   : > { %v1324_v36 = vmul.f32 %v3622_v45, %v1323_v41  ;;  %v4629_v40 = vadd.f32 %v955_v21, %v867_v49  ;;  %v3376_v22 = vmul.f32 -1.442695, %v976_v53  ;;  %v868_v44 = vpop.f32.mrf.mxu1 }
 0x155   : > { %v869_v41 = vadd.f32 %v868_v44, %v779_v13  ;;  %v4649_v13 = vpop.permute.xlu0 %1788 }
 0x156   : > { %v3626_v56 = vpop.eup %3625  ;;  %v1325_v55 = vadd.f32 %v3622_v45, %v1324_v36  ;;  %v3368_v3 = vmul.f32 -1.442695, %v4629_v40  ;;  %3631 = vpow2.f32 %v3376_v22  ;;  %v4639_v36 = vpop.permute.xlu1 %1784  ;;  %6012 = vst [vmem:[#allocation32_spill] sm:$0xff] %v4649_v13 }
 0x157   : > { %v3628_v32 = vpop.eup %3627  ;;  %v4635_v10 = vadd.f32 1.0, %v3626_v56  ;;  %6011 = vst [vmem:[#allocation31_spill] sm:$0xff] %v4639_v36 }
 0x158   : > { %v1329_v49 = vsel %vm1328_vm10, %v3622_v45, %v1325_v55  ;;  %3633 = vpow2.f32 %v3368_v3  ;;  %v1337_v21 = vmul.f32 %v3628_v32, %v4610_v9  ;;  %v3630_v16 = vpop.eup %3629  ;;  %v1345_v3 = vand.u32 2147483647, %v4610_v9 }
 0x159   : > { %v1334_v18 = vsel %vm1331_vm11, %v1333_v4, %v1329_v49  ;;  %3635 = vrcp.f32 %v4635_v10  ;;  %v977_v12 = vpop.f32.mrf.mxu3  ;;  %vm1342_vm12 = vweird.f32 %v3628_v32  ;;  %vm1356_vm0 = vweird.f32 %v4635_v10 }
 0x15a   : > { %v4643_v2 = vsel %vm997_vm2, %v1334_v18, %v3630_v16  ;;  %v1338_v6 = vsub.f32 1.0, %v1337_v21  ;;  %3637 = vtanh.f32 %v4578_v17  ;;  %v978_v45 = vadd.f32 %v977_v12, %v4451_v11  ;;  %vm1343_vm14 = vmor %vm1341_vm13, %vm1342_vm12 }
 0x15b   : > { %v957_v22 = vpop.f32.mrf.mxu2  ;;  %1920 = vrot.lane.b32.xlu0 %v4643_v2, %s3897_s29  ;;  %v782_v56 = vpop.f32.mrf.mxu0  ;;  %v1347_v18 = vand.u32 2147483648, %v4610_v9  ;;  %3639 = vtanh.f32 %v4604_v37  ;;  %vm1346_vm15 = vcmp.eq.f32.partialorder %v1345_v3, 8.507059e+37 }
 0x15c   : > { %v958_v44 = vadd.f32 %v957_v22, %v869_v41  ;;  %v1339_v55 = vmul.f32 %v3628_v32, %v1338_v6  ;;  %v3632_v16 = vpop.eup %3631  ;;  %v3377_v4 = vmul.f32 -1.442695, %v978_v45  ;;  %v871_v17 = vpop.f32.mrf.mxu1  ;;  %3641 = vtanh.f32 %v976_v53 }
 0x15d   : > { %v4654_v11 = vadd.f32 1.0, %v3632_v16  ;;  %v1895_v41 = vpop.permute.xlu2 %1894  ;;  %v872_v37 = vadd.f32 %v871_v17, %v782_v56  ;;  %v1348_v13 = vor.u32 1.1754944e-38, %v1347_v18 }
 0x15e   : > { %v3634_v49 = vpop.eup %3633  ;;  %v3369_v21 = vmul.f32 -1.442695, %v958_v44  ;;  %3643 = vpow2.f32 %v3377_v4  ;;  %v1340_v6 = vadd.f32 %v3628_v32, %v1339_v55  ;;  %v894_v55 = vadd.f32 %v4499_v54, %v4312_v26 }
 0x15f   : > { %v4656_v12 = vpop.eup %3635  ;;  %v4658_v22 = vadd.f32 1.0, %v3634_v49  ;;  %3645 = vrcp.f32 %v4654_v11  ;;  %v1360_v49 = vand.u32 2147483647, %v4635_v10  ;;  %v4669_v9 = vmul.f32 %v1895_v41, %v4326_v50 }
 0x160   : > { %v3638_v36 = vpop.eup %3637  ;;  %v1344_v53 = vsel %vm1343_vm14, %v3628_v32, %v1340_v6  ;;  %v1352_v16 = vmul.f32 %v4656_v12, %v4635_v10  ;;  %v4678_v6 = vpop.permute.xlu1 %1790  ;;  %v1362_v26 = vand.u32 2147483648, %v4635_v10  ;;  %vm1357_vm3 = vweird.f32 %v4656_v12 }
 0x161   : > { %3647 = vrcp.f32 %v4658_v22  ;;  %v980_v56 = vpop.f32.mrf.mxu3  ;;  %v1349_v4 = vsel %vm1346_vm15, %v1348_v13, %v1344_v53  ;;  %v4671_v3 = vpop.eup %3639  ;;  %6013 = vst [vmem:[#allocation33_spill] sm:$0xff] %v4678_v6  ;;  %v1497_v13 = vand.u32 2147483648, %v4654_v11  ;;  %vm4691_vm1 = vcmp.eq.f32.partialorder %v1360_v49, 8.507059e+37  ;;  %vm1358_vm7 = vmor %vm1356_vm0, %vm1357_vm3 }
 0x162   : > { %3649 = vpow2.f32 %v3369_v21  ;;  %v981_v17 = vadd.f32 %v980_v56, %v4477_v59  ;;  %v4676_v32 = vsel %vm997_vm2, %v1349_v4, %v3638_v36  ;;  %v1353_v46 = vsub.f32 1.0, %v1352_v16  ;;  %v4681_v54 = vpop.eup %3641  ;;  %v4688_v53 = vpop.permute.xlu0 %1794 }
 0x163   : > { %v960_v18 = vpop.f32.mrf.mxu2  ;;  %3651 = vtanh.f32 %v4629_v40  ;;  %1922 = vrot.lane.b32.xlu1 %v4676_v32, %s3897_s29  ;;  %v784_v59 = vpop.f32.mrf.mxu0  ;;  %6014 = vst [vmem:[#allocation34_spill] sm:$0xff] %v4688_v53  ;;  %vm1491_vm4 = vweird.f32 %v4654_v11  ;;  %v4706_v53 = vor.u32 1.1754944e-38, %v1497_v13  ;;  %vm1371_vm5 = vweird.f32 %v4658_v22 }
 0x164   : > { %v961_v21 = vadd.f32 %v960_v18, %v872_v37  ;;  %v3644_v36 = vpop.eup %3643  ;;  %3653 = vtanh.f32 %v978_v45  ;;  %v3378_v41 = vmul.f32 -1.442695, %v981_v17  ;;  %v873_v16 = vpop.f32.mrf.mxu1  ;;  %v1354_v56 = vmul.f32 %v4656_v12, %v1353_v46 }
 0x165   : > { %v4695_v40 = vpop.eup %3645  ;;  %v1495_v37 = vand.u32 2147483647, %v4654_v11  ;;  %3655 = vtanh.f32 %v958_v44  ;;  %v4698_v18 = vadd.f32 1.0, %v3644_v36  ;;  %v1363_v46 = vor.u32 1.1754944e-38, %v1362_v26 }
 0x166   : > { %v3370_v6 = vmul.f32 -1.442695, %v961_v21  ;;  %v1487_v45 = vmul.f32 %v4695_v40, %v4654_v11  ;;  %3657 = vpow2.f32 %v3378_v41  ;;  %v874_v44 = vadd.f32 %v873_v16, %v784_v59 }
 0x167   : > { %v4700_v31 = vpop.eup %3647  ;;  %3659 = vrcp.f32 %v4698_v18  ;;  %v1355_v57 = vadd.f32 %v4656_v12, %v1354_v56  ;;  %vm4715_vm6 = vcmp.eq.f32.partialorder %v1495_v37, 8.507059e+37  ;;  %v1512_v13 = vand.u32 2147483648, %v4698_v18 }
 0x168   : > { %v3650_v49 = vpop.eup %3649  ;;  %v1488_v36 = vsub.f32 1.0, %v1487_v45  ;;  %3661 = vpow2.f32 %v3370_v6  ;;  %v1367_v6 = vmul.f32 %v4700_v31, %v4658_v22  ;;  %v1375_v59 = vand.u32 2147483647, %v4658_v22 }
 0x169   : > { %v4709_v29 = vadd.f32 1.0, %v3650_v49  ;;  %v4713_v41 = vpop.eup %3651  ;;  %3663 = vtanh.f32 %v981_v17  ;;  %v982_v27 = vpop.f32.mrf.mxu3  ;;  %v1359_v17 = vsel %vm1358_vm7, %v4656_v12, %v1355_v57  ;;  %vm1492_vm8 = vweird.f32 %v4695_v40 }
 0x16a   : > { %v4727_v16 = vpop.eup %3653  ;;  %v1489_v56 = vmul.f32 %v4695_v40, %v1488_v36  ;;  %v983_v45 = vadd.f32 %v982_v27, %v894_v55  ;;  %v1364_v7 = vsel %vm4691_vm1, %v1363_v46, %v1359_v17  ;;  %v4745_v27 = vpop.permute.xlu1 %1796  ;;  %v1368_v55 = vsub.f32 1.0, %v1367_v6  ;;  %vm4757_vm9 = vmor %vm1491_vm4, %vm1492_vm8 }
 0x16b   : > { %3665 = vrcp.f32 %v4709_v29  ;;  %v962_v37 = vpop.f32.mrf.mxu2  ;;  %v4732_v49 = vpop.eup %3655  ;;  %2054 = vrot.lane.b32.xlu1 %v4669_v9, %s3897_s29  ;;  %v4743_v57 = vsel %vm997_vm2, %v1364_v7, %v4671_v3  ;;  %6019 = vst [vmem:[#allocation35_spill] sm:$0xff] %v4745_v27  ;;  %v1377_v9 = vand.u32 2147483648, %v4658_v22  ;;  %vm1506_vm10 = vweird.f32 %v4698_v18 }
 0x16c   : > { %3667 = vtanh.f32 %v961_v21  ;;  %v963_v10 = vadd.f32 %v962_v37, %v874_v44  ;;  %v787_v1 = vpop.f32.mrf.mxu0  ;;  %v3658_v36 = vpop.eup %3657  ;;  %v1490_v39 = vadd.f32 %v4695_v40, %v1489_v56  ;;  %v3379_v15 = vmul.f32 -1.442695, %v983_v45  ;;  %1924 = vrot.lane.b32.xlu2 %v4743_v57, %s3897_s29 }
 0x16d   : > { %v876_v12 = vpop.f32.mrf.mxu1  ;;  %v4747_v21 = vpop.eup %3659  ;;  %3669 = vtanh.f32 %v983_v45  ;;  %v4764_v6 = vor.u32 1.1754944e-38, %v1512_v13  ;;  %v4766_v56 = vadd.f32 1.0, %v3658_v36  ;;  %v1369_v13 = vmul.f32 %v4700_v31, %v1368_v55 }
 0x16e   : > { %v3371_v46 = vmul.f32 -1.442695, %v963_v10  ;;  %v3662_v44 = vpop.eup %3661  ;;  %v1502_v3 = vmul.f32 %v4747_v21, %v4698_v18  ;;  %3671 = vpow2.f32 %v3379_v15  ;;  %v1897_v37 = vpop.permute.xlu0 %1896  ;;  %v1494_v11 = vsel %vm4757_vm9, %v4695_v40, %v1490_v39 }
 0x16f   : > { %v4768_v45 = vpop.eup %3663  ;;  %v4773_v17 = vadd.f32 1.0, %v3662_v44  ;;  %3673 = vtanh.f32 %v963_v10  ;;  %v877_v4 = vadd.f32 %v876_v12, %v787_v1  ;;  %vm1372_vm11 = vweird.f32 %v4700_v31 }
 0x170   : > { %v1503_v34 = vsub.f32 1.0, %v1502_v3  ;;  %3675 = vpow2.f32 %v3371_v46  ;;  %v1991_v36 = vmul.f32 %v1897_v37, %v4353_v19  ;;  %vm4783_vm12 = vcmp.eq.f32.partialorder %v1375_v59, 8.507059e+37  ;;  %vm1373_vm14 = vmor %vm1371_vm5, %vm1372_vm11 }
 0x171   : > { %v4775_v27 = vpop.eup %3665  ;;  %3677 = vrcp.f32 %v4773_v17  ;;  %v985_v7 = vpop.f32.mrf.mxu3  ;;  %v1499_v40 = vsel %vm4715_vm6, %v4706_v53, %v1494_v11  ;;  %v1370_v46 = vadd.f32 %v4700_v31, %v1369_v13  ;;  %vm1507_vm13 = vweird.f32 %v4747_v21 }
 0x172   : > { %v4779_v15 = vpop.eup %3667  ;;  %v1382_v1 = vmul.f32 %v4775_v27, %v4709_v29  ;;  %v1504_v10 = vmul.f32 %v4747_v21, %v1503_v34  ;;  %v986_v55 = vadd.f32 %v985_v7, %v4525_v20  ;;  %3679 = vrcp.f32 %v4766_v56  ;;  %vm4831_vm15 = vmor %vm1506_vm10, %vm1507_vm13 }
 0x173   : > { %v965_v12 = vpop.f32.mrf.mxu2  ;;  %v4795_v44 = vpop.eup %3669  ;;  %v1378_v53 = vor.u32 1.1754944e-38, %v1377_v9  ;;  %v1374_v37 = vsel %vm1373_vm14, %v4700_v31, %v1370_v46  ;;  %vm1386_vm0 = vweird.f32 %v4709_v29  ;;  %vm1387_vm1 = vweird.f32 %v4775_v27 }
 0x174   : > { %v966_v59 = vadd.f32 %v965_v12, %v877_v4  ;;  %v789_v26 = vpop.f32.mrf.mxu0  ;;  %v3672_v34 = vpop.eup %3671  ;;  %v4804_v3 = vadd.f32 %v4747_v21, %v1504_v10  ;;  %v3380_v20 = vmul.f32 -1.442695, %v986_v55  ;;  %v1383_v13 = vsub.f32 1.0, %v1382_v1  ;;  %2056 = vrot.lane.b32.xlu2 %v1991_v36, %s3897_s29  ;;  %vm4868_vm4 = vmor %vm1386_vm0, %vm1387_vm1 }
 0x175   : > { %v878_v11 = vpop.f32.mrf.mxu1  ;;  %v4807_v7 = vpop.eup %3673  ;;  %v4812_v4 = vsel %vm997_vm2, %v1499_v40, %v4681_v54  ;;  %3681 = vtanh.f32 %v986_v55  ;;  %v1379_v9 = vsel %vm4783_vm12, %v1378_v53, %v1374_v37  ;;  %v4817_v12 = vadd.f32 1.0, %v3672_v34 }
 0x176   : > { %v3372_v22 = vmul.f32 -1.442695, %v966_v59  ;;  %v3676_v10 = vpop.eup %3675  ;;  %3683 = vpow2.f32 %v3380_v20  ;;  %v4822_v31 = vsel %vm997_vm2, %v1379_v9, %v4713_v41  ;;  %v1899_v1 = vpop.permute.xlu1 %1898  ;;  %v1390_v54 = vand.u32 2147483647, %v4709_v29 }
 0x177   : > { %6024 = vst [vmem:[#allocation36_spill] sm:$0xff] %v4822_v31  ;;  %v4825_v40 = vpop.eup %3677  ;;  %v4835_v39 = vadd.f32 1.0, %v3676_v10  ;;  %3685 = vtanh.f32 %v966_v59  ;;  %1926 = vrot.lane.b32.xlu0 %v4822_v31, %s3897_s29  ;;  %v879_v41 = vadd.f32 %v878_v11, %v789_v26  ;;  %v1509_v55 = vsel %vm4831_vm15, %v4747_v21, %v4804_v3 }
 0x178   : > { %3687 = vpow2.f32 %v3372_v22  ;;  %v1384_v46 = vmul.f32 %v4775_v27, %v1383_v13  ;;  %v4846_v53 = vpop.eup %3679  ;;  %v1992_v59 = vmul.f32 %v1899_v1, %v4377_v48  ;;  %v1392_v26 = vand.u32 2147483648, %v4709_v29  ;;  %v1901_v22 = vpop.permute.xlu2 %1900 }
 0x179   : > { %3689 = vrcp.f32 %v4835_v39  ;;  %v987_v34 = vpop.f32.mrf.mxu3  ;;  %v1397_v20 = vmul.f32 %v4825_v40, %v4773_v17  ;;  %vm4858_vm3 = vcmp.eq.f32.partialorder %v1390_v54, 8.507059e+37  ;;  %vm1401_vm5 = vweird.f32 %v4773_v17 }
 0x17a   : > { %3691 = vrcp.f32 %v4817_v12  ;;  %v4855_v3 = vadd.f32 %v987_v34, %v4550_v23  ;;  %v1385_v37 = vadd.f32 %v4775_v27, %v1384_v46  ;;  %v1393_v23 = vor.u32 1.1754944e-38, %v1392_v26 }
 0x17b   : > { %v967_v21 = vpop.f32.mrf.mxu2  ;;  %v4862_v13 = vpop.eup %3681  ;;  %v1398_v36 = vsub.f32 1.0, %v1397_v20  ;;  %vm1402_vm6 = vweird.f32 %v4825_v40  ;;  %v1407_v29 = vand.u32 2147483648, %v4773_v17  ;;  %v1405_v0 = vand.u32 2147483647, %v4773_v17 }
 0x17c   : > { %v968_v9 = vadd.f32 %v967_v21, %v879_v41  ;;  %v792_v1 = vpop.f32.mrf.mxu0  ;;  %v3684_v54 = vpop.eup %3683  ;;  %v3381_v46 = vmul.f32 -1.442695, %v4855_v3  ;;  %v1389_v41 = vsel %vm4868_vm4, %v4775_v27, %v1385_v37  ;;  %1942 = vrot.lane.b32.xlu2 %v4812_v4, %s3897_s29  ;;  %v6031_v27 = vand.u32 2147483647, %v4698_v18  ;;  %vm4909_vm8 = vmor %vm1401_vm5, %vm1402_vm6 }
 0x17d   : > { %v881_v34 = vpop.f32.mrf.mxu1  ;;  %v4879_v21 = vpop.eup %3685  ;;  %v4881_v38 = vadd.f32 1.0, %v3684_v54  ;;  %v1394_v20 = vsel %vm4858_vm3, %v1393_v23, %v1389_v41  ;;  %v1993_v37 = vmul.f32 %v1901_v22, %v4402_v14  ;;  %v1399_v18 = vmul.f32 %v4825_v40, %v1398_v36 }
 0x17e   : > { %v3373_v26 = vmul.f32 -1.442695, %v968_v9  ;;  %v3688_v10 = vpop.eup %3687  ;;  %vm1511_vm7 = vcmp.eq.f32.partialorder %v6031_v27, 8.507059e+37  ;;  %3693 = vpow2.f32 %v3381_v46  ;;  %v4894_v54 = vsel %vm997_vm2, %v1394_v20, %v4732_v49 }
 0x17f   : > { %v3690_v60 = vpop.eup %3689  ;;  %v1514_v25 = vsel %vm1511_vm7, %v4764_v6, %v1509_v55  ;;  %3695 = vtanh.f32 %v968_v9  ;;  %2058 = vrot.lane.b32.xlu0 %v1992_v59, %s3897_s29  ;;  %1928 = vrot.lane.b32.xlu1 %v4894_v54, %s3897_s29  ;;  %v882_v11 = vadd.f32 %v881_v34, %v792_v1  ;;  %v4903_v22 = vadd.f32 1.0, %v3688_v10 }
 0x180   : > { %v4901_v23 = vpop.eup %3691  ;;  %3697 = vpow2.f32 %v3373_v26  ;;  %v1408_v6 = vor.u32 1.1754944e-38, %v1407_v29  ;;  %v1412_v55 = vmul.f32 %v3690_v60, %v4835_v39  ;;  %v1400_v9 = vadd.f32 %v4825_v40, %v1399_v18 }
 0x181   : > { %3699 = vrcp.f32 %v4881_v38  ;;  %v990_v59 = vpop.f32.mrf.mxu3  ;;  %vm1406_vm9 = vcmp.eq.f32.partialorder %v1405_v0, 8.507059e+37  ;;  %vm1416_vm10 = vweird.f32 %v4835_v39  ;;  %vm1417_vm11 = vweird.f32 %v3690_v60 }
 0x182   : > { %v4918_v36 = vadd.f32 %v990_v59, %v4574_v33  ;;  %v1413_v17 = vsub.f32 1.0, %v1412_v55  ;;  %v1420_v46 = vand.u32 2147483647, %v4835_v39  ;;  %v1404_v34 = vsel %vm4909_vm8, %v4825_v40, %v1400_v9  ;;  %vm4944_vm12 = vmor %vm1416_vm10, %vm1417_vm11 }
 0x183   : > { %v970_v1 = vpop.f32.mrf.mxu2  ;;  %v1422_v29 = vand.u32 2147483648, %v4835_v39  ;;  %v1517_v0 = vmul.f32 %v4846_v53, %v4766_v56  ;;  %3701 = vrcp.f32 %v4903_v22  ;;  %v1409_v20 = vsel %vm1406_vm9, %v1408_v6, %v1404_v34 }
 0x184   : > { %v971_v41 = vadd.f32 %v970_v1, %v882_v11  ;;  %v3694_v26 = vpop.eup %3693  ;;  %v3382_v33 = vmul.f32 -1.442695, %v4918_v36  ;;  %v794_v10 = vpop.f32.mrf.mxu0  ;;  %v1414_v18 = vmul.f32 %v3690_v60, %v1413_v17  ;;  %v4934_v40 = vsel %vm997_vm2, %v1514_v25, %v4727_v16 }
 0x185   : > { %v883_v27 = vpop.f32.mrf.mxu1  ;;  %v4929_v55 = vpop.eup %3695  ;;  %6034 = vst [vmem:[#allocation37_spill] sm:$0xff] %v4934_v40  ;;  %v4939_v49 = vsel %vm997_vm2, %v1409_v20, %v4779_v15  ;;  %v4948_v9 = vadd.f32 1.0, %v3694_v26  ;;  %vm1421_vm13 = vcmp.eq.f32.partialorder %v1420_v46, 8.507059e+37  ;;  %v1423_v1 = vor.u32 1.1754944e-38, %v1422_v29 }
 0x186   : > { %v3374_v11 = vmul.f32 -1.442695, %v971_v41  ;;  %3703 = vtanh.f32 %v971_v41  ;;  %v3698_v59 = vpop.eup %3697  ;;  %1930 = vrot.lane.b32.xlu2 %v4939_v49, %s3897_s29  ;;  %v1415_v25 = vadd.f32 %v3690_v60, %v1414_v18  ;;  %v884_v39 = vadd.f32 %v883_v27, %v794_v10  ;;  %v1903_v41 = vpop.permute.xlu0 %1902 }
 0x187   : > { %3705 = vpow2.f32 %v3382_v33  ;;  %v4952_v16 = vpop.eup %3699  ;;  %v4954_v15 = vadd.f32 1.0, %v3698_v59  ;;  %1944 = vrot.lane.b32.xlu0 %v4934_v40, %s3897_s29  ;;  %2060 = vrot.lane.b32.xlu1 %v1993_v37, %s3897_s29  ;;  %v1518_v17 = vsub.f32 1.0, %v1517_v0  ;;  %vm1522_vm14 = vweird.f32 %v4846_v53 }
 0x188   : > { %3707 = vpow2.f32 %v3374_v11  ;;  %v1419_v34 = vsel %vm4944_vm12, %v3690_v60, %v1415_v25  ;;  %v1525_v20 = vand.u32 2147483647, %v4766_v56  ;;  %v1527_v18 = vand.u32 2147483648, %v4766_v56 }
 0x189   : > { %v992_v46 = vpop.f32.mrf.mxu3  ;;  %v1424_v26 = vsel %vm1421_vm13, %v1423_v1, %v1419_v34  ;;  %v1519_v33 = vmul.f32 %v4846_v53, %v1518_v17  ;;  %v4965_v59 = vpop.eup %3701  ;;  %3709 = vrcp.f32 %v4948_v9  ;;  %vm1521_vm15 = vweird.f32 %v4766_v56 }
 0x18a   : > { %v4969_v29 = vadd.f32 %v992_v46, %v4598_v47  ;;  %v1532_v60 = vmul.f32 %v4901_v23, %v4817_v12  ;;  %3711 = vrcp.f32 %v4954_v15  ;;  %v1994_v10 = vmul.f32 %v1903_v41, %v4422_v42  ;;  %vm1523_vm0 = vmor %vm1521_vm15, %vm1522_vm14 }
 0x18b   : > { %v972_v37 = vpop.f32.mrf.mxu2  ;;  %v1520_v11 = vadd.f32 %v4846_v53, %v1519_v33  ;;  %v4985_v47 = vsel %vm997_vm2, %v1424_v26, %v4807_v7  ;;  %v1528_v56 = vor.u32 1.1754944e-38, %v1527_v18  ;;  %vm1526_vm1 = vcmp.eq.f32.partialorder %v1525_v20, 8.507059e+37 }
 0x18c   : > { %v4974_v0 = vpop.eup %3703  ;;  %v4978_v27 = vadd.f32 %v972_v37, %v884_v39  ;;  %v3383_v25 = vmul.f32 -1.442695, %v4969_v29  ;;  %v1533_v1 = vsub.f32 1.0, %v1532_v60  ;;  %vm1536_vm3 = vweird.f32 %v4817_v12 }
 0x18d   : > { %v3706_v6 = vpop.eup %3705  ;;  %v1524_v39 = vsel %vm1523_vm0, %v4846_v53, %v1520_v11  ;;  %vm1537_vm4 = vweird.f32 %v4901_v23  ;;  %v1540_v33 = vand.u32 2147483647, %v4817_v12  ;;  %v1905_v18 = vpop.permute.xlu1 %1904  ;;  %v1542_v60 = vand.u32 2147483648, %v4817_v12 }
 0x18e   : > { %v3375_v17 = vmul.f32 -1.442695, %v4978_v27  ;;  %v3708_v41 = vpop.eup %3707  ;;  %3713 = vpow2.f32 %v3383_v25  ;;  %2062 = vrot.lane.b32.xlu2 %v1994_v10, %s3897_s29  ;;  %v1529_v34 = vsel %vm1526_vm1, %v1528_v56, %v1524_v39  ;;  %v1534_v7 = vmul.f32 %v4901_v23, %v1533_v1  ;;  %vm1538_vm5 = vmor %vm1536_vm3, %vm1537_vm4 }
 0x18f   : > { %v4995_v46 = vadd.f32 1.0, %v3708_v41  ;;  %v4997_v26 = vadd.f32 1.0, %v3706_v6  ;;  %1932 = vrot.lane.b32.xlu0 %v4985_v47, %s3897_s29  ;;  %v5004_v53 = vsel %vm997_vm2, %v1529_v34, %v4768_v45  ;;  %v5007_v20 = vpop.eup %3709  ;;  %v1427_v10 = vmul.f32 %v4965_v59, %v4903_v22 }
 0x190   : > { %3715 = vpow2.f32 %v3375_v17  ;;  %1946 = vrot.lane.b32.xlu1 %v5004_v53, %s3897_s29  ;;  %v1535_v37 = vadd.f32 %v4901_v23, %v1534_v7  ;;  %v5015_v11 = vpop.eup %3711  ;;  %vm1431_vm6 = vweird.f32 %v4903_v22  ;;  %vm1432_vm7 = vweird.f32 %v4965_v59 }
 0x191   : > { %3717 = vrcp.f32 %v4995_v46  ;;  %v1543_v6 = vor.u32 1.1754944e-38, %v1542_v60  ;;  %v1428_v25 = vsub.f32 1.0, %v1427_v10  ;;  %v1435_v56 = vand.u32 2147483647, %v4903_v22  ;;  %vm5042_vm9 = vmor %vm1431_vm6, %vm1432_vm7 }
 0x192   : > { %v1539_v45 = vsel %vm1538_vm5, %v4901_v23, %v1535_v37  ;;  %v1995_v1 = vmul.f32 %v1905_v18, %v4447_v5  ;;  %vm1541_vm8 = vcmp.eq.f32.partialorder %v1540_v33, 8.507059e+37  ;;  %v1437_v17 = vand.u32 2147483648, %v4903_v22 }
 0x193   : > { %v1547_v39 = vmul.f32 %v4952_v16, %v4881_v38  ;;  %3719 = vrcp.f32 %v4997_v26  ;;  %v1544_v41 = vsel %vm1541_vm8, %v1543_v6, %v1539_v45  ;;  %v1429_v34 = vmul.f32 %v4965_v59, %v1428_v25 }
 0x194   : > { %v3714_v12 = vpop.eup %3713  ;;  %v1555_v23 = vand.u32 2147483647, %v4881_v38  ;;  %v5036_v7 = vsel %vm997_vm2, %v1544_v41, %v4795_v44  ;;  %v1438_v18 = vor.u32 1.1754944e-38, %v1437_v17  ;;  %vm1551_vm10 = vweird.f32 %v4881_v38 }
 0x195   : > { %vm1552_vm11 = vweird.f32 %v4952_v16  ;;  %v1430_v44 = vadd.f32 %v4965_v59, %v1429_v34  ;;  %vm1436_vm12 = vcmp.eq.f32.partialorder %v1435_v56, 8.507059e+37  ;;  %v1548_v60 = vsub.f32 1.0, %v1547_v39 }
 0x196   : > { %v3716_v37 = vpop.eup %3715  ;;  %1948 = vrot.lane.b32.xlu2 %v5036_v7, %s3897_s29  ;;  %v1557_v10 = vand.u32 2147483648, %v4881_v38  ;;  %v5054_v6 = vadd.f32 1.0, %v3714_v12  ;;  %vm5057_vm13 = vcmp.eq.f32.partialorder %v1555_v23, 8.507059e+37  ;;  %v1442_v17 = vmul.f32 %v5015_v11, %v4954_v15  ;;  %vm1553_vm0 = vmor %vm1551_vm10, %vm1552_vm11 }
 0x197   : > { %v3718_v22 = vpop.eup %3717  ;;  %v5052_v45 = vadd.f32 1.0, %v3716_v37  ;;  %2064 = vrot.lane.b32.xlu0 %v1995_v1, %s3897_s29  ;;  %v1434_v56 = vsel %vm5042_vm9, %v4965_v59, %v1430_v44  ;;  %v1549_v39 = vmul.f32 %v4952_v16, %v1548_v60  ;;  %vm1446_vm14 = vweird.f32 %v4954_v15 }
 0x198   : > { %v1558_v41 = vor.u32 1.1754944e-38, %v1557_v10  ;;  %v1439_v12 = vsel %vm1436_vm12, %v1438_v18, %v1434_v56  ;;  %v1443_v34 = vsub.f32 1.0, %v1442_v17  ;;  %vm1447_vm15 = vweird.f32 %v5015_v11 }
 0x199   : > { %v1450_v1 = vand.u32 2147483647, %v4954_v15  ;;  %v5070_v23 = vpop.eup %3719  ;;  %v5075_v37 = vsel %vm997_vm2, %v1439_v12, %v4879_v21  ;;  %v1550_v59 = vadd.f32 %v4952_v16, %v1549_v39  ;;  %v1452_v33 = vand.u32 2147483648, %v4954_v15  ;;  %v1907_v21 = vpop.permute.xlu2 %1906  ;;  %vm5094_vm4 = vmor %vm1446_vm14, %vm1447_vm15 }
 0x19a   : > { %v1457_v44 = vmul.f32 %v3718_v22, %v4995_v46  ;;  %3721 = vrcp.f32 %v5052_v45  ;;  %1934 = vrot.lane.b32.xlu1 %v5075_v37, %s3897_s29  ;;  %v1444_v18 = vmul.f32 %v5015_v11, %v1443_v34  ;;  %vm1461_vm1 = vweird.f32 %v4995_v46 }
 0x19b   : > { %vm1462_vm3 = vweird.f32 %v3718_v22  ;;  %v1554_v60 = vsel %vm1553_vm0, %v4952_v16, %v1550_v59  ;;  %v1453_v17 = vor.u32 1.1754944e-38, %v1452_v33  ;;  %v1465_v38 = vand.u32 2147483647, %v4995_v46 }
 0x19c   : > { %v1458_v56 = vsub.f32 1.0, %v1457_v44  ;;  %v1559_v39 = vsel %vm5057_vm13, %v1558_v41, %v1554_v60  ;;  %v1445_v12 = vadd.f32 %v5015_v11, %v1444_v18  ;;  %vm1451_vm5 = vcmp.eq.f32.partialorder %v1450_v1, 8.507059e+37  ;;  %vm5120_vm6 = vmor %vm1461_vm1, %vm1462_vm3 }
 0x19d   : > { %v1467_v16 = vand.u32 2147483648, %v4995_v46  ;;  %v5106_v15 = vsel %vm997_vm2, %v1559_v39, %v4862_v13  ;;  %v1562_v59 = vmul.f32 %v5007_v20, %v4948_v9  ;;  %v1996_v33 = vmul.f32 %v1907_v21, %v4471_v43 }
 0x19e   : > { %v1459_v34 = vmul.f32 %v3718_v22, %v1458_v56  ;;  %3723 = vrcp.f32 %v5054_v6  ;;  %v1449_v25 = vsel %vm5094_vm4, %v5015_v11, %v1445_v12  ;;  %vm1466_vm7 = vcmp.eq.f32.partialorder %v1465_v38, 8.507059e+37 }
 0x19f   : > { %1950 = vrot.lane.b32.xlu0 %v5106_v15, %s3897_s29  ;;  %v1468_v41 = vor.u32 1.1754944e-38, %v1467_v16  ;;  %v1454_v1 = vsel %vm1451_vm5, %v1453_v17, %v1449_v25  ;;  %v1563_v18 = vsub.f32 1.0, %v1562_v59  ;;  %v1570_v11 = vand.u32 2147483647, %v4948_v9  ;;  %v1909_v16 = vpop.permute.xlu0 %1908 }
 0x1a0   : > { %v1460_v44 = vadd.f32 %v3718_v22, %v1459_v34  ;;  %v3722_v21 = vpop.eup %3721  ;;  %v5127_v60 = vsel %vm997_vm2, %v1454_v1, %v4929_v55  ;;  %v1572_v10 = vand.u32 2147483648, %v4948_v9  ;;  %v1577_v46 = vmul.f32 %v5070_v23, %v4997_v26 }
 0x1a1   : > { %3725 = vtanh.f32 %v4855_v3  ;;  %1936 = vrot.lane.b32.xlu2 %v5127_v60, %s3897_s29  ;;  %v1564_v56 = vmul.f32 %v5007_v20, %v1563_v18  ;;  %vm1567_vm8 = vweird.f32 %v5007_v20  ;;  %vm1566_vm9 = vweird.f32 %v4948_v9 }
 0x1a2   : > { %v1464_v17 = vsel %vm5120_vm6, %v3718_v22, %v1460_v44  ;;  %3727 = vtanh.f32 %v4918_v36  ;;  %2066 = vrot.lane.b32.xlu1 %v1996_v33, %s3897_s29  ;;  %v1578_v38 = vsub.f32 1.0, %v1577_v46  ;;  %v1472_v22 = vmul.f32 %v3722_v21, %v5052_v45  ;;  %vm1568_vm10 = vmor %vm1566_vm9, %vm1567_vm8 }
 0x1a3   : > { %v1469_v55 = vsel %vm1466_vm7, %v1468_v41, %v1464_v17  ;;  %v1565_v39 = vadd.f32 %v5007_v20, %v1564_v56  ;;  %vm1571_vm11 = vcmp.eq.f32.partialorder %v1570_v11, 8.507059e+37  ;;  %v1573_v36 = vor.u32 1.1754944e-38, %v1572_v10 }
 0x1a4   : > { %v5145_v3 = vsel %vm997_vm2, %v1469_v55, %v4974_v0  ;;  %v3724_v12 = vpop.eup %3723  ;;  %v1579_v34 = vmul.f32 %v5070_v23, %v1578_v38  ;;  %vm1582_vm12 = vweird.f32 %v5070_v23  ;;  %v1473_v33 = vsub.f32 1.0, %v1472_v22 }
 0x1a5   : > { %v1569_v59 = vsel %vm1568_vm10, %v5007_v20, %v1565_v39  ;;  %vm1476_vm13 = vweird.f32 %v5052_v45  ;;  %vm1477_vm14 = vweird.f32 %v3722_v21  ;;  %v1480_v25 = vand.u32 2147483647, %v5052_v45  ;;  %v1911_v55 = vpop.permute.xlu1 %1910 }
 0x1a6   : > { %v1574_v9 = vsel %vm1571_vm11, %v1573_v36, %v1569_v59  ;;  %v1580_v0 = vadd.f32 %v5070_v23, %v1579_v34  ;;  %v1482_v13 = vand.u32 2147483648, %v5052_v45  ;;  %v1997_v1 = vmul.f32 %v1909_v16, %v4497_v63  ;;  %vm5168_vm0 = vmor %vm1476_vm13, %vm1477_vm14 }
 0x1a7   : > { %1938 = vrot.lane.b32.xlu0 %v5145_v3, %s3897_s29  ;;  %v3726_v41 = vpop.eup %3725  ;;  %v1587_v44 = vand.u32 2147483648, %v4997_v26  ;;  %v1474_v20 = vmul.f32 %v3722_v21, %v1473_v33  ;;  %v1592_v18 = vmul.f32 %v3724_v12, %v5054_v6  ;;  %3729 = vtanh.f32 %v4978_v27 }
 0x1a8   : > { %v3728_v11 = vpop.eup %3727  ;;  %vm1581_vm15 = vweird.f32 %v4997_v26  ;;  %v1585_v10 = vand.u32 2147483647, %v4997_v26  ;;  %v1483_v17 = vor.u32 1.1754944e-38, %v1482_v13  ;;  %v5175_v56 = vsel %vm997_vm2, %v1574_v9, %v3726_v41 }
 0x1a9   : > { %2068 = vrot.lane.b32.xlu2 %v1997_v1, %s3897_s29  ;;  %vm1583_vm1 = vmor %vm1581_vm15, %vm1582_vm12  ;;  %v1475_v27 = vadd.f32 %v3722_v21, %v1474_v20  ;;  %vm1481_vm3 = vcmp.eq.f32.partialorder %v1480_v25, 8.507059e+37  ;;  %v1593_v26 = vsub.f32 1.0, %v1592_v18  ;;  %v1588_v38 = vor.u32 1.1754944e-38, %v1587_v44  ;;  %v1913_v1 = vpop.permute.xlu2 %1912 }
 0x1aa   : > { %1952 = vrot.lane.b32.xlu1 %v5175_v56, %s3897_s29  ;;  %v1584_v45 = vsel %vm1583_vm1, %v5070_v23, %v1580_v0  ;;  %vm1597_vm4 = vweird.f32 %v3724_v12  ;;  %v1998_v16 = vmul.f32 %v1911_v55, %v4520_v35  ;;  %vm1586_vm5 = vcmp.eq.f32.partialorder %v1585_v10, 8.507059e+37 }
 0x1ab   : > { %v1479_v39 = vsel %vm5168_vm0, %v3722_v21, %v1475_v27  ;;  %v1594_v22 = vmul.f32 %v3724_v12, %v1593_v26  ;;  %v1602_v34 = vand.u32 2147483648, %v5054_v6  ;;  %v1589_v59 = vsel %vm1586_vm5, %v1588_v38, %v1584_v45 }
 0x1ac   : > { %v1484_v36 = vsel %vm1481_vm3, %v1483_v17, %v1479_v39  ;;  %vm1596_vm6 = vweird.f32 %v5054_v6  ;;  %v1600_v9 = vand.u32 2147483647, %v5054_v6  ;;  %3731 = vtanh.f32 %v4969_v29 }
 0x1ad   : > { %v1595_v33 = vadd.f32 %v3724_v12, %v1594_v22  ;;  %v3730_v25 = vpop.eup %3729  ;;  %vm1598_vm7 = vmor %vm1596_vm6, %vm1597_vm4  ;;  %v5196_v0 = vsel %vm997_vm2, %v1589_v59, %v3728_v11  ;;  %v1603_v13 = vor.u32 1.1754944e-38, %v1602_v34  ;;  %v1999_v20 = vmul.f32 %v1913_v1, %v4544_v8 }
 0x1ae   : > { %v5192_v23 = vsel %vm997_vm2, %v1484_v36, %v3730_v25  ;;  %vm1601_vm8 = vcmp.eq.f32.partialorder %v1600_v9, 8.507059e+37  ;;  %v1831_v26 = vmul.f32 %v4412_v30, %v4353_v19  ;;  %v1830_v34 = vmul.f32 %v4379_v52, %v4326_v50 }
 0x1af   : > { %2070 = vrot.lane.b32.xlu0 %v1998_v16, %s3897_s29  ;;  %v1599_v21 = vsel %vm1598_vm7, %v3724_v12, %v1595_v33  ;;  %v1832_v52 = vmul.f32 %v4408_v24, %v4377_v48  ;;  %vm2855_vm9 = vcmask 523264   ;;  %vm2888_vm10 = vcmask 785408  }
 0x1b0   : > { %v1604_v29 = vsel %vm1601_vm8, %v1603_v13, %v1599_v21 }
 0x1b1   : > { %1954 = vrot.lane.b32.xlu2 %v5196_v0, %s3897_s29  ;;  %v1919_v11 = vpop.permute.xlu2 %1918 }
 0x1b2   : > { %1940 = vrot.lane.b32.xlu1 %v5192_v23, %s3897_s29  ;;  %v3732_v41 = vpop.eup %3731  ;;  %v2002_v28 = vmul.f32 %v1919_v11, %v4622_v61  ;;  %v1833_v11 = vmul.f32 %v4435_v62, %v4402_v14 }
 0x1b3   : > { %v5204_v44 = vsel %vm997_vm2, %v1604_v29, %v3732_v41  ;;  %vm2822_vm2 = vcmask 261120  }
 0x1b5   : > { %v1915_v6 = vpop.permute.xlu0 %1914 }
 0x1b6   : > { %v2000_v12 = vmul.f32 %v1915_v6, %v4570_v58 }
 0x1b7   : > { %1956 = vrot.lane.b32.xlu0 %v5204_v44, %s3897_s29 }
 0x1b9   : > { %2074 = vrot.lane.b32.xlu2 %v2000_v12, %s3897_s29 }
 0x1ba   : > { %2072 = vrot.lane.b32.xlu1 %v1999_v20, %s3897_s29 }
 0x1bd   : > { %v1917_v18 = vpop.permute.xlu1 %1916 }
 0x1be   : > { %v2001_v10 = vmul.f32 %v1917_v18, %v4602_v51 }
 0x1c0   : > { %2076 = vrot.lane.b32.xlu0 %v2001_v10, %s3897_s29 }
 0x1c2   : > { %2078 = vrot.lane.b32.xlu1 %v2002_v28, %s3897_s29 }
 0x1c6   : > { %v1925_v46 = vpop.permute.xlu2 %1924 }
 0x1c7   : > { %v2005_v17 = vmul.f32 %v1925_v46, %v4743_v57  ;;  %v6047_v46 = vld [vmem:[#allocation8_spill] sm:$0xff] }
 0x1ca   : > { %2084 = vrot.lane.b32.xlu1 %v2005_v17, %s3897_s29  ;;  %v1834_v17 = vmul.f32 %v6047_v46, %v4422_v42 }
 0x1cd   : > { %v1921_v55 = vpop.permute.xlu0 %1920 }
 0x1ce   : > { %v2003_v27 = vmul.f32 %v1921_v55, %v4643_v2  ;;  %v2057_v45 = vpop.permute.xlu2 %2056 }
 0x1cf   : > { %v2151_v38 = vadd.f32 %v2057_v45, %v1831_v26 }
 0x1d0   : > { %2080 = vrot.lane.b32.xlu2 %v2003_v27, %s3897_s29 }
 0x1d1   : > { %3733 = vtanh.f32 %v2151_v38 }
 0x1d2   : > { %2632 = vrot.lane.b32.xlu1 %v2151_v38, %s3897_s29 }
 0x1d5   : > { %v1923_v39 = vpop.permute.xlu1 %1922 }
 0x1d6   : > { %v2004_v22 = vmul.f32 %v1923_v39, %v4676_v32  ;;  %v1943_v16 = vpop.permute.xlu2 %1942 }
 0x1d7   : > { %v2014_v36 = vmul.f32 %v1943_v16, %v4812_v4  ;;  %v3734_v33 = vpop.eup %3733 }
 0x1d8   : > { %2082 = vrot.lane.b32.xlu0 %v2004_v22, %s3897_s29 }
 0x1da   : > { %2102 = vrot.lane.b32.xlu1 %v2014_v36, %s3897_s29 }
 0x1dd   : > { %v2055_v30 = vpop.permute.xlu1 %2054 }
 0x1de   : > { %v2150_v59 = vadd.f32 %v2055_v30, %v1830_v34 }
 0x1e0   : > { %3735 = vtanh.f32 %v2150_v59  ;;  %2630 = vrot.lane.b32.xlu0 %v2150_v59, %s3897_s29  ;;  %2406 = vrot.lane.b32.xlu2 %v2150_v59, %s3898_s6  ;;  %v1931_v6 = vpop.permute.xlu2 %1930 }
 0x1e1   : > { %v2008_v18 = vmul.f32 %v1931_v6, %v4939_v49 }
 0x1e2   : > { %2248 = vrot.lane.b32.xlu1 %v3734_v33, %s3897_s29 }
 0x1e6   : > { %v3736_v9 = vpop.eup %3735 }
 0x1e8   : > { %2246 = vrot.lane.b32.xlu0 %v3736_v9, %s3897_s29  ;;  %v2063_v10 = vpop.permute.xlu2 %2062  ;;  %v6048_v9 = vld [vmem:[#allocation9_spill] sm:$0xff] }
 0x1e9   : > { %v1927_v25 = vpop.permute.xlu0 %1926  ;;  %v2154_v55 = vadd.f32 %v2063_v10, %v1834_v17 }
 0x1ea   : > { %v2006_v21 = vmul.f32 %v1927_v25, %v4822_v31  ;;  %v1835_v25 = vmul.f32 %v6048_v9, %v4447_v5 }
 0x1ec   : > { %2086 = vrot.lane.b32.xlu2 %v2006_v21, %s3897_s29 }
 0x1f0   : > { %2408 = vrot.lane.b32.xlu0 %v2151_v38, %s3898_s6  ;;  %v1949_v62 = vpop.permute.xlu2 %1948 }
 0x1f1   : > { %v2059_v13 = vpop.permute.xlu0 %2058  ;;  %v1929_v29 = vpop.permute.xlu1 %1928  ;;  %v2017_v39 = vmul.f32 %v1949_v62, %v5036_v7 }
 0x1f2   : > { %v2152_v41 = vadd.f32 %v2059_v13, %v1832_v52  ;;  %v2007_v1 = vmul.f32 %v1929_v29, %v4894_v54 }
 0x1f4   : > { %2410 = vrot.lane.b32.xlu1 %v2152_v41, %s3898_s6  ;;  %2634 = vrot.lane.b32.xlu2 %v2152_v41, %s3897_s29  ;;  %3737 = vtanh.f32 %v2152_v41 }
 0x1f8   : > { %2088 = vrot.lane.b32.xlu0 %v2007_v1, %s3897_s29 }
 0x1f9   : > { %v1945_v12 = vpop.permute.xlu0 %1944  ;;  %v2061_v20 = vpop.permute.xlu1 %2060 }
 0x1fa   : > { %v2015_v24 = vmul.f32 %v1945_v12, %v4934_v40  ;;  %v2153_v28 = vadd.f32 %v2061_v20, %v1833_v11  ;;  %v3738_v27 = vpop.eup %3737  ;;  %v6049_v12 = vld [vmem:[#allocation11_spill] sm:$0xff] }
 0x1fb   : > { %v1937_v36 = vpop.permute.xlu2 %1936  ;;  %v1836_v20 = vmul.f32 %v6049_v12, %v4471_v43 }
 0x1fc   : > { %2090 = vrot.lane.b32.xlu1 %v2008_v18, %s3897_s29  ;;  %2104 = vrot.lane.b32.xlu2 %v2015_v24, %s3897_s29  ;;  %3739 = vtanh.f32 %v2153_v28  ;;  %v2011_v41 = vmul.f32 %v1937_v36, %v5127_v60 }
 0x1fd   : > { %3741 = vtanh.f32 %v2154_v55 }
 0x200   : > { %2636 = vrot.lane.b32.xlu0 %v2153_v28, %s3897_s29 }
 0x201   : > { %v1933_v38 = vpop.permute.xlu0 %1932 }
 0x202   : > { %v1947_v26 = vpop.permute.xlu1 %1946  ;;  %v3740_v16 = vpop.eup %3739  ;;  %v2009_v34 = vmul.f32 %v1933_v38, %v4985_v47 }
 0x203   : > { %v2016_v45 = vmul.f32 %v1947_v26, %v5004_v53  ;;  %v3742_v59 = vpop.eup %3741  ;;  %v2069_v21 = vpop.permute.xlu2 %2068 }
 0x204   : > { %2638 = vrot.lane.b32.xlu1 %v2154_v55, %s3897_s29  ;;  %2250 = vrot.lane.b32.xlu2 %v3738_v27, %s3897_s29 }
 0x208   : > { %2106 = vrot.lane.b32.xlu0 %v2016_v45, %s3897_s29 }
 0x209   : > { %v2065_v30 = vpop.permute.xlu0 %2064 }
 0x20a   : > { %v2155_v52 = vadd.f32 %v2065_v30, %v1835_v25 }
 0x20b   : > { %v1955_v18 = vpop.permute.xlu2 %1954 }
 0x20c   : > { %2108 = vrot.lane.b32.xlu1 %v2017_v39, %s3897_s29  ;;  %2412 = vrot.lane.b32.xlu2 %v2153_v28, %s3898_s6  ;;  %v1935_v22 = vpop.permute.xlu1 %1934  ;;  %3743 = vtanh.f32 %v2155_v52  ;;  %v6050_v28 = vld [vmem:[#allocation13_spill] sm:$0xff]  ;;  %v2020_v38 = vmul.f32 %v1955_v18, %v5196_v0 }
 0x20d   : > { %v2010_v6 = vmul.f32 %v1935_v22, %v5075_v37  ;;  %v1837_v46 = vmul.f32 %v6050_v28, %v4497_v63 }
 0x20f   : > { %v2157_v17 = vadd.f32 %v2069_v21, %v1837_v46 }
 0x210   : > { %2252 = vrot.lane.b32.xlu0 %v3740_v16, %s3897_s29 }
 0x211   : > { %v1951_v13 = vpop.permute.xlu0 %1950 }
 0x212   : > { %v2018_v1 = vmul.f32 %v1951_v13, %v5106_v15  ;;  %v6052_v13 = vld [vmem:[#allocation16_spill] sm:$0xff] }
 0x213   : > { %v2075_v27 = vpop.permute.xlu2 %2074 }
 0x214   : > { %2254 = vrot.lane.b32.xlu1 %v3742_v59, %s3897_s29  ;;  %2092 = vrot.lane.b32.xlu2 %v2009_v34, %s3897_s29  ;;  %v2067_v33 = vpop.permute.xlu1 %2066 }
 0x215   : > { %v2156_v11 = vadd.f32 %v2067_v33, %v1836_v20  ;;  %v6051_v33 = vld [vmem:[#allocation10_spill] sm:$0xff] }
 0x216   : > { %v1838_v9 = vmul.f32 %v6051_v33, %v4520_v35 }
 0x217   : > { %3745 = vtanh.f32 %v2156_v11 }
 0x218   : > { %2414 = vrot.lane.b32.xlu0 %v2154_v55, %s3898_s6  ;;  %v3744_v55 = vpop.eup %3743  ;;  %3747 = vtanh.f32 %v2157_v17 }
 0x219   : > { %v1939_v10 = vpop.permute.xlu0 %1938 }
 0x21a   : > { %v2012_v36 = vmul.f32 %v1939_v10, %v5145_v3 }
 0x21c   : > { %2416 = vrot.lane.b32.xlu1 %v2155_v52, %s3898_s6  ;;  %2640 = vrot.lane.b32.xlu2 %v2155_v52, %s3897_s29  ;;  %v1953_v29 = vpop.permute.xlu1 %1952 }
 0x21d   : > { %v2019_v26 = vmul.f32 %v1953_v29, %v5175_v56  ;;  %v3746_v22 = vpop.eup %3745  ;;  %v1840_v29 = vmul.f32 %v6052_v13, %v4570_v58 }
 0x21e   : > { %v3748_v30 = vpop.eup %3747 }
 0x220   : > { %2094 = vrot.lane.b32.xlu0 %v2010_v6, %s3897_s29 }
 0x221   : > { %v2071_v45 = vpop.permute.xlu0 %2070 }
 0x222   : > { %v2158_v21 = vadd.f32 %v2071_v45, %v1838_v9 }
 0x224   : > { %2096 = vrot.lane.b32.xlu1 %v2011_v41, %s3897_s29  ;;  %2110 = vrot.lane.b32.xlu2 %v2018_v1, %s3897_s29  ;;  %v1941_v24 = vpop.permute.xlu1 %1940  ;;  %v2160_v1 = vadd.f32 %v2075_v27, %v1840_v29  ;;  %v6056_v29 = vld [vmem:[#allocation17_spill] sm:$0xff] }
 0x225   : > { %v2013_v6 = vmul.f32 %v1941_v24, %v5192_v23 }
 0x226   : > { %3749 = vtanh.f32 %v2160_v1 }
 0x227   : > { %3751 = vtanh.f32 %v2158_v21 }
 0x228   : > { %2642 = vrot.lane.b32.xlu0 %v2156_v11, %s3897_s29 }
 0x229   : > { %v1957_v34 = vpop.permute.xlu0 %1956 }
 0x22a   : > { %v2081_v39 = vpop.permute.xlu2 %2080  ;;  %v2021_v12 = vmul.f32 %v1957_v34, %v5204_v44  ;;  %v6055_v34 = vld [vmem:[#allocation19_spill] sm:$0xff] }
 0x22c   : > { %2644 = vrot.lane.b32.xlu1 %v2157_v17, %s3897_s29  ;;  %2256 = vrot.lane.b32.xlu2 %v3744_v55, %s3897_s29  ;;  %v2073_v62 = vpop.permute.xlu1 %2072  ;;  %v3750_v46 = vpop.eup %3749 }
 0x22d   : > { %v3752_v55 = vpop.eup %3751 }
 0x230   : > { %2112 = vrot.lane.b32.xlu0 %v2019_v26, %s3897_s29 }
 0x232   : > { %v2077_v52 = vpop.permute.xlu0 %2076 }
 0x234   : > { %2114 = vrot.lane.b32.xlu1 %v2020_v38, %s3897_s29  ;;  %2418 = vrot.lane.b32.xlu2 %v2156_v11, %s3898_s6  ;;  %v2079_v16 = vpop.permute.xlu1 %2078  ;;  %v6053_v11 = vld [vmem:[#allocation14_spill] sm:$0xff] }
 0x235   : > { %v1839_v10 = vmul.f32 %v6053_v11, %v4544_v8 }
 0x237   : > { %v2159_v24 = vadd.f32 %v2073_v62, %v1839_v10  ;;  %v6054_v62 = vld [vmem:[#allocation12_spill] sm:$0xff] }
 0x238   : > { %2258 = vrot.lane.b32.xlu0 %v3746_v22, %s3897_s29  ;;  %v1841_v38 = vmul.f32 %v6054_v62, %v4602_v51 }
 0x239   : > { %3753 = vtanh.f32 %v2159_v24 }
 0x23a   : > { %v5289_v59 = vpop.permute.xlu2 %2406  ;;  %v2161_v22 = vadd.f32 %v2077_v52, %v1841_v38  ;;  %v1842_v52 = vmul.f32 %v6056_v29, %v4622_v61 }
 0x23c   : > { %2260 = vrot.lane.b32.xlu1 %v3748_v30, %s3897_s29  ;;  %2098 = vrot.lane.b32.xlu2 %v2012_v36, %s3897_s29  ;;  %v5293_v25 = vpop.permute.xlu1 %2084  ;;  %v1843_v30 = vmul.f32 %v6055_v34, %v4643_v2 }
 0x23f   : > { %v3754_v45 = vpop.eup %3753 }
 0x240   : > { %2420 = vrot.lane.b32.xlu0 %v2157_v17, %s3898_s6 }
 0x244   : > { %2422 = vrot.lane.b32.xlu1 %v2158_v21, %s3898_s6  ;;  %2646 = vrot.lane.b32.xlu2 %v2158_v21, %s3897_s29  ;;  %v5305_v20 = vpop.permute.xlu1 %2632  ;;  %v2163_v21 = vadd.f32 %v2081_v39, %v1843_v30 }
 0x246   : > { %v5301_v41 = vpop.permute.xlu2 %2086  ;;  %3755 = vtanh.f32 %v2163_v21 }
 0x247   : > { %3757 = vtanh.f32 %v2161_v22 }
 0x248   : > { %2100 = vrot.lane.b32.xlu0 %v2013_v6, %s3897_s29  ;;  %v2162_v6 = vadd.f32 %v2079_v16, %v1842_v52  ;;  %v6060_v52 = vld [vmem:[#allocation20_spill] sm:$0xff] }
 0x24a   : > { %v2083_v18 = vpop.permute.xlu0 %2082  ;;  %3759 = vtanh.f32 %v2162_v6 }
 0x24c   : > { %2650 = vrot.lane.b32.xlu1 %v2160_v1, %s3897_s29  ;;  %2116 = vrot.lane.b32.xlu2 %v2021_v12, %s3897_s29  ;;  %v5316_v27 = vpop.permute.xlu1 %2102  ;;  %v3756_v39 = vpop.eup %3755 }
 0x24d   : > { %v3758_v10 = vpop.eup %3757 }
 0x24e   : > { %v5311_v28 = vpop.permute.xlu2 %2634 }
 0x250   : > { %2648 = vrot.lane.b32.xlu0 %v2159_v24, %s3897_s29  ;;  %v3760_v16 = vpop.eup %3759 }
 0x252   : > { %v5314_v17 = vpop.permute.xlu0 %2630 }
 0x254   : > { %2266 = vrot.lane.b32.xlu1 %v3750_v46, %s3897_s29  ;;  %2262 = vrot.lane.b32.xlu2 %v3752_v55, %s3897_s29  ;;  %v5329_v33 = vpop.permute.xlu1 %2248  ;;  %v6057_v55 = vld [vmem:[#allocation15_spill] sm:$0xff] }
 0x256   : > { %v5320_v26 = vpop.permute.xlu2 %2104 }
 0x258   : > { %2264 = vrot.lane.b32.xlu0 %v3754_v45, %s3897_s29  ;;  %v1844_v45 = vmul.f32 %v6057_v55, %v4676_v32 }
 0x25a   : > { %v2247_v36 = vpop.permute.xlu0 %2246  ;;  %v2164_v62 = vadd.f32 %v2083_v18, %v1844_v45 }
 0x25b   : > { %v2342_v30 = vmul.f32 %v2247_v36, %v4326_v50 }
 0x25c   : > { %2428 = vrot.lane.b32.xlu1 %v2161_v22, %s3898_s6  ;;  %2424 = vrot.lane.b32.xlu2 %v2159_v24, %s3898_s6  ;;  %3761 = vtanh.f32 %v2164_v62 }
 0x25e   : > { %v5331_v9 = vpop.permute.xlu2 %2250 }
 0x260   : > { %2426 = vrot.lane.b32.xlu0 %v2160_v1, %s3898_s6 }
 0x262   : > { %v5334_v13 = vpop.permute.xlu0 %2408  ;;  %v3762_v55 = vpop.eup %3761 }
 0x264   : > { %2656 = vrot.lane.b32.xlu1 %v2163_v21, %s3897_s29  ;;  %2652 = vrot.lane.b32.xlu2 %v2161_v22, %s3897_s29 }
 0x266   : > { %v5340_v12 = vpop.permute.xlu1 %2410  ;;  %v5342_v11 = vpop.permute.xlu2 %2412 }
 0x268   : > { %2654 = vrot.lane.b32.xlu0 %v2162_v6, %s3897_s29 }
 0x26a   : > { %v2089_v1 = vpop.permute.xlu0 %2088 }
 0x26c   : > { %2272 = vrot.lane.b32.xlu1 %v3756_v39, %s3897_s29  ;;  %2268 = vrot.lane.b32.xlu2 %v3758_v10, %s3897_s29  ;;  %v1845_v39 = vmul.f32 %v6060_v52, %v4743_v57 }
 0x26e   : > { %v5347_v24 = vpop.permute.xlu1 %2090  ;;  %v5349_v46 = vpop.permute.xlu2 %2092  ;;  %v2165_v18 = vadd.f32 %v5293_v25, %v1845_v39 }
 0x270   : > { %2270 = vrot.lane.b32.xlu0 %v3760_v16, %s3897_s29  ;;  %3763 = vtanh.f32 %v2165_v18 }
 0x272   : > { %v5354_v38 = vpop.permute.xlu0 %2636 }
 0x274   : > { %2434 = vrot.lane.b32.xlu1 %v2164_v62, %s3898_s6  ;;  %2430 = vrot.lane.b32.xlu2 %v2162_v6, %s3898_s6 }
 0x276   : > { %v5358_v22 = vpop.permute.xlu1 %2638  ;;  %v5360_v34 = vpop.permute.xlu2 %2640 }
 0x277   : > { %6058 = vst [vmem:[#allocation8_spill] sm:$0xff] %v5358_v22 }
 0x278   : > { %6059 = vst [vmem:[#allocation9_spill] sm:$0xff] %v5360_v34  ;;  %2432 = vrot.lane.b32.xlu0 %v2163_v21, %s3898_s6  ;;  %v6061_v21 = vld [vmem:[#allocation22_spill] sm:$0xff] }
 0x279   : > { %v1846_v16 = vmul.f32 %v6061_v21, %v4822_v31 }
 0x27a   : > { %v5364_v29 = vpop.permute.xlu0 %2106 }
 0x27b   : > { %v2166_v50 = vadd.f32 %v5301_v41, %v1846_v16  ;;  %v6064_v16 = vld [vmem:[#allocation18_spill] sm:$0xff] }
 0x27c   : > { %2658 = vrot.lane.b32.xlu2 %v2164_v62, %s3897_s29  ;;  %2534 = vrot.lane.b32.xlu1 %v2342_v30, %s3898_s6  ;;  %v3764_v62 = vpop.eup %3763 }
 0x27d   : > { %3765 = vtanh.f32 %v2166_v50 }
 0x27e   : > { %v5371_v6 = vpop.permute.xlu1 %2108  ;;  %v5373_v10 = vpop.permute.xlu2 %2110 }
 0x280   : > { %2660 = vrot.lane.b32.xlu0 %v2165_v18, %s3897_s29 }
 0x282   : > { %v5379_v36 = vpop.permute.xlu0 %2252 }
 0x283   : > { %v3766_v39 = vpop.eup %3765 }
 0x284   : > { %2274 = vrot.lane.b32.xlu2 %v3762_v55, %s3897_s29  ;;  %2662 = vrot.lane.b32.xlu1 %v2166_v50, %s3897_s29  ;;  %v1847_v55 = vmul.f32 %v6064_v16, %v4894_v54  ;;  %v6066_v16 = vld [vmem:[#allocation31_spill] sm:$0xff] }
 0x286   : > { %v5383_v25 = vpop.permute.xlu1 %2254  ;;  %v5385_v45 = vpop.permute.xlu2 %2256  ;;  %v2167_v34 = vadd.f32 %v2089_v1, %v1847_v55  ;;  %v2344_v55 = vmul.f32 %v5331_v9, %v4377_v48 }
 0x288   : > { %2276 = vrot.lane.b32.xlu0 %v3764_v62, %s3897_s29  ;;  %v6065_v62 = vld [vmem:[#allocation29_spill] sm:$0xff] }
 0x289   : > { %v1854_v22 = vmul.f32 %v6065_v62, %v4812_v4 }
 0x28a   : > { %v5388_v52 = vpop.permute.xlu0 %2414 }
 0x28c   : > { %2436 = vrot.lane.b32.xlu2 %v2165_v18, %s3898_s6  ;;  %2278 = vrot.lane.b32.xlu1 %v3766_v39, %s3897_s29  ;;  %v2174_v18 = vadd.f32 %v5316_v27, %v1854_v22  ;;  %v2343_v27 = vmul.f32 %v5329_v33, %v4353_v19 }
 0x28e   : > { %v5392_v41 = vpop.permute.xlu1 %2416  ;;  %v5394_v21 = vpop.permute.xlu2 %2418  ;;  %3767 = vtanh.f32 %v2174_v18 }
 0x28f   : > { %6062 = vst [vmem:[#allocation11_spill] sm:$0xff] %v5392_v41  ;;  %v1855_v41 = vmul.f32 %v6066_v16, %v4934_v40  ;;  %v6070_v16 = vld [vmem:[#allocation27_spill] sm:$0xff] }
 0x290   : > { %6063 = vst [vmem:[#allocation13_spill] sm:$0xff] %v5394_v21  ;;  %2438 = vrot.lane.b32.xlu0 %v2166_v50, %s3898_s6 }
 0x291   : > { %v2175_v1 = vadd.f32 %v5320_v26, %v1855_v41 }
 0x292   : > { %v5399_v31 = vpop.permute.xlu0 %2094 }
 0x293   : > { %3769 = vtanh.f32 %v2175_v1 }
 0x294   : > { %2726 = vrot.lane.b32.xlu2 %v2342_v30, %s3897_s29  ;;  %2440 = vrot.lane.b32.xlu1 %v2167_v34, %s3898_s6  ;;  %v3768_v33 = vpop.eup %3767  ;;  %3771 = vtanh.f32 %v2167_v34 }
 0x296   : > { %v5406_v39 = vpop.permute.xlu1 %2096  ;;  %v5408_v21 = vpop.permute.xlu2 %2098 }
 0x298   : > { %2678 = vrot.lane.b32.xlu0 %v2174_v18, %s3897_s29 }
 0x29a   : > { %v5414_v50 = vpop.permute.xlu0 %2642 }
 0x29b   : > { %6067 = vst [vmem:[#allocation10_spill] sm:$0xff] %v5414_v50  ;;  %v6074_v50 = vld [vmem:[#allocation23_spill] sm:$0xff] }
 0x29c   : > { %2454 = vrot.lane.b32.xlu2 %v2174_v18, %s3898_s6  ;;  %2680 = vrot.lane.b32.xlu1 %v2175_v1, %s3897_s29  ;;  %v3770_v18 = vpop.eup %3769  ;;  %v1848_v40 = vmul.f32 %v6074_v50, %v4939_v49 }
 0x29e   : > { %v5420_v22 = vpop.permute.xlu1 %2644  ;;  %v5422_v30 = vpop.permute.xlu2 %2646 }
 0x29f   : > { %6068 = vst [vmem:[#allocation16_spill] sm:$0xff] %v5420_v22  ;;  %v3772_v22 = vpop.eup %3771 }
 0x2a0   : > { %6069 = vst [vmem:[#allocation14_spill] sm:$0xff] %v5422_v30  ;;  %2728 = vrot.lane.b32.xlu0 %v2343_v27, %s3897_s29 }
 0x2a2   : > { %v5427_v26 = vpop.permute.xlu0 %2112 }
 0x2a4   : > { %2536 = vrot.lane.b32.xlu2 %v2343_v27, %s3898_s6  ;;  %2730 = vrot.lane.b32.xlu1 %v2344_v55, %s3897_s29  ;;  %v1856_v27 = vmul.f32 %v6070_v16, %v5004_v53 }
 0x2a6   : > { %v5431_v41 = vpop.permute.xlu1 %2114  ;;  %v5433_v19 = vpop.permute.xlu2 %2116  ;;  %v2176_v30 = vadd.f32 %v5364_v29, %v1856_v27  ;;  %v2345_v29 = vmul.f32 %v5379_v36, %v4402_v14 }
 0x2a8   : > { %2294 = vrot.lane.b32.xlu0 %v3768_v33, %s3897_s29 }
 0x2aa   : > { %v5436_v62 = vpop.permute.xlu0 %2258 }
 0x2ac   : > { %2664 = vrot.lane.b32.xlu2 %v2167_v34, %s3897_s29  ;;  %2296 = vrot.lane.b32.xlu1 %v3770_v18, %s3897_s29 }
 0x2ae   : > { %v5440_v48 = vpop.permute.xlu1 %2260  ;;  %v5442_v9 = vpop.permute.xlu2 %2262 }
 0x2b0   : > { %2456 = vrot.lane.b32.xlu0 %v2175_v1, %s3898_s6  ;;  %v2168_v1 = vadd.f32 %v5347_v24, %v1848_v40 }
 0x2b2   : > { %v5448_v33 = vpop.permute.xlu0 %2420  ;;  %3773 = vtanh.f32 %v2168_v1 }
 0x2b3   : > { %6071 = vst [vmem:[#allocation12_spill] sm:$0xff] %v5448_v33  ;;  %v6081_v33 = vld [vmem:[#allocation32_spill] sm:$0xff] }
 0x2b4   : > { %2280 = vrot.lane.b32.xlu2 %v3772_v22, %s3897_s29  ;;  %2458 = vrot.lane.b32.xlu1 %v2176_v30, %s3898_s6 }
 0x2b6   : > { %v5452_v18 = vpop.permute.xlu1 %2422  ;;  %v5454_v34 = vpop.permute.xlu2 %2424 }
 0x2b7   : > { %6072 = vst [vmem:[#allocation19_spill] sm:$0xff] %v5452_v18  ;;  %v6077_v18 = vld [vmem:[#allocation25_spill] sm:$0xff] }
 0x2b8   : > { %6073 = vst [vmem:[#allocation17_spill] sm:$0xff] %v5454_v34  ;;  %2538 = vrot.lane.b32.xlu0 %v2344_v55, %s3898_s6  ;;  %v1849_v50 = vmul.f32 %v6077_v18, %v4985_v47  ;;  %v3774_v55 = vpop.eup %3773 }
 0x2ba   : > { %v5462_v16 = vpop.permute.xlu0 %2100  ;;  %v2169_v40 = vadd.f32 %v5349_v46, %v1849_v50  ;;  %v6080_v50 = vld [vmem:[#allocation21_spill] sm:$0xff] }
 0x2bc   : > { %2442 = vrot.lane.b32.xlu2 %v2168_v1, %s3898_s6  ;;  %2540 = vrot.lane.b32.xlu1 %v2345_v29, %s3898_s6  ;;  %3775 = vtanh.f32 %v2169_v40 }
 0x2bd   : > { %3777 = vtanh.f32 %v2176_v30 }
 0x2be   : > { %v5466_v22 = vpop.permute.xlu1 %2650  ;;  %v5468_v27 = vpop.permute.xlu2 %2652 }
 0x2bf   : > { %6075 = vst [vmem:[#allocation15_spill] sm:$0xff] %v5466_v22  ;;  %v1850_v22 = vmul.f32 %v6080_v50, %v5075_v37 }
 0x2c0   : > { %6076 = vst [vmem:[#allocation20_spill] sm:$0xff] %v5468_v27  ;;  %2666 = vrot.lane.b32.xlu0 %v2168_v1, %s3897_s29 }
 0x2c2   : > { %v5474_v24 = vpop.permute.xlu0 %2648  ;;  %v3776_v27 = vpop.eup %3775 }
 0x2c3   : > { %6078 = vst [vmem:[#allocation22_spill] sm:$0xff] %v5474_v24  ;;  %v2170_v24 = vadd.f32 %v5399_v31, %v1850_v22  ;;  %v3778_v34 = vpop.eup %3777 }
 0x2c4   : > { %2682 = vrot.lane.b32.xlu2 %v2176_v30, %s3897_s29  ;;  %2668 = vrot.lane.b32.xlu1 %v2169_v40, %s3897_s29 }
 0x2c6   : > { %v5478_v14 = vpop.permute.xlu1 %2266  ;;  %v5480_v36 = vpop.permute.xlu2 %2268 }
 0x2c8   : > { %2282 = vrot.lane.b32.xlu0 %v3774_v55, %s3897_s29 }
 0x2ca   : > { %v5483_v18 = vpop.permute.xlu0 %2264 }
 0x2cc   : > { %2732 = vrot.lane.b32.xlu2 %v2345_v29, %s3897_s29  ;;  %2284 = vrot.lane.b32.xlu1 %v3776_v27, %s3897_s29  ;;  %v1857_v29 = vmul.f32 %v6081_v33, %v5036_v7 }
 0x2ce   : > { %v5487_v46 = vpop.permute.xlu1 %2428  ;;  %v5489_v1 = vpop.permute.xlu2 %2430  ;;  %v2177_v30 = vadd.f32 %v5371_v6, %v1857_v29  ;;  %v2346_v6 = vmul.f32 %v5383_v25, %v4422_v42 }
 0x2cf   : > { %6079 = vst [vmem:[#allocation18_spill] sm:$0xff] %v5487_v46 }
 0x2d0   : > { %2444 = vrot.lane.b32.xlu0 %v2169_v40, %s3898_s6  ;;  %v6084_v40 = vld [vmem:[#allocation33_spill] sm:$0xff]  ;;  %3779 = vtanh.f32 %v2177_v30 }
 0x2d1   : > { %v1858_v50 = vmul.f32 %v6084_v40, %v5106_v15 }
 0x2d2   : > { %v5495_v55 = vpop.permute.xlu0 %2426 }
 0x2d3   : > { %v2178_v31 = vadd.f32 %v5373_v10, %v1858_v50  ;;  %v2347_v10 = vmul.f32 %v5385_v45, %v4447_v5 }
 0x2d4   : > { %2298 = vrot.lane.b32.xlu2 %v3778_v34, %s3897_s29  ;;  %2446 = vrot.lane.b32.xlu1 %v2170_v24, %s3898_s6 }
 0x2d5   : > { %3781 = vtanh.f32 %v2178_v31 }
 0x2d6   : > { %v5502_v27 = vpop.permute.xlu1 %2656  ;;  %v5504_v46 = vpop.permute.xlu2 %2658  ;;  %3783 = vtanh.f32 %v2170_v24 }
 0x2d7   : > { %6082 = vst [vmem:[#allocation29_spill] sm:$0xff] %v5502_v27  ;;  %v3780_v25 = vpop.eup %3779 }
 0x2d8   : > { %6083 = vst [vmem:[#allocation31_spill] sm:$0xff] %v5504_v46  ;;  %2684 = vrot.lane.b32.xlu0 %v2177_v30, %s3897_s29  ;;  %v6087_v46 = vld [vmem:[#allocation30_spill] sm:$0xff] }
 0x2da   : > { %v5510_v22 = vpop.permute.xlu0 %2654 }
 0x2dc   : > { %2460 = vrot.lane.b32.xlu2 %v2177_v30, %s3898_s6  ;;  %2686 = vrot.lane.b32.xlu1 %v2178_v31, %s3897_s29  ;;  %v3782_v30 = vpop.eup %3781 }
 0x2dd   : > { %v3784_v27 = vpop.eup %3783 }
 0x2de   : > { %v5516_v33 = vpop.permute.xlu1 %2272  ;;  %v5518_v34 = vpop.permute.xlu2 %2274 }
 0x2e0   : > { %2734 = vrot.lane.b32.xlu0 %v2346_v6, %s3897_s29 }
 0x2e2   : > { %v5523_v29 = vpop.permute.xlu0 %2270 }
 0x2e4   : > { %2542 = vrot.lane.b32.xlu2 %v2346_v6, %s3898_s6  ;;  %2736 = vrot.lane.b32.xlu1 %v2347_v10, %s3897_s29 }
 0x2e6   : > { %v5527_v40 = vpop.permute.xlu1 %2434  ;;  %v5529_v42 = vpop.permute.xlu2 %2436 }
 0x2e7   : > { %6085 = vst [vmem:[#allocation27_spill] sm:$0xff] %v5527_v40 }
 0x2e8   : > { %6086 = vst [vmem:[#allocation23_spill] sm:$0xff] %v5529_v42  ;;  %2300 = vrot.lane.b32.xlu0 %v3780_v25, %s3897_s29  ;;  %v1859_v25 = vmul.f32 %v6087_v46, %v5175_v56  ;;  %v6089_v46 = vld [vmem:[#allocation26_spill] sm:$0xff] }
 0x2ea   : > { %v5532_v50 = vpop.permute.xlu0 %2432  ;;  %v2179_v42 = vadd.f32 %v5427_v26, %v1859_v25 }
 0x2ec   : > { %2670 = vrot.lane.b32.xlu2 %v2170_v24, %s3897_s29  ;;  %2302 = vrot.lane.b32.xlu1 %v3782_v30, %s3897_s29 }
 0x2ee   : > { %v2727_v5 = vpop.permute.xlu2 %2726  ;;  %v2535_v45 = vpop.permute.xlu1 %2534 }
 0x2ef   : > { %v2823_v6 = vsel %vm2822_vm2, %v5289_v59, %v2535_v45 }
 0x2f0   : > { %v2856_v40 = vsel %vm2855_vm9, %v2823_v6, %v5314_v17  ;;  %2462 = vrot.lane.b32.xlu0 %v2178_v31, %s3898_s6  ;;  %v1851_v31 = vmul.f32 %v6089_v46, %v5127_v60  ;;  %v6090_v6 = vld [vmem:[#allocation28_spill] sm:$0xff] }
 0x2f1   : > { %v2889_v30 = vsel %vm2888_vm10, %v2856_v40, %v2727_v5  ;;  %v2348_v40 = vmul.f32 %v5436_v62, %v4471_v43  ;;  %v1852_v25 = vmul.f32 %v6090_v6, %v5145_v3 }
 0x2f2   : > { %2921 = vst [vmem:[%s5546_s17] sm:$0xff] %v2889_v30  ;;  %v5549_v24 = vpop.permute.xlu0 %2660  ;;  %v2171_v26 = vadd.f32 %v5406_v39, %v1851_v31 }
 0x2f3   : > { %v2172_v39 = vadd.f32 %v5408_v21, %v1852_v25  ;;  %v6094_v25 = vld [vmem:[#allocation24_spill] sm:$0xff] }
 0x2f4   : > { %2286 = vrot.lane.b32.xlu2 %v3784_v27, %s3897_s29  ;;  %2464 = vrot.lane.b32.xlu1 %v2179_v42, %s3898_s6  ;;  %3785 = vtanh.f32 %v2171_v26 }
 0x2f5   : > { %3787 = vtanh.f32 %v2172_v39 }
 0x2f6   : > { %v5553_v59 = vpop.permute.xlu2 %2454  ;;  %v5555_v17 = vpop.permute.xlu1 %2662  ;;  %3789 = vtanh.f32 %v2179_v42 }
 0x2f7   : > { %6088 = vst [vmem:[#allocation25_spill] sm:$0xff] %v5555_v17 }
 0x2f8   : > { %2544 = vrot.lane.b32.xlu0 %v2347_v10, %s3898_s6 }
 0x2fa   : > { %v5563_v5 = vpop.permute.xlu0 %2276  ;;  %v3786_v30 = vpop.eup %3785 }
 0x2fb   : > { %v3788_v31 = vpop.eup %3787 }
 0x2fc   : > { %2448 = vrot.lane.b32.xlu2 %v2171_v26, %s3898_s6  ;;  %2546 = vrot.lane.b32.xlu1 %v2348_v40, %s3898_s6 }
 0x2fe   : > { %v2537_v27 = vpop.permute.xlu2 %2536  ;;  %v5567_v45 = vpop.permute.xlu1 %2278 }
 0x2ff   : > { %v2824_v6 = vsel %vm2822_vm2, %v5334_v13, %v2537_v27 }
 0x300   : > { %2672 = vrot.lane.b32.xlu0 %v2171_v26, %s3897_s29 }
 0x302   : > { %v5573_v10 = vpop.permute.xlu0 %2438 }
 0x304   : > { %2688 = vrot.lane.b32.xlu2 %v2179_v42, %s3897_s29  ;;  %2674 = vrot.lane.b32.xlu1 %v2172_v39, %s3897_s29 }
 0x306   : > { %v5577_v43 = vpop.permute.xlu2 %2664  ;;  %v5579_v62 = vpop.permute.xlu1 %2440 }
 0x307   : > { %6091 = vst [vmem:[#allocation21_spill] sm:$0xff] %v5577_v43  ;;  %v1853_v43 = vmul.f32 %v6094_v25, %v5192_v23 }
 0x308   : > { %6092 = vst [vmem:[#allocation32_spill] sm:$0xff] %v5579_v62  ;;  %2288 = vrot.lane.b32.xlu0 %v3786_v30, %s3897_s29 }
 0x309   : > { %v2173_v30 = vadd.f32 %v5462_v16, %v1853_v43  ;;  %v6096_v16 = vld [vmem:[#allocation35_spill] sm:$0xff] }
 0x30a   : > { %v5582_v46 = vpop.permute.xlu0 %2678 }
 0x30c   : > { %2738 = vrot.lane.b32.xlu2 %v2348_v40, %s3897_s29  ;;  %2290 = vrot.lane.b32.xlu1 %v3788_v31, %s3897_s29  ;;  %v2857_v40 = vsel %vm2855_vm9, %v2824_v6, %v5305_v20  ;;  %v3790_v31 = vpop.eup %3789  ;;  %v1861_v20 = vmul.f32 %v6096_v16, %v5204_v44  ;;  %v2350_v6 = vmul.f32 %v5442_v9, %v4520_v35 }
 0x30e   : > { %v5586_v21 = vpop.permute.xlu1 %2680  ;;  %v5588_v26 = vpop.permute.xlu2 %2280  ;;  %v2181_v43 = vadd.f32 %v5433_v19, %v1861_v20 }
 0x30f   : > { %6093 = vst [vmem:[#allocation33_spill] sm:$0xff] %v5586_v21  ;;  %v6095_v21 = vld [vmem:[#allocation34_spill] sm:$0xff] }
 0x310   : > { %2450 = vrot.lane.b32.xlu0 %v2172_v39, %s3898_s6  ;;  %v1860_v17 = vmul.f32 %v6095_v21, %v5196_v0  ;;  %v2349_v21 = vmul.f32 %v5440_v48, %v4497_v63 }
 0x312   : > { %v2729_v62 = vpop.permute.xlu0 %2728  ;;  %v2180_v13 = vadd.f32 %v5431_v41, %v1860_v17 }
 0x313   : > { %v2890_v42 = vsel %vm2888_vm10, %v2857_v40, %v2729_v62 }
 0x314   : > { %2304 = vrot.lane.b32.xlu2 %v3790_v31, %s3897_s29  ;;  %2452 = vrot.lane.b32.xlu1 %v2173_v30, %s3898_s6  ;;  %2922 = vst [vmem:[%s5546_s17 + $0x8] sm:$0xff] %v2890_v42  ;;  %3791 = vtanh.f32 %v2180_v13 }
 0x315   : > { %3793 = vtanh.f32 %v2181_v43 }
 0x316   : > { %v2731_v27 = vpop.permute.xlu1 %2730  ;;  %v5605_v39 = vpop.permute.xlu2 %2442  ;;  %3795 = vtanh.f32 %v2173_v30 }
 0x318   : > { %2690 = vrot.lane.b32.xlu0 %v2180_v13, %s3897_s29 }
 0x31a   : > { %v5611_v62 = vpop.permute.xlu0 %2294  ;;  %v3792_v48 = vpop.eup %3791 }
 0x31b   : > { %v3794_v31 = vpop.eup %3793 }
 0x31c   : > { %2466 = vrot.lane.b32.xlu2 %v2180_v13, %s3898_s6  ;;  %2692 = vrot.lane.b32.xlu1 %v2181_v43, %s3897_s29 }
 0x31e   : > { %v5617_v41 = vpop.permute.xlu1 %2296  ;;  %v5619_v17 = vpop.permute.xlu2 %2682 }
 0x320   : > { %2740 = vrot.lane.b32.xlu0 %v2349_v21, %s3897_s29 }
 0x322   : > { %v5624_v19 = vpop.permute.xlu0 %2456 }
 0x324   : > { %2548 = vrot.lane.b32.xlu2 %v2349_v21, %s3898_s6  ;;  %2742 = vrot.lane.b32.xlu1 %v2350_v6, %s3897_s29 }
 0x326   : > { %v5628_v25 = vpop.permute.xlu1 %2458  ;;  %v2733_v63 = vpop.permute.xlu2 %2732 }
 0x328   : > { %2306 = vrot.lane.b32.xlu0 %v3792_v48, %s3897_s29 }
 0x32a   : > { %v2539_v40 = vpop.permute.xlu0 %2538 }
 0x32b   : > { %v2825_v35 = vsel %vm2822_vm2, %v5340_v12, %v2539_v40  ;;  %v2354_v40 = vmul.f32 %v5523_v29, %v4622_v61  ;;  %v2355_v61 = vmul.f32 %v5516_v33, %v4643_v2 }
 0x32c   : > { %2676 = vrot.lane.b32.xlu2 %v2173_v30, %s3897_s29  ;;  %2308 = vrot.lane.b32.xlu1 %v3794_v31, %s3897_s29  ;;  %v2858_v9 = vsel %vm2855_vm9, %v2825_v35, %v5311_v28  ;;  %v2351_v28 = vmul.f32 %v5483_v18, %v4544_v8  ;;  %v2352_v8 = vmul.f32 %v5478_v14, %v4570_v58 }
 0x32d   : > { %v2891_v42 = vsel %vm2888_vm10, %v2858_v9, %v2731_v27  ;;  %v3796_v27 = vpop.eup %3795  ;;  %v2356_v58 = vmul.f32 %v5518_v34, %v4676_v32  ;;  %v2357_v32 = vmul.f32 %v5563_v5, %v4743_v57  ;;  %v6097_v34 = vld [vmem:[#allocation8_spill] sm:$0xff] }
 0x32e   : > { %v5638_v13 = vpop.permute.xlu2 %2298  ;;  %v2541_v16 = vpop.permute.xlu1 %2540  ;;  %2923 = vst [vmem:[%s5546_s17 + $0x10] sm:$0xff] %v2891_v42  ;;  %v6098_v5 = vld [vmem:[#allocation36_spill] sm:$0xff] }
 0x32f   : > { %v2826_v20 = vsel %vm2822_vm2, %v5342_v11, %v2541_v16 }
 0x330   : > { %v2859_v12 = vsel %vm2855_vm9, %v2826_v20, %v5354_v38  ;;  %2468 = vrot.lane.b32.xlu0 %v2181_v43, %s3898_s6  ;;  %v2353_v38 = vmul.f32 %v5480_v36, %v4602_v51  ;;  %v2358_v20 = vmul.f32 %v5567_v45, %v6098_v5 }
 0x331   : > { %v2892_v21 = vsel %vm2888_vm10, %v2859_v12, %v2733_v63 }
 0x332   : > { %2924 = vst [vmem:[%s5546_s17 + $0x18] sm:$0xff] %v2892_v21  ;;  %v5650_v30 = vpop.permute.xlu0 %2666 }
 0x334   : > { %2292 = vrot.lane.b32.xlu2 %v3796_v27, %s3897_s29  ;;  %2552 = vrot.lane.b32.xlu1 %v2351_v28, %s3898_s6 }
 0x336   : > { %v5654_v48 = vpop.permute.xlu2 %2460  ;;  %v5656_v11 = vpop.permute.xlu1 %2668 }
 0x338   : > { %2550 = vrot.lane.b32.xlu0 %v2350_v6, %s3898_s6 }
 0x33a   : > { %v2283_v43 = vpop.permute.xlu0 %2282 }
 0x33b   : > { %v2360_v45 = vmul.f32 %v2283_v43, %v4939_v49  ;;  %v6102_v49 = vld [vmem:[#allocation13_spill] sm:$0xff] }
 0x33c   : > { %2744 = vrot.lane.b32.xlu2 %v2351_v28, %s3897_s29  ;;  %2748 = vrot.lane.b32.xlu1 %v2353_v38, %s3897_s29  ;;  %v2359_v28 = vmul.f32 %v5588_v26, %v4894_v54  ;;  %v6100_v54 = vld [vmem:[#allocation9_spill] sm:$0xff] }
 0x33e   : > { %v2543_v18 = vpop.permute.xlu2 %2542  ;;  %v5665_v63 = vpop.permute.xlu1 %2284 }
 0x33f   : > { %v2827_v35 = vsel %vm2822_vm2, %v5388_v52, %v2543_v18  ;;  %v2366_v52 = vmul.f32 %v5611_v62, %v4812_v4 }
 0x340   : > { %2746 = vrot.lane.b32.xlu0 %v2352_v8, %s3897_s29  ;;  %v2860_v9 = vsel %vm2855_vm9, %v2827_v35, %v6097_v34  ;;  %v6103_v34 = vld [vmem:[#allocation10_spill] sm:$0xff] }
 0x342   : > { %v5670_v6 = vpop.permute.xlu0 %2444 }
 0x344   : > { %2554 = vrot.lane.b32.xlu2 %v2352_v8, %s3898_s6  ;;  %2558 = vrot.lane.b32.xlu1 %v2354_v40, %s3898_s6  ;;  %v6099_v8 = vld [vmem:[#allocation11_spill] sm:$0xff] }
 0x346   : > { %v5674_v51 = vpop.permute.xlu2 %2670  ;;  %v5676_v36 = vpop.permute.xlu1 %2446 }
 0x348   : > { %2556 = vrot.lane.b32.xlu0 %v2353_v38, %s3898_s6 }
 0x34a   : > { %v5681_v14 = vpop.permute.xlu0 %2684 }
 0x34c   : > { %2750 = vrot.lane.b32.xlu2 %v2354_v40, %s3897_s29  ;;  %2754 = vrot.lane.b32.xlu1 %v2356_v58, %s3897_s29 }
 0x34e   : > { %v5687_v29 = vpop.permute.xlu1 %2686  ;;  %v2287_v31 = vpop.permute.xlu2 %2286 }
 0x350   : > { %2752 = vrot.lane.b32.xlu0 %v2355_v61, %s3897_s29 }
 0x352   : > { %v2735_v42 = vpop.permute.xlu0 %2734 }
 0x353   : > { %v2893_v16 = vsel %vm2888_vm10, %v2860_v9, %v2735_v42 }
 0x354   : > { %2560 = vrot.lane.b32.xlu2 %v2355_v61, %s3898_s6  ;;  %2564 = vrot.lane.b32.xlu1 %v2357_v32, %s3898_s6  ;;  %2925 = vst [vmem:[%s5546_s17 + $0x20] sm:$0xff] %v2893_v16  ;;  %v2368_v16 = vmul.f32 %v5638_v13, %v5004_v53  ;;  %v2361_v53 = vmul.f32 %v5665_v63, %v4985_v47 }
 0x356   : > { %v2737_v2 = vpop.permute.xlu1 %2736  ;;  %v5700_v33 = vpop.permute.xlu2 %2448 }
 0x358   : > { %2562 = vrot.lane.b32.xlu0 %v2356_v58, %s3898_s6  ;;  %v6101_v58 = vld [vmem:[#allocation37_spill] sm:$0xff] }
 0x359   : > { %v2367_v61 = vmul.f32 %v5617_v41, %v6101_v58 }
 0x35a   : > { %v2301_v57 = vpop.permute.xlu0 %2300 }
 0x35b   : > { %v2369_v5 = vmul.f32 %v2301_v57, %v5036_v7 }
 0x35c   : > { %2756 = vrot.lane.b32.xlu2 %v2357_v32, %s3897_s29  ;;  %2582 = vrot.lane.b32.xlu1 %v2366_v52, %s3898_s6 }
 0x35e   : > { %v2303_v12 = vpop.permute.xlu1 %2302  ;;  %v5709_v21 = vpop.permute.xlu2 %2688 }
 0x360   : > { %2758 = vrot.lane.b32.xlu0 %v2358_v20, %s3897_s29 }
 0x362   : > { %v5714_v27 = vpop.permute.xlu0 %2462 }
 0x364   : > { %2566 = vrot.lane.b32.xlu2 %v2358_v20, %s3898_s6  ;;  %2760 = vrot.lane.b32.xlu1 %v2359_v28, %s3897_s29 }
 0x366   : > { %v5718_v4 = vpop.permute.xlu1 %2464  ;;  %v2739_v62 = vpop.permute.xlu2 %2738 }
 0x368   : > { %2568 = vrot.lane.b32.xlu0 %v2359_v28, %s3898_s6 }
 0x36a   : > { %v2545_v38 = vpop.permute.xlu0 %2544 }
 0x36b   : > { %v2828_v18 = vsel %vm2822_vm2, %v6099_v8, %v2545_v38  ;;  %v6104_v8 = vld [vmem:[#allocation12_spill] sm:$0xff] }
 0x36c   : > { %2774 = vrot.lane.b32.xlu2 %v2366_v52, %s3897_s29  ;;  %2570 = vrot.lane.b32.xlu1 %v2360_v45, %s3898_s6  ;;  %v2861_v26 = vsel %vm2855_vm9, %v2828_v18, %v6100_v54  ;;  %v6105_v54 = vld [vmem:[#allocation16_spill] sm:$0xff] }
 0x36d   : > { %v2894_v40 = vsel %vm2888_vm10, %v2861_v26, %v2737_v2 }
 0x36e   : > { %v2305_v35 = vpop.permute.xlu2 %2304  ;;  %v2547_v32 = vpop.permute.xlu1 %2546  ;;  %2926 = vst [vmem:[%s5546_s17 + $0x28] sm:$0xff] %v2894_v40 }
 0x36f   : > { %v2829_v43 = vsel %vm2822_vm2, %v6102_v49, %v2547_v32  ;;  %v2371_v58 = vmul.f32 %v2305_v35, %v5175_v56 }
 0x370   : > { %v2862_v9 = vsel %vm2855_vm9, %v2829_v43, %v6103_v34  ;;  %2776 = vrot.lane.b32.xlu0 %v2367_v61, %s3897_s29 }
 0x371   : > { %v2895_v42 = vsel %vm2888_vm10, %v2862_v9, %v2739_v62  ;;  %v2362_v62 = vmul.f32 %v2287_v31, %v5075_v37  ;;  %v2370_v37 = vmul.f32 %v2303_v12, %v5106_v15 }
 0x372   : > { %2927 = vst [vmem:[%s5546_s17 + $0x30] sm:$0xff] %v2895_v42  ;;  %v5741_v2 = vpop.permute.xlu0 %2672  ;;  %v6106_v42 = vld [vmem:[#allocation17_spill] sm:$0xff] }
 0x374   : > { %2584 = vrot.lane.b32.xlu2 %v2367_v61, %s3898_s6  ;;  %2778 = vrot.lane.b32.xlu1 %v2368_v16, %s3897_s29 }
 0x376   : > { %v5745_v41 = vpop.permute.xlu2 %2466  ;;  %v5747_v52 = vpop.permute.xlu1 %2674 }
 0x378   : > { %2586 = vrot.lane.b32.xlu0 %v2368_v16, %s3898_s6 }
 0x37a   : > { %v2289_v20 = vpop.permute.xlu0 %2288 }
 0x37b   : > { %v2363_v47 = vmul.f32 %v2289_v20, %v5127_v60 }
 0x37c   : > { %2762 = vrot.lane.b32.xlu2 %v2360_v45, %s3897_s29  ;;  %2588 = vrot.lane.b32.xlu1 %v2369_v5, %s3898_s6 }
 0x37e   : > { %v2549_v13 = vpop.permute.xlu2 %2548  ;;  %v2291_v28 = vpop.permute.xlu1 %2290 }
 0x37f   : > { %v2830_v18 = vsel %vm2822_vm2, %v6104_v8, %v2549_v13  ;;  %v2364_v49 = vmul.f32 %v2291_v28, %v5145_v3  ;;  %v6108_v13 = vld [vmem:[#allocation19_spill] sm:$0xff] }
 0x380   : > { %2764 = vrot.lane.b32.xlu0 %v2361_v53, %s3897_s29  ;;  %v2863_v26 = vsel %vm2855_vm9, %v2830_v18, %v6105_v54  ;;  %v6110_v18 = vld [vmem:[#allocation15_spill] sm:$0xff] }
 0x382   : > { %v5757_v38 = vpop.permute.xlu0 %2450 }
 0x384   : > { %2572 = vrot.lane.b32.xlu2 %v2361_v53, %s3898_s6  ;;  %2766 = vrot.lane.b32.xlu1 %v2362_v62, %s3897_s29 }
 0x386   : > { %v5761_v7 = vpop.permute.xlu2 %2676  ;;  %v5763_v57 = vpop.permute.xlu1 %2452 }
 0x388   : > { %2574 = vrot.lane.b32.xlu0 %v2362_v62, %s3898_s6  ;;  %v6109_v62 = vld [vmem:[#allocation14_spill] sm:$0xff] }
 0x38a   : > { %v5767_v63 = vpop.permute.xlu0 %2690 }
 0x38c   : > { %2780 = vrot.lane.b32.xlu2 %v2369_v5, %s3897_s29  ;;  %2576 = vrot.lane.b32.xlu1 %v2363_v47, %s3898_s6  ;;  %v6107_v5 = vld [vmem:[#allocation22_spill] sm:$0xff] }
 0x38e   : > { %v5772_v31 = vpop.permute.xlu1 %2692  ;;  %v2293_v45 = vpop.permute.xlu2 %2292 }
 0x38f   : > { %v2365_v56 = vmul.f32 %v2293_v45, %v5192_v23 }
 0x390   : > { %2782 = vrot.lane.b32.xlu0 %v2370_v37, %s3897_s29 }
 0x392   : > { %v2741_v60 = vpop.permute.xlu0 %2740 }
 0x393   : > { %v2896_v40 = vsel %vm2888_vm10, %v2863_v26, %v2741_v60 }
 0x394   : > { %2590 = vrot.lane.b32.xlu2 %v2370_v37, %s3898_s6  ;;  %2928 = vst [vmem:[%s5546_s17 + $0x38] sm:$0xff] %v2896_v40 }
 0x396   : > { %v2743_v15 = vpop.permute.xlu1 %2742  ;;  %v2745_v12 = vpop.permute.xlu2 %2744 }
 0x398   : > { %2592 = vrot.lane.b32.xlu0 %v2371_v58, %s3898_s6 }
 0x39a   : > { %v2307_v61 = vpop.permute.xlu0 %2306 }
 0x39b   : > { %v2372_v32 = vmul.f32 %v2307_v61, %v5196_v0 }
 0x39c   : > { %2768 = vrot.lane.b32.xlu2 %v2363_v47, %s3897_s29 }
 0x39d   : > { %2594 = vrot.lane.b32.xlu1 %v2372_v32, %s3898_s6 }
 0x39e   : > { %v2309_v43 = vpop.permute.xlu1 %2308  ;;  %v2555_v34 = vpop.permute.xlu2 %2554 }
 0x39f   : > { %v2373_v53 = vmul.f32 %v2309_v43, %v5204_v44  ;;  %v2833_v44 = vsel %vm2822_vm2, %v5495_v55, %v2555_v34  ;;  %v6112_v34 = vld [vmem:[#allocation20_spill] sm:$0xff] }
 0x3a0   : > { %2770 = vrot.lane.b32.xlu0 %v2364_v49, %s3897_s29  ;;  %v2866_v54 = vsel %vm2855_vm9, %v2833_v44, %v6110_v18 }
 0x3a2   : > { %v5789_v9 = vpop.permute.xlu0 %2468 }
 0x3a4   : > { %2578 = vrot.lane.b32.xlu2 %v2364_v49, %s3898_s6  ;;  %v6111_v49 = vld [vmem:[#allocation18_spill] sm:$0xff] }
 0x3a5   : > { %2772 = vrot.lane.b32.xlu1 %v2365_v56, %s3897_s29 }
 0x3a6   : > { %v2553_v0 = vpop.permute.xlu1 %2552  ;;  %v2751_v35 = vpop.permute.xlu2 %2750 }
 0x3a7   : > { %v2832_v16 = vsel %vm2822_vm2, %v6106_v42, %v2553_v0 }
 0x3a8   : > { %v2865_v3 = vsel %vm2855_vm9, %v2832_v16, %v6107_v5  ;;  %2580 = vrot.lane.b32.xlu0 %v2365_v56, %s3898_s6 }
 0x3a9   : > { %v2898_v20 = vsel %vm2888_vm10, %v2865_v3, %v2745_v12 }
 0x3aa   : > { %2930 = vst [vmem:[%s5546_s17 + $0x48] sm:$0xff] %v2898_v20  ;;  %v2551_v23 = vpop.permute.xlu0 %2550 }
 0x3ab   : > { %v2831_v28 = vsel %vm2822_vm2, %v6108_v13, %v2551_v23 }
 0x3ac   : > { %2596 = vrot.lane.b32.xlu2 %v2373_v53, %s3898_s6  ;;  %v2864_v47 = vsel %vm2855_vm9, %v2831_v28, %v6109_v62  ;;  %v6115_v62 = vld [vmem:[#allocation27_spill] sm:$0xff] }
 0x3ad   : > { %v2897_v37 = vsel %vm2888_vm10, %v2864_v47, %v2743_v15  ;;  %2784 = vrot.lane.b32.xlu1 %v2371_v58, %s3897_s29 }
 0x3ae   : > { %v2749_v45 = vpop.permute.xlu1 %2748  ;;  %v2561_v8 = vpop.permute.xlu2 %2560  ;;  %2929 = vst [vmem:[%s5546_s17 + $0x40] sm:$0xff] %v2897_v37  ;;  %v6116_v37 = vld [vmem:[#allocation31_spill] sm:$0xff] }
 0x3b0   : > { %2788 = vrot.lane.b32.xlu0 %v2373_v53, %s3897_s29  ;;  %v6114_v53 = vld [vmem:[#allocation23_spill] sm:$0xff] }
 0x3b2   : > { %v2747_v26 = vpop.permute.xlu0 %2746 }
 0x3b3   : > { %v2899_v60 = vsel %vm2888_vm10, %v2866_v54, %v2747_v26 }
 0x3b4   : > { %2786 = vrot.lane.b32.xlu2 %v2372_v32, %s3897_s29  ;;  %2931 = vst [vmem:[%s5546_s17 + $0x50] sm:$0xff] %v2899_v60 }
 0x3b6   : > { %v2559_v40 = vpop.permute.xlu1 %2558  ;;  %v2757_v58 = vpop.permute.xlu2 %2756 }
 0x3b7   : > { %v2835_v15 = vsel %vm2822_vm2, %v5489_v1, %v2559_v40  ;;  %v2836_v1 = vsel %vm2822_vm2, %v5532_v50, %v2561_v8  ;;  %v6117_v40 = vld [vmem:[#allocation25_spill] sm:$0xff] }
 0x3b8   : > { %v2868_v55 = vsel %vm2855_vm9, %v2835_v15, %v5510_v22  ;;  %v6113_v22 = vld [vmem:[#allocation29_spill] sm:$0xff] }
 0x3b9   : > { %v2901_v12 = vsel %vm2888_vm10, %v2868_v55, %v2751_v35  ;;  %v2869_v35 = vsel %vm2855_vm9, %v2836_v1, %v6113_v22 }
 0x3ba   : > { %2933 = vst [vmem:[%s5546_s17 + $0x60] sm:$0xff] %v2901_v12  ;;  %v2557_v61 = vpop.permute.xlu0 %2556 }
 0x3bb   : > { %v2834_v43 = vsel %vm2822_vm2, %v6111_v49, %v2557_v61 }
 0x3bc   : > { %v2867_v32 = vsel %vm2855_vm9, %v2834_v43, %v6112_v34  ;;  %v6119_v43 = vld [vmem:[#allocation21_spill] sm:$0xff] }
 0x3bd   : > { %v2900_v56 = vsel %vm2888_vm10, %v2867_v32, %v2749_v45 }
 0x3be   : > { %v2755_v0 = vpop.permute.xlu1 %2754  ;;  %v2567_v42 = vpop.permute.xlu2 %2566  ;;  %2932 = vst [vmem:[%s5546_s17 + $0x58] sm:$0xff] %v2900_v56 }
 0x3bf   : > { %v2839_v54 = vsel %vm2822_vm2, %v5573_v10, %v2567_v42 }
 0x3c2   : > { %v2753_v16 = vpop.permute.xlu0 %2752 }
 0x3c3   : > { %v2902_v5 = vsel %vm2888_vm10, %v2869_v35, %v2753_v16  ;;  %v6120_v35 = vld [vmem:[#allocation33_spill] sm:$0xff] }
 0x3c4   : > { %2934 = vst [vmem:[%s5546_s17 + $0x68] sm:$0xff] %v2902_v5 }
 0x3c6   : > { %v2565_v3 = vpop.permute.xlu1 %2564  ;;  %v2775_v20 = vpop.permute.xlu2 %2774 }
 0x3c7   : > { %v2838_v23 = vsel %vm2822_vm2, %v6114_v53, %v2565_v3 }
 0x3c8   : > { %v2871_v13 = vsel %vm2855_vm9, %v2838_v23, %v5549_v24 }
 0x3c9   : > { %v2904_v28 = vsel %vm2888_vm10, %v2871_v13, %v2757_v58  ;;  %v2872_v58 = vsel %vm2855_vm9, %v2839_v54, %v6117_v40 }
 0x3ca   : > { %2936 = vst [vmem:[%s5546_s17 + $0x78] sm:$0xff] %v2904_v28  ;;  %v2563_v50 = vpop.permute.xlu0 %2562 }
 0x3cb   : > { %v2837_v47 = vsel %vm2822_vm2, %v6115_v62, %v2563_v50 }
 0x3cc   : > { %v2870_v45 = vsel %vm2855_vm9, %v2837_v47, %v6116_v37 }
 0x3cd   : > { %v2903_v8 = vsel %vm2888_vm10, %v2870_v45, %v2755_v0 }
 0x3ce   : > { %v2585_v44 = vpop.permute.xlu2 %2584  ;;  %v2583_v18 = vpop.permute.xlu1 %2582  ;;  %2935 = vst [vmem:[%s5546_s17 + $0x70] sm:$0xff] %v2903_v8 }
 0x3cf   : > { %v2847_v24 = vsel %vm2822_vm2, %v5553_v59, %v2583_v18  ;;  %v6118_v59 = vld [vmem:[#allocation32_spill] sm:$0xff]  ;;  %v2848_v0 = vsel %vm2822_vm2, %v5624_v19, %v2585_v44 }
 0x3d0   : > { %v2880_v26 = vsel %vm2855_vm9, %v2847_v24, %v5582_v46  ;;  %v2881_v16 = vsel %vm2855_vm9, %v2848_v0, %v6120_v35 }
 0x3d1   : > { %v2913_v60 = vsel %vm2888_vm10, %v2880_v26, %v2775_v20 }
 0x3d2   : > { %2945 = vst [vmem:[%s5546_s17 + $0xc0] sm:$0xff] %v2913_v60  ;;  %v2759_v15 = vpop.permute.xlu0 %2758 }
 0x3d3   : > { %v2905_v55 = vsel %vm2888_vm10, %v2872_v58, %v2759_v15 }
 0x3d4   : > { %2937 = vst [vmem:[%s5546_s17 + $0x80] sm:$0xff] %v2905_v55 }
 0x3d6   : > { %v2761_v12 = vpop.permute.xlu1 %2760  ;;  %v2763_v10 = vpop.permute.xlu2 %2762 }
 0x3da   : > { %v2569_v61 = vpop.permute.xlu0 %2568 }
 0x3db   : > { %v2840_v49 = vsel %vm2822_vm2, %v6118_v59, %v2569_v61 }
 0x3dc   : > { %v2873_v46 = vsel %vm2855_vm9, %v2840_v49, %v6119_v43 }
 0x3dd   : > { %v2906_v34 = vsel %vm2888_vm10, %v2873_v46, %v2761_v12 }
 0x3de   : > { %v2573_v32 = vpop.permute.xlu2 %2572  ;;  %v2571_v56 = vpop.permute.xlu1 %2570  ;;  %2938 = vst [vmem:[%s5546_s17 + $0x88] sm:$0xff] %v2906_v34 }
 0x3df   : > { %v2841_v42 = vsel %vm2822_vm2, %v5605_v39, %v2571_v56  ;;  %v2842_v50 = vsel %vm2822_vm2, %v5670_v6, %v2573_v32 }
 0x3e0   : > { %v2874_v1 = vsel %vm2855_vm9, %v2841_v42, %v5650_v30 }
 0x3e1   : > { %v2907_v22 = vsel %vm2888_vm10, %v2874_v1, %v2763_v10 }
 0x3e2   : > { %2939 = vst [vmem:[%s5546_s17 + $0x90] sm:$0xff] %v2907_v22  ;;  %v2777_v5 = vpop.permute.xlu0 %2776 }
 0x3e3   : > { %v2914_v3 = vsel %vm2888_vm10, %v2881_v16, %v2777_v5 }
 0x3e4   : > { %2946 = vst [vmem:[%s5546_s17 + $0xc8] sm:$0xff] %v2914_v3 }
 0x3e6   : > { %v2779_v20 = vpop.permute.xlu1 %2778  ;;  %v2781_v19 = vpop.permute.xlu2 %2780 }
 0x3ea   : > { %v2587_v53 = vpop.permute.xlu0 %2586 }
 0x3eb   : > { %v2849_v39 = vsel %vm2822_vm2, %v5628_v25, %v2587_v53 }
 0x3ec   : > { %v2882_v30 = vsel %vm2855_vm9, %v2849_v39, %v5619_v17  ;;  %v2875_v17 = vsel %vm2855_vm9, %v2842_v50, %v5656_v11 }
 0x3ed   : > { %v2915_v23 = vsel %vm2888_vm10, %v2882_v30, %v2779_v20 }
 0x3ee   : > { %v2591_v13 = vpop.permute.xlu2 %2590  ;;  %v2589_v28 = vpop.permute.xlu1 %2588  ;;  %2947 = vst [vmem:[%s5546_s17 + $0xd0] sm:$0xff] %v2915_v23 }
 0x3ef   : > { %v2850_v62 = vsel %vm2822_vm2, %v5654_v48, %v2589_v28  ;;  %v2851_v11 = vsel %vm2822_vm2, %v5714_v27, %v2591_v13 }
 0x3f0   : > { %v2883_v47 = vsel %vm2855_vm9, %v2850_v62, %v5681_v14 }
 0x3f1   : > { %v2916_v25 = vsel %vm2888_vm10, %v2883_v47, %v2781_v19 }
 0x3f2   : > { %2948 = vst [vmem:[%s5546_s17 + $0xd8] sm:$0xff] %v2916_v25  ;;  %v2765_v37 = vpop.permute.xlu0 %2764 }
 0x3f3   : > { %v2908_v45 = vsel %vm2888_vm10, %v2875_v17, %v2765_v37 }
 0x3f4   : > { %2940 = vst [vmem:[%s5546_s17 + $0x98] sm:$0xff] %v2908_v45 }
 0x3f6   : > { %v2767_v8 = vpop.permute.xlu1 %2766  ;;  %v2769_v6 = vpop.permute.xlu2 %2768 }
 0x3fa   : > { %v2575_v44 = vpop.permute.xlu0 %2574 }
 0x3fb   : > { %v2843_v48 = vsel %vm2822_vm2, %v5676_v36, %v2575_v44 }
 0x3fc   : > { %v2876_v14 = vsel %vm2855_vm9, %v2843_v48, %v5674_v51  ;;  %v2884_v51 = vsel %vm2855_vm9, %v2851_v11, %v5687_v29 }
 0x3fd   : > { %v2909_v18 = vsel %vm2888_vm10, %v2876_v14, %v2767_v8 }
 0x3fe   : > { %v2579_v54 = vpop.permute.xlu2 %2578  ;;  %v2577_v24 = vpop.permute.xlu1 %2576  ;;  %2941 = vst [vmem:[%s5546_s17 + $0xa0] sm:$0xff] %v2909_v18 }
 0x3ff   : > { %v2844_v26 = vsel %vm2822_vm2, %v5700_v33, %v2577_v24  ;;  %v2845_v33 = vsel %vm2822_vm2, %v5757_v38, %v2579_v54 }
 0x400   : > { %v2877_v60 = vsel %vm2855_vm9, %v2844_v26, %v5741_v2  ;;  %v2878_v61 = vsel %vm2855_vm9, %v2845_v33, %v5747_v52 }
 0x401   : > { %v2910_v40 = vsel %vm2888_vm10, %v2877_v60, %v2769_v6 }
 0x402   : > { %2942 = vst [vmem:[%s5546_s17 + $0xa8] sm:$0xff] %v2910_v40  ;;  %v2783_v36 = vpop.permute.xlu0 %2782 }
 0x403   : > { %v2917_v58 = vsel %vm2888_vm10, %v2884_v51, %v2783_v36 }
 0x404   : > { %2949 = vst [vmem:[%s5546_s17 + $0xe0] sm:$0xff] %v2917_v58 }
 0x406   : > { %v2597_v27 = vpop.permute.xlu2 %2596 }
 0x40a   : > { %v2593_v15 = vpop.permute.xlu0 %2592 }
 0x40e   : > { %v2787_v12 = vpop.permute.xlu2 %2786 }
 0x40f   : > { %v2595_v55 = vpop.permute.xlu1 %2594 }
 0x410   : > { %v2853_v2 = vsel %vm2822_vm2, %v5745_v41, %v2595_v55 }
 0x411   : > { %v2886_v29 = vsel %vm2855_vm9, %v2853_v2, %v5767_v63  ;;  %v2852_v63 = vsel %vm2822_vm2, %v5718_v4, %v2593_v15 }
 0x412   : > { %v2919_v10 = vsel %vm2888_vm10, %v2886_v29, %v2787_v12  ;;  %v2771_v59 = vpop.permute.xlu0 %2770  ;;  %v2885_v32 = vsel %vm2855_vm9, %v2852_v63, %v5709_v21 }
 0x413   : > { %2951 = vst [vmem:[%s5546_s17 + $0xf0] sm:$0xff] %v2919_v10  ;;  %v2911_v49 = vsel %vm2888_vm10, %v2878_v61, %v2771_v59 }
 0x414   : > { %2943 = vst [vmem:[%s5546_s17 + $0xb0] sm:$0xff] %v2911_v49 }
 0x417   : > { %v2773_v38 = vpop.permute.xlu1 %2772 }
 0x41a   : > { %v2581_v41 = vpop.permute.xlu0 %2580 }
 0x41b   : > { %v2846_v43 = vsel %vm2822_vm2, %v5763_v57, %v2581_v41  ;;  %v2854_v57 = vsel %vm2822_vm2, %v5789_v9, %v2597_v27 }
 0x41c   : > { %v2879_v52 = vsel %vm2855_vm9, %v2846_v43, %v5761_v7  ;;  %v2887_v7 = vsel %vm2855_vm9, %v2854_v57, %v5772_v31 }
 0x41d   : > { %v2912_v46 = vsel %vm2888_vm10, %v2879_v52, %v2773_v38 }
 0x41e   : > { %2944 = vst [vmem:[%s5546_s17 + $0xb8] sm:$0xff] %v2912_v46 }
 0x41f   : > { %v2785_v34 = vpop.permute.xlu1 %2784 }
 0x420   : > { %v2918_v4 = vsel %vm2888_vm10, %v2885_v32, %v2785_v34 }
 0x421   : > { %2950 = vst [vmem:[%s5546_s17 + $0xe8] sm:$0xff] %v2918_v4 }
 0x422   : > { %v2789_v56 = vpop.permute.xlu0 %2788 }
 0x423   : > { %v2920_v0 = vsel %vm2888_vm10, %v2887_v7, %v2789_v56 }
 0x424   : > { %2952 = vst [vmem:[%s5546_s17 + $0xf8] sm:$0xff] %v2920_v0 }
 0x425   : > { %3854 = shalt.err (!%p3851_p8)
}
 0x426   : > { %s3899_s28 = smov 128   ;;  %s3900_s29 = smov 8  }
 0x427   : > { %3491 = dma.vmem_to_hbm [thread:$0]  (%p3967_p11), %s2967_s16, 4096, %s2969_s25, %s2954_s27, %s3899_s28, %s3899_s28, %s3900_s29  }
 0x428 PF: > { %s2983_s6 = sand.u32 1, %s3881_s12   ;;  %p3498_p10 = pnand %p3056_p9, %p3971_p12 }
 0x429   : > { %s2984_s11 = scalar_lea.sflag [#allocation4], %s2983_s6 }
 0x42a   : > { %p3499_p0 = pneg %p3498_p10 }
 0x42c   : > { %3876 = dma.done.wait (%p3499_p0), %s2984_s11, 4096  }
 0x42d   : > { %3878 = vsyncadd (%p3499_p0), %s2984_s11, 4294963200  ;;  %p16_p1 = scmp.ge.s32.totalorder %s3946_s18, 4   ;;  %s6121_s12 = smov %s3885_s13 }
 0x42e   : > { %s6122_s13 = smov %s3889_s14  ;;  %s6123_s14 = smov %s3958_s21 }
 0x42f   : > { %s6124_s15 = smov %s3946_s18  ;;  %18 = sbr.rel (!%p16_p1) target bundleno = 5 (0x5), region = 80 }
 0x434   :  { %2990 = vsyncpa [#allocation3], 1 }
 0x435   :  { %2992 = vsyncpa [#allocation3 + $0x1], 1 }
 0x436   :  { %2993 = vsyncpa [#allocation4], 1 }
 0x437   :  { %2995 = vsyncpa [#allocation4 + $0x1], 1 }

</bundles_post_ra>
